<compile_context>
chip_gen: v7x
topology: tpu7x:2x2x1
jax: 0.10.0
libtpu: 0.0.40
codegen_flags: <defaults>
</compile_context>

<pallas_src>
import functools
import math

import jax
import jax.numpy as jnp
from jax import lax
from jax.experimental import pallas as pl
from jax.experimental.pallas import tpu as pltpu


# ----------------------------- configuration --------------------------------
BATCH = 2
IMG_C, IMG_H, IMG_W = 3, 16, 16
PATCH = 8                                   # -> 4 patches + CLS = 5 real tokens
IMG_EMBED = 32                              # image_encoder['image_embedding_size']
TXT_EMBED = 32                              # text_encoder['text_embedding_size']
SHARED_DIM = 16                             # args.shared_dim
NUM_HEADS = 4
NUM_LAYERS = 2
MLP_DIM = 64
TXT_SEQ = 8
VOCAB = 50
LN_EPS = 1e-5

N_PATCHES = (IMG_H // PATCH) * (IMG_W // PATCH)     # 4
IMG_SEQ_REAL = N_PATCHES + 1                        # 5 (CLS + patches)
IMG_SEQ = 8                                         # padded to a sublane multiple
NEG_INF = -1e30

# NOTE: dropout_prob is irrelevant at inference (dropout == identity in eval).
# NOTE: no attention/padding mask in the text tower -- all TXT_SEQ tokens are
#       treated as real tokens, matching the original module's usage.


# ------------------------------ in-kernel math --------------------------------
def _layernorm(x, g, b, eps=LN_EPS):
    mu = jnp.mean(x, axis=-1, keepdims=True)
    var = jnp.mean(jnp.square(x - mu), axis=-1, keepdims=True)
    return (x - mu) * lax.rsqrt(var + eps) * g + b


def _softmax(s):
    # NOTE: the divide uses the EUP approximate reciprocal (free bundle slot);
    # tiny relative error vs an exact softmax -- fine for inference.
    m = jnp.max(s, axis=-1, keepdims=True)
    e = jnp.exp(s - m)
    return e * pl.reciprocal(jnp.sum(e, axis=-1, keepdims=True), approx=True)


def _dense(x, w_bf16, b_f32):
    """bf16 MXU matmul with f32 accumulation; bias add in f32."""
    y = jnp.dot(x.astype(jnp.bfloat16), w_bf16, preferred_element_type=jnp.float32)
    return y + b_f32


def _gelu(x):
    # NOTE: tanh-approximate GELU (PyTorch nn.GELU() default is exact erf);
    # documented deviation kept for robust Mosaic lowering.
    return jax.nn.gelu(x)


def _pad_key_bias(seq, real):
    """[1,1,seq] additive bias masking padded key columns (trace-time constant)."""
    if real >= seq:
        return None
    col = lax.broadcasted_iota(jnp.int32, (1, 1, seq), 2)
    return jnp.where(col < real, 0.0, NEG_INF).astype(jnp.float32)


def _encoder_stack(xf, w_in, w2s, vecs, batch, seq, num_heads, pre_ln, key_bias):
    """Transformer encoder stack on the flattened [batch*seq, d] activation.

    w_in : ref [L, d, 3d + d + mlp]  (wqkv | wo | w1), bf16
    w2s  : ref [L, mlp, d], bf16
    vecs : ref [L, 8, 128] per-layer vectors (bqkv|bo|ln1g|ln1b|b1|b2|ln2g|ln2b), f32
    """
    n, d = xf.shape
    num_layers, mlp = w2s.shape[0], w2s.shape[1]
    dh = d // num_heads
    scale = 1.0 / math.sqrt(dh)

    for l in range(num_layers):                       # static unroll (L == 2)
        wqkv = w_in[l, :, 0:3 * d]
        wo = w_in[l, :, 3 * d:4 * d]
        w1 = w_in[l, :, 4 * d:4 * d + mlp]
        w2 = w2s[l]
        bqkv = vecs[l, 0:1, 0:3 * d]
        bo = vecs[l, 1:2, 0:d]
        ln1g = vecs[l, 2:3, 0:d]
        ln1b = vecs[l, 3:4, 0:d]
        b1 = vecs[l, 4:5, 0:mlp]
        b2 = vecs[l, 5:6, 0:d]
        ln2g = vecs[l, 6:7, 0:d]
        ln2b = vecs[l, 7:8, 0:d]

        h_in = _layernorm(xf, ln1g, ln1b) if pre_ln else xf
        qkv = _dense(h_in, wqkv, bqkv)                            # [n, 3d] f32

        # --- multi-head self-attention (static head loop, batched over B) ---
        qkv3 = qkv.reshape(batch, seq, 3 * d).astype(jnp.bfloat16)
        heads = []
        for hd in range(num_heads):
            q = qkv3[..., hd * dh:(hd + 1) * dh]
            k = qkv3[..., d + hd * dh:d + (hd + 1) * dh]
            v = qkv3[..., 2 * d + hd * dh:2 * d + (hd + 1) * dh]
            sc = jnp.einsum("bqc,bkc->bqk", q, k,
                            preferred_element_type=jnp.float32) * scale
            if key_bias is not None:
                sc = sc + key_bias
            p = _softmax(sc)
            heads.append(jnp.einsum("bqk,bkc->bqc", p.astype(jnp.bfloat16), v,
                                    preferred_element_type=jnp.float32))
        attn = jnp.concatenate(heads, axis=-1).reshape(n, d)      # [n, d] f32
        attn = _dense(attn, wo, bo)

        if pre_ln:                                    # ViT style (pre-LN)
            xf = xf + attn
            h = _layernorm(xf, ln2g, ln2b)
        else:                                         # DistilBERT style (post-LN)
            xf = _layernorm(xf + attn, ln1g, ln1b)
            h = xf

        h = _dense(h, w1, b1)
        h = _gelu(h)
        h = _dense(h, w2, b2)
        xf = (xf + h) if pre_ln else _layernorm(xf + h, ln2g, ln2b)

    return xf                                         # [n, d] f32


def _projection_head(x, pw, pv):
    """ProjectionHead: Linear -> GELU -> Linear -> (+residual) -> LayerNorm.

    pw: ref [emb+proj, proj] bf16 (w1 | w2 stacked on rows); pv: ref [4, proj] f32.
    """
    d = x.shape[-1]
    pdim = pw.shape[1]
    w1 = pw[0:d, :]
    w2 = pw[d:d + pdim, :]
    b1, b2, g, beta = pv[0:1, :], pv[1:2, :], pv[2:3, :], pv[3:4, :]
    proj = _dense(x, w1, b1)
    h = _gelu(proj)
    h = _dense(h, w2, b2)
    h = h + proj                                      # dropout == identity at inference
    return _layernorm(h, g, beta)


# ------------------------------ fused kernel ----------------------------------
def _clip_kernel(batch, num_heads, img_seq, img_real,
                 patches, patch_w, pos_full,
                 img_w_in, img_w2, img_vecs, img_lnf, img_pw, img_pv,
                 tok, txt_embln, txt_w_in, txt_w2, txt_vecs, txt_pw, txt_pv,
                 out_ref):
    tower = pl.program_id(0)

    # ----- step 0: image tower (patch embed + pre-LN ViT + final LN + proj) -----
    @pl.when(tower == 0)
    def _image_tower():
        d = patch_w.shape[1]
        # CLS/pad rows of `patches` are zero; CLS token and the patch-embed bias
        # are pre-folded into `pos_full` by the wrapper.
        emb = jnp.dot(patches[...], patch_w[...],
                      preferred_element_type=jnp.float32)          # [B*S, D] f32
        xf = emb + pos_full[...]
        xf = _encoder_stack(xf, img_w_in, img_w2, img_vecs, batch, img_seq,
                            num_heads, pre_ln=True,
                            key_bias=_pad_key_bias(img_seq, img_real))
        cls = xf.reshape(batch, img_seq, d)[:, 0, :]               # [B, D]
        feat = _layernorm(cls, img_lnf[0:1, :], img_lnf[1:2, :])
        out_ref[0, :, :] = _projection_head(feat, img_pw, img_pv).astype(out_ref.dtype)

    # ----- step 1: text tower (embedding LN + post-LN encoder + proj) -----
    @pl.when(tower == 1)
    def _text_tower():
        n, d = tok.shape
        seq = n // batch
        yf = _layernorm(tok[...], txt_embln[0:1, :], txt_embln[1:2, :])
        yf = _encoder_stack(yf, txt_w_in, txt_w2, txt_vecs, batch, seq,
                            num_heads, pre_ln=False, key_bias=None)
        cls = yf.reshape(batch, seq, d)[:, 0, :]
        out_ref[0, :, :] = _projection_head(cls, txt_pw, txt_pv).astype(out_ref.dtype)


# ------------------------------ parameters -----------------------------------
def _normal(key, shape):
    return jax.random.normal(key, shape, jnp.float32) * 0.02


def _init_layer_stack(key, num_layers, d, mlp_dim):
    ks = jax.random.split(key, 4)
    f32 = jnp.float32
    return dict(
        wqkv=_normal(ks[0], (num_layers, d, 3 * d)), bqkv=jnp.zeros((num_layers, 3 * d), f32),
        wo=_normal(ks[1], (num_layers, d, d)), bo=jnp.zeros((num_layers, d), f32),
        ln1g=jnp.ones((num_layers, d), f32), ln1b=jnp.zeros((num_layers, d), f32),
        w1=_normal(ks[2], (num_layers, d, mlp_dim)), b1=jnp.zeros((num_layers, mlp_dim), f32),
        w2=_normal(ks[3], (num_layers, mlp_dim, d)), b2=jnp.zeros((num_layers, d), f32),
        ln2g=jnp.ones((num_layers, d), f32), ln2b=jnp.zeros((num_layers, d), f32),
    )


def _init_proj_head(key, emb_dim, proj_dim):
    k1, k2 = jax.random.split(key)
    f32 = jnp.float32
    return dict(
        w1=_normal(k1, (emb_dim, proj_dim)), b1=jnp.zeros((1, proj_dim), f32),
        w2=_normal(k2, (proj_dim, proj_dim)), b2=jnp.zeros((1, proj_dim), f32),
        ln_g=jnp.ones((1, proj_dim), f32), ln_b=jnp.zeros((1, proj_dim), f32),
    )


def init_clip_params(key):
    kv, kt, kpv, kpt = jax.random.split(key, 4)
    kv1, kv2, kv3, kv4 = jax.random.split(kv, 4)
    vit = dict(
        patch_w=_normal(kv1, (IMG_C * PATCH * PATCH, IMG_EMBED)),
        patch_b=jnp.zeros((1, IMG_EMBED), jnp.float32),
        cls=_normal(kv2, (1, 1, IMG_EMBED)),
        pos=_normal(kv3, (1, IMG_SEQ_REAL, IMG_EMBED)),
        layers=_init_layer_stack(kv4, NUM_LAYERS, IMG_EMBED, MLP_DIM),
        lnf_g=jnp.ones((1, IMG_EMBED), jnp.float32),
        lnf_b=jnp.zeros((1, IMG_EMBED), jnp.float32),
    )
    kt1, kt2, kt3 = jax.random.split(kt, 3)
    txt = dict(
        word_emb=_normal(kt1, (VOCAB, TXT_EMBED)),
        pos_emb=_normal(kt2, (TXT_SEQ, TXT_EMBED)),
        emb_ln_g=jnp.ones((1, TXT_EMBED), jnp.float32),
        emb_ln_b=jnp.zeros((1, TXT_EMBED), jnp.float32),
        layers=_init_layer_stack(kt3, NUM_LAYERS, TXT_EMBED, MLP_DIM),
    )
    return dict(
        vit=vit,
        txt=txt,
        img_proj=_init_proj_head(kpv, IMG_EMBED, SHARED_DIM),
        txt_proj=_init_proj_head(kpt, TXT_EMBED, SHARED_DIM),
    )


# ------------------------------ parameter packing ------------------------------
def _pack_layer_slabs(layers, d, mlp):
    """Pack a layer stack into 3 slabs: weights-in, w2, and per-layer vectors."""
    w_in = jnp.concatenate(
        [layers["wqkv"], layers["wo"], layers["w1"]], axis=-1).astype(jnp.bfloat16)
    w2 = layers["w2"].astype(jnp.bfloat16)
    num_layers = layers["bqkv"].shape[0]
    vec = jnp.zeros((num_layers, 8, 128), jnp.float32)
    entries = (("bqkv", 3 * d), ("bo", d), ("ln1g", d), ("ln1b", d),
               ("b1", mlp), ("b2", d), ("ln2g", d), ("ln2b", d))
    for i, (name, width) in enumerate(entries):
        vec = vec.at[:, i, :width].set(layers[name])
    return w_in, w2, vec


def _pack_proj_head(ph):
    w = jnp.concatenate([ph["w1"], ph["w2"]], axis=0).astype(jnp.bfloat16)   # [D+P, P]
    v = jnp.concatenate([ph["b1"], ph["b2"], ph["ln_g"], ph["ln_b"]], axis=0)  # [4, P]
    return w, v


# ------------------------------ CLIP forward ----------------------------------
def clip_forward(params, v, t):
    b, c, h, w = v.shape
    p = PATCH
    n_patch = (h // p) * (w // p)
    cpp = c * p * p

    vit, txt = params["vit"], params["txt"]

    # --- image-side JAX glue: patchify, pad seq 5 -> 8, fold CLS/patch-bias into pos ---
    patches = (v.reshape(b, c, h // p, p, w // p, p)
                 .transpose(0, 2, 4, 1, 3, 5)
                 .reshape(b, n_patch, cpp))
    patches_padded = jnp.zeros((b, IMG_SEQ, cpp), jnp.float32)
    patches_padded = patches_padded.at[:, 1:n_patch + 1, :].set(patches)
    patches_padded = patches_padded.reshape(b * IMG_SEQ, cpp).astype(jnp.bfloat16)

    pos = vit["pos"][0]                                                 # [5, D]
    pos_cls = jnp.concatenate(
        [pos[:1] + vit["cls"][0, 0][None, :],                           # CLS row
         pos[1:] + vit["patch_b"],                                      # patch rows (+bias)
         jnp.zeros((IMG_SEQ - IMG_SEQ_REAL, IMG_EMBED), jnp.float32)],
        axis=0)
    pos_full = jnp.tile(pos_cls, (b, 1))                                # [B*S, D]

    # --- text-side JAX glue: token + positional embedding gather ---
    tok = (txt["word_emb"][t] + txt["pos_emb"][None, :, :]).reshape(b * TXT_SEQ, TXT_EMBED)

    img_w_in, img_w2, img_vecs = _pack_layer_slabs(vit["layers"], IMG_EMBED, MLP_DIM)
    txt_w_in, txt_w2, txt_vecs = _pack_layer_slabs(txt["layers"], TXT_EMBED, MLP_DIM)
    img_lnf = jnp.concatenate([vit["lnf_g"], vit["lnf_b"]], axis=0)     # [2, D]
    txt_embln = jnp.concatenate([txt["emb_ln_g"], txt["emb_ln_b"]], axis=0)
    img_pw, img_pv = _pack_proj_head(params["img_proj"])
    txt_pw, txt_pv = _pack_proj_head(params["txt_proj"])

    inputs = [patches_padded, vit["patch_w"].astype(jnp.bfloat16), pos_full,
              img_w_in, img_w2, img_vecs, img_lnf, img_pw, img_pv,
              tok, txt_embln, txt_w_in, txt_w2, txt_vecs, txt_pw, txt_pv]

    def _full_spec(a):
        nd = a.ndim

        def index_map(i):
            return (0,) * nd

        return pl.BlockSpec(a.shape, index_map)

    kernel = functools.partial(_clip_kernel, b, NUM_HEADS, IMG_SEQ, IMG_SEQ_REAL)
    out = pl.pallas_call(
        kernel,
        out_shape=jax.ShapeDtypeStruct((2, b, SHARED_DIM), jnp.float32),
        grid=(2,),
        in_specs=[_full_spec(a) for a in inputs],
        out_specs=pl.BlockSpec((1, b, SHARED_DIM), lambda i: (i, 0, 0)),
        compiler_params=pltpu.CompilerParams(
            dimension_semantics=("parallel",)),     # v7x: one tower per TensorCore
    )(*inputs)
    return out[0], out[1]

# TODO(synk): at real CLIP sizes the fully VMEM-resident weight slabs must move
# to per-layer double-buffered streaming (grid over layers, pl.Buffered(2) weight
# specs) -- mandatory earlier on v7x (64 MiB VMEM) than on v5e/v6e (128 MiB).


# ----------------------------------- main -------------------------------------
if __name__ == "__main__":
    key = jax.random.PRNGKey(0)
    kp, kv, kt = jax.random.split(key, 3)

    params = init_clip_params(kp)
    v = jax.random.normal(kv, (BATCH, IMG_C, IMG_H, IMG_W), jnp.float32)   # NCHW images
    t = jax.random.randint(kt, (BATCH, TXT_SEQ), 0, VOCAB, jnp.int32)      # token ids

    v_emb, t_emb = jax.jit(clip_forward)(params, v, t)
    jax.block_until_ready((v_emb, t_emb))

    assert v_emb.shape == (BATCH, SHARED_DIM) and t_emb.shape == (BATCH, SHARED_DIM)
    assert bool(jnp.all(jnp.isfinite(v_emb))) and bool(jnp.all(jnp.isfinite(t_emb)))
    print("KERNEL_OK")
</pallas_src>

<mosaic_0001>
module attributes {stable_mosaic.version = 11 : i64} {
  func.func @_clip_kernel(%arg0: i32, %arg1: memref<16x192xbf16, #tpu.memory_space<vmem>>, %arg2: memref<192x32xbf16, #tpu.memory_space<vmem>>, %arg3: memref<16x32xf32, #tpu.memory_space<vmem>>, %arg4: memref<2x32x192xbf16, #tpu.memory_space<vmem>>, %arg5: memref<2x64x32xbf16, #tpu.memory_space<vmem>>, %arg6: memref<2x8x128xf32, #tpu.memory_space<vmem>>, %arg7: memref<2x32xf32, #tpu.memory_space<vmem>>, %arg8: memref<48x16xbf16, #tpu.memory_space<vmem>>, %arg9: memref<4x16xf32, #tpu.memory_space<vmem>>, %arg10: memref<16x32xf32, #tpu.memory_space<vmem>>, %arg11: memref<2x32xf32, #tpu.memory_space<vmem>>, %arg12: memref<2x32x192xbf16, #tpu.memory_space<vmem>>, %arg13: memref<2x64x32xbf16, #tpu.memory_space<vmem>>, %arg14: memref<2x8x128xf32, #tpu.memory_space<vmem>>, %arg15: memref<48x16xbf16, #tpu.memory_space<vmem>>, %arg16: memref<4x16xf32, #tpu.memory_space<vmem>>, %arg17: memref<1x2x16xf32, #tpu.memory_space<vmem>>) attributes {dimension_semantics = [#tpu.dimension_semantics<parallel>], iteration_bounds = array<i64: 2>, scalar_prefetch = 0 : i64, scratch_operands = 0 : i64, tpu.core_type = #tpu.core_type<tc>, window_params = [{pipeline_mode = #tpu.pipeline_mode<synchronous>, transform_indices = @transform_0, window_bounds = array<i64: 16, 192>}, {pipeline_mode = #tpu.pipeline_mode<synchronous>, transform_indices = @transform_1, window_bounds = array<i64: 192, 32>}, {pipeline_mode = #tpu.pipeline_mode<synchronous>, transform_indices = @transform_2, window_bounds = array<i64: 16, 32>}, {pipeline_mode = #tpu.pipeline_mode<synchronous>, transform_indices = @transform_3, window_bounds = array<i64: 2, 32, 192>}, {pipeline_mode = #tpu.pipeline_mode<synchronous>, transform_indices = @transform_4, window_bounds = array<i64: 2, 64, 32>}, {pipeline_mode = #tpu.pipeline_mode<synchronous>, transform_indices = @transform_5, window_bounds = array<i64: 2, 8, 128>}, {pipeline_mode = #tpu.pipeline_mode<synchronous>, transform_indices = @transform_6, window_bounds = array<i64: 2, 32>}, {pipeline_mode = #tpu.pipeline_mode<synchronous>, transform_indices = @transform_7, window_bounds = array<i64: 48, 16>}, {pipeline_mode = #tpu.pipeline_mode<synchronous>, transform_indices = @transform_8, window_bounds = array<i64: 4, 16>}, {pipeline_mode = #tpu.pipeline_mode<synchronous>, transform_indices = @transform_9, window_bounds = array<i64: 16, 32>}, {pipeline_mode = #tpu.pipeline_mode<synchronous>, transform_indices = @transform_10, window_bounds = array<i64: 2, 32>}, {pipeline_mode = #tpu.pipeline_mode<synchronous>, transform_indices = @transform_11, window_bounds = array<i64: 2, 32, 192>}, {pipeline_mode = #tpu.pipeline_mode<synchronous>, transform_indices = @transform_12, window_bounds = array<i64: 2, 64, 32>}, {pipeline_mode = #tpu.pipeline_mode<synchronous>, transform_indices = @transform_13, window_bounds = array<i64: 2, 8, 128>}, {pipeline_mode = #tpu.pipeline_mode<synchronous>, transform_indices = @transform_14, window_bounds = array<i64: 48, 16>}, {pipeline_mode = #tpu.pipeline_mode<synchronous>, transform_indices = @transform_15, window_bounds = array<i64: 4, 16>}, {transform_indices = @transform_16, window_bounds = array<i64: 1, 2, 16>}]} {
    %c0_i32 = arith.constant 0 : i32
    %0 = arith.cmpi eq, %arg0, %c0_i32 : i32
    %1 = arith.extui %0 : i1 to i32
    %c0_i32_0 = arith.constant 0 : i32
    %2 = arith.cmpi ne, %1, %c0_i32_0 : i32
    scf.if %2 {
      %c0 = arith.constant 0 : index
      %c0_2 = arith.constant 0 : index
      %6 = vector.load %arg1[%c0, %c0_2] : memref<16x192xbf16, #tpu.memory_space<vmem>>, vector<16x192xbf16>
      %c0_3 = arith.constant 0 : index
      %c0_4 = arith.constant 0 : index
      %7 = vector.load %arg2[%c0_3, %c0_4] : memref<192x32xbf16, #tpu.memory_space<vmem>>, vector<192x32xbf16>
      %cst = arith.constant dense<0.000000e+00> : vector<16x32xf32>
      %8 = tpu.matmul %6, %7, %cst {dimension_numbers = #tpu.dot_dimension_numbers<[1], [0], [0], [1], [0, 0, 1, 1], [], []>} : vector<16x192xbf16>, vector<192x32xbf16>, vector<16x32xf32> -> vector<16x32xf32>
      %c0_5 = arith.constant 0 : index
      %c0_6 = arith.constant 0 : index
      %9 = vector.load %arg3[%c0_5, %c0_6] : memref<16x32xf32, #tpu.memory_space<vmem>>, vector<16x32xf32>
      %10 = arith.addf %8, %9 : vector<16x32xf32>
      %11 = tpu.iota {dimensions = array<i32: 2>} : vector<1x1x8xi32>
      %c5_i32 = arith.constant 5 : i32
      %12 = vector.broadcast %c5_i32 : i32 to vector<1x1x8xi32>
      %13 = arith.cmpi slt, %11, %12 : vector<1x1x8xi32>
      %cst_7 = arith.constant 0.000000e+00 : f32
      %cst_8 = arith.constant -1.000000e+30 : f32
      %14 = vector.broadcast %cst_7 : f32 to vector<1x1x8xf32>
      %15 = vector.broadcast %cst_8 : f32 to vector<1x1x8xf32>
      %16 = arith.select %13, %14, %15 : vector<1x1x8xi1>, vector<1x1x8xf32>
      %c0_9 = arith.constant 0 : index
      %c0_10 = arith.constant 0 : index
      %c0_11 = arith.constant 0 : index
      %17 = vector.load %arg4[%c0_9, %c0_10, %c0_11] : memref<2x32x192xbf16, #tpu.memory_space<vmem>>, vector<1x32x96xbf16>
      %18 = vector.shape_cast %17 : vector<1x32x96xbf16> to vector<32x96xbf16>
      %c0_12 = arith.constant 0 : index
      %c0_13 = arith.constant 0 : index
      %c96 = arith.constant 96 : index
      %19 = vector.load %arg4[%c0_12, %c0_13, %c96] : memref<2x32x192xbf16, #tpu.memory_space<vmem>>, vector<1x32x32xbf16>
      %20 = vector.shape_cast %19 : vector<1x32x32xbf16> to vector<32x32xbf16>
      %c0_14 = arith.constant 0 : index
      %c0_15 = arith.constant 0 : index
      %c128 = arith.constant 128 : index
      %21 = vector.load %arg4[%c0_14, %c0_15, %c128] : memref<2x32x192xbf16, #tpu.memory_space<vmem>>, vector<1x32x64xbf16>
      %22 = vector.shape_cast %21 : vector<1x32x64xbf16> to vector<32x64xbf16>
      %c0_16 = arith.constant 0 : index
      %c0_17 = arith.constant 0 : index
      %c0_18 = arith.constant 0 : index
      %23 = vector.load %arg5[%c0_16, %c0_17, %c0_18] : memref<2x64x32xbf16, #tpu.memory_space<vmem>>, vector<1x64x32xbf16>
      %24 = vector.shape_cast %23 : vector<1x64x32xbf16> to vector<64x32xbf16>
      %c0_19 = arith.constant 0 : index
      %c0_20 = arith.constant 0 : index
      %c0_21 = arith.constant 0 : index
      %25 = vector.load %arg6[%c0_19, %c0_20, %c0_21] : memref<2x8x128xf32, #tpu.memory_space<vmem>>, vector<1x1x96xf32>
      %26 = vector.shape_cast %25 : vector<1x1x96xf32> to vector<1x96xf32>
      %c0_22 = arith.constant 0 : index
      %c1 = arith.constant 1 : index
      %c0_23 = arith.constant 0 : index
      %27 = vector.load %arg6[%c0_22, %c1, %c0_23] : memref<2x8x128xf32, #tpu.memory_space<vmem>>, vector<1x1x32xf32>
      %28 = vector.shape_cast %27 : vector<1x1x32xf32> to vector<1x32xf32>
      %c0_24 = arith.constant 0 : index
      %c2 = arith.constant 2 : index
      %c0_25 = arith.constant 0 : index
      %29 = vector.load %arg6[%c0_24, %c2, %c0_25] : memref<2x8x128xf32, #tpu.memory_space<vmem>>, vector<1x1x32xf32>
      %30 = vector.shape_cast %29 : vector<1x1x32xf32> to vector<1x32xf32>
      %c0_26 = arith.constant 0 : index
      %c3 = arith.constant 3 : index
      %c0_27 = arith.constant 0 : index
      %31 = vector.load %arg6[%c0_26, %c3, %c0_27] : memref<2x8x128xf32, #tpu.memory_space<vmem>>, vector<1x1x32xf32>
      %32 = vector.shape_cast %31 : vector<1x1x32xf32> to vector<1x32xf32>
      %c0_28 = arith.constant 0 : index
      %c4 = arith.constant 4 : index
      %c0_29 = arith.constant 0 : index
      %33 = vector.load %arg6[%c0_28, %c4, %c0_29] : memref<2x8x128xf32, #tpu.memory_space<vmem>>, vector<1x1x64xf32>
      %34 = vector.shape_cast %33 : vector<1x1x64xf32> to vector<1x64xf32>
      %c0_30 = arith.constant 0 : index
      %c5 = arith.constant 5 : index
      %c0_31 = arith.constant 0 : index
      %35 = vector.load %arg6[%c0_30, %c5, %c0_31] : memref<2x8x128xf32, #tpu.memory_space<vmem>>, vector<1x1x32xf32>
      %36 = vector.shape_cast %35 : vector<1x1x32xf32> to vector<1x32xf32>
      %c0_32 = arith.constant 0 : index
      %c6 = arith.constant 6 : index
      %c0_33 = arith.constant 0 : index
      %37 = vector.load %arg6[%c0_32, %c6, %c0_33] : memref<2x8x128xf32, #tpu.memory_space<vmem>>, vector<1x1x32xf32>
      %38 = vector.shape_cast %37 : vector<1x1x32xf32> to vector<1x32xf32>
      %c0_34 = arith.constant 0 : index
      %c7 = arith.constant 7 : index
      %c0_35 = arith.constant 0 : index
      %39 = vector.load %arg6[%c0_34, %c7, %c0_35] : memref<2x8x128xf32, #tpu.memory_space<vmem>>, vector<1x1x32xf32>
      %40 = vector.shape_cast %39 : vector<1x1x32xf32> to vector<1x32xf32>
      %cst_36 = arith.constant dense<0.000000e+00> : vector<16xf32>
      %41 = vector.multi_reduction <add>, %10, %cst_36 [1] : vector<16x32xf32> to vector<16xf32>
      %42 = vector.shape_cast %41 : vector<16xf32> to vector<16x1xf32>
      %cst_37 = arith.constant 3.200000e+01 : f32
      %43 = vector.broadcast %cst_37 : f32 to vector<16x1xf32>
      %44 = arith.divf %42, %43 : vector<16x1xf32>
      %45 = vector.broadcast %44 : vector<16x1xf32> to vector<16x32xf32>
      %46 = arith.subf %10, %45 : vector<16x32xf32>
      %47 = arith.mulf %46, %46 : vector<16x32xf32>
      %cst_38 = arith.constant dense<0.000000e+00> : vector<16xf32>
      %48 = vector.multi_reduction <add>, %47, %cst_38 [1] : vector<16x32xf32> to vector<16xf32>
      %49 = vector.shape_cast %48 : vector<16xf32> to vector<16x1xf32>
      %cst_39 = arith.constant 3.200000e+01 : f32
      %50 = vector.broadcast %cst_39 : f32 to vector<16x1xf32>
      %51 = arith.divf %49, %50 : vector<16x1xf32>
      %52 = vector.broadcast %44 : vector<16x1xf32> to vector<16x32xf32>
      %53 = arith.subf %10, %52 : vector<16x32xf32>
      %cst_40 = arith.constant 9.99999974E-6 : f32
      %54 = vector.broadcast %cst_40 : f32 to vector<16x1xf32>
      %55 = arith.addf %51, %54 : vector<16x1xf32>
      %56 = math.rsqrt %55 : vector<16x1xf32>
      %57 = vector.broadcast %56 : vector<16x1xf32> to vector<16x32xf32>
      %58 = arith.mulf %53, %57 : vector<16x32xf32>
      %59 = vector.broadcast %30 : vector<1x32xf32> to vector<16x32xf32>
      %60 = arith.mulf %58, %59 : vector<16x32xf32>
      %61 = vector.broadcast %32 : vector<1x32xf32> to vector<16x32xf32>
      %62 = arith.addf %60, %61 : vector<16x32xf32>
      %63 = arith.truncf %62 : vector<16x32xf32> to vector<16x32xbf16>
      %cst_41 = arith.constant dense<0.000000e+00> : vector<16x96xf32>
      %64 = tpu.matmul %63, %18, %cst_41 {dimension_numbers = #tpu.dot_dimension_numbers<[1], [0], [0], [1], [0, 0, 1, 1], [], []>} : vector<16x32xbf16>, vector<32x96xbf16>, vector<16x96xf32> -> vector<16x96xf32>
      %65 = vector.broadcast %26 : vector<1x96xf32> to vector<16x96xf32>
      %66 = arith.addf %64, %65 : vector<16x96xf32>
      %67 = vector.shape_cast %66 : vector<16x96xf32> to vector<2x8x96xf32>
      %68 = arith.truncf %67 : vector<2x8x96xf32> to vector<2x8x96xbf16>
      %69 = vector.extract_strided_slice %68 {offsets = [0, 0, 0], sizes = [2, 8, 8], strides = [1, 1, 1]} : vector<2x8x96xbf16> to vector<2x8x8xbf16>
      %70 = vector.extract_strided_slice %68 {offsets = [0, 0, 32], sizes = [2, 8, 8], strides = [1, 1, 1]} : vector<2x8x96xbf16> to vector<2x8x8xbf16>
      %71 = vector.extract_strided_slice %68 {offsets = [0, 0, 64], sizes = [2, 8, 8], strides = [1, 1, 1]} : vector<2x8x96xbf16> to vector<2x8x8xbf16>
      "tpu.trace_start"() <{level = 10 : i32, message = "bqc,bkc->bqk"}> : () -> ()
      %cst_42 = arith.constant dense<0.000000e+00> : vector<2x8x8xf32>
      %72 = tpu.matmul %69, %70, %cst_42 {dimension_numbers = #tpu.dot_dimension_numbers<[2], [2], [1], [1], [0, 0, 0, 1, 1, 1], [0], [0]>} : vector<2x8x8xbf16>, vector<2x8x8xbf16>, vector<2x8x8xf32> -> vector<2x8x8xf32>
      "tpu.trace_stop"() : () -> ()
      %cst_43 = arith.constant 0.353553385 : f32
      %73 = vector.broadcast %cst_43 : f32 to vector<2x8x8xf32>
      %74 = arith.mulf %72, %73 : vector<2x8x8xf32>
      %75 = vector.broadcast %16 : vector<1x1x8xf32> to vector<2x8x8xf32>
      %76 = arith.addf %74, %75 : vector<2x8x8xf32>
      %cst_44 = arith.constant dense<0xFF800000> : vector<2x8xf32>
      %77 = vector.multi_reduction <maximumf>, %76, %cst_44 [2] : vector<2x8x8xf32> to vector<2x8xf32>
      %78 = vector.shape_cast %77 : vector<2x8xf32> to vector<2x8x1xf32>
      %79 = vector.broadcast %78 : vector<2x8x1xf32> to vector<2x8x8xf32>
      %80 = arith.subf %76, %79 : vector<2x8x8xf32>
      %81 = math.exp %80 : vector<2x8x8xf32>
      %cst_45 = arith.constant dense<0.000000e+00> : vector<2x8xf32>
      %82 = vector.multi_reduction <add>, %81, %cst_45 [2] : vector<2x8x8xf32> to vector<2x8xf32>
      %83 = vector.shape_cast %82 : vector<2x8xf32> to vector<2x8x1xf32>
      %84 = tpu.reciprocal %83 {approx = true} : vector<2x8x1xf32> -> vector<2x8x1xf32>
      %85 = vector.broadcast %84 : vector<2x8x1xf32> to vector<2x8x8xf32>
      %86 = arith.mulf %81, %85 : vector<2x8x8xf32>
      %87 = arith.truncf %86 : vector<2x8x8xf32> to vector<2x8x8xbf16>
      "tpu.trace_start"() <{level = 10 : i32, message = "bqk,bkc->bqc"}> : () -> ()
      %cst_46 = arith.constant dense<0.000000e+00> : vector<2x8x8xf32>
      %88 = tpu.matmul %87, %71, %cst_46 {dimension_numbers = #tpu.dot_dimension_numbers<[2], [1], [1], [2], [0, 0, 0, 1, 1, 2], [0], [0]>} : vector<2x8x8xbf16>, vector<2x8x8xbf16>, vector<2x8x8xf32> -> vector<2x8x8xf32>
      "tpu.trace_stop"() : () -> ()
      %89 = vector.extract_strided_slice %68 {offsets = [0, 0, 8], sizes = [2, 8, 8], strides = [1, 1, 1]} : vector<2x8x96xbf16> to vector<2x8x8xbf16>
      %90 = vector.extract_strided_slice %68 {offsets = [0, 0, 40], sizes = [2, 8, 8], strides = [1, 1, 1]} : vector<2x8x96xbf16> to vector<2x8x8xbf16>
      %91 = vector.extract_strided_slice %68 {offsets = [0, 0, 72], sizes = [2, 8, 8], strides = [1, 1, 1]} : vector<2x8x96xbf16> to vector<2x8x8xbf16>
      "tpu.trace_start"() <{level = 10 : i32, message = "bqc,bkc->bqk"}> : () -> ()
      %cst_47 = arith.constant dense<0.000000e+00> : vector<2x8x8xf32>
      %92 = tpu.matmul %89, %90, %cst_47 {dimension_numbers = #tpu.dot_dimension_numbers<[2], [2], [1], [1], [0, 0, 0, 1, 1, 1], [0], [0]>} : vector<2x8x8xbf16>, vector<2x8x8xbf16>, vector<2x8x8xf32> -> vector<2x8x8xf32>
      "tpu.trace_stop"() : () -> ()
      %cst_48 = arith.constant 0.353553385 : f32
      %93 = vector.broadcast %cst_48 : f32 to vector<2x8x8xf32>
      %94 = arith.mulf %92, %93 : vector<2x8x8xf32>
      %95 = vector.broadcast %16 : vector<1x1x8xf32> to vector<2x8x8xf32>
      %96 = arith.addf %94, %95 : vector<2x8x8xf32>
      %cst_49 = arith.constant dense<0xFF800000> : vector<2x8xf32>
      %97 = vector.multi_reduction <maximumf>, %96, %cst_49 [2] : vector<2x8x8xf32> to vector<2x8xf32>
      %98 = vector.shape_cast %97 : vector<2x8xf32> to vector<2x8x1xf32>
      %99 = vector.broadcast %98 : vector<2x8x1xf32> to vector<2x8x8xf32>
      %100 = arith.subf %96, %99 : vector<2x8x8xf32>
      %101 = math.exp %100 : vector<2x8x8xf32>
      %cst_50 = arith.constant dense<0.000000e+00> : vector<2x8xf32>
      %102 = vector.multi_reduction <add>, %101, %cst_50 [2] : vector<2x8x8xf32> to vector<2x8xf32>
      %103 = vector.shape_cast %102 : vector<2x8xf32> to vector<2x8x1xf32>
      %104 = tpu.reciprocal %103 {approx = true} : vector<2x8x1xf32> -> vector<2x8x1xf32>
      %105 = vector.broadcast %104 : vector<2x8x1xf32> to vector<2x8x8xf32>
      %106 = arith.mulf %101, %105 : vector<2x8x8xf32>
      %107 = arith.truncf %106 : vector<2x8x8xf32> to vector<2x8x8xbf16>
      "tpu.trace_start"() <{level = 10 : i32, message = "bqk,bkc->bqc"}> : () -> ()
      %cst_51 = arith.constant dense<0.000000e+00> : vector<2x8x8xf32>
      %108 = tpu.matmul %107, %91, %cst_51 {dimension_numbers = #tpu.dot_dimension_numbers<[2], [1], [1], [2], [0, 0, 0, 1, 1, 2], [0], [0]>} : vector<2x8x8xbf16>, vector<2x8x8xbf16>, vector<2x8x8xf32> -> vector<2x8x8xf32>
      "tpu.trace_stop"() : () -> ()
      %109 = vector.extract_strided_slice %68 {offsets = [0, 0, 16], sizes = [2, 8, 8], strides = [1, 1, 1]} : vector<2x8x96xbf16> to vector<2x8x8xbf16>
      %110 = vector.extract_strided_slice %68 {offsets = [0, 0, 48], sizes = [2, 8, 8], strides = [1, 1, 1]} : vector<2x8x96xbf16> to vector<2x8x8xbf16>
      %111 = vector.extract_strided_slice %68 {offsets = [0, 0, 80], sizes = [2, 8, 8], strides = [1, 1, 1]} : vector<2x8x96xbf16> to vector<2x8x8xbf16>
      "tpu.trace_start"() <{level = 10 : i32, message = "bqc,bkc->bqk"}> : () -> ()
      %cst_52 = arith.constant dense<0.000000e+00> : vector<2x8x8xf32>
      %112 = tpu.matmul %109, %110, %cst_52 {dimension_numbers = #tpu.dot_dimension_numbers<[2], [2], [1], [1], [0, 0, 0, 1, 1, 1], [0], [0]>} : vector<2x8x8xbf16>, vector<2x8x8xbf16>, vector<2x8x8xf32> -> vector<2x8x8xf32>
      "tpu.trace_stop"() : () -> ()
      %cst_53 = arith.constant 0.353553385 : f32
      %113 = vector.broadcast %cst_53 : f32 to vector<2x8x8xf32>
      %114 = arith.mulf %112, %113 : vector<2x8x8xf32>
      %115 = vector.broadcast %16 : vector<1x1x8xf32> to vector<2x8x8xf32>
      %116 = arith.addf %114, %115 : vector<2x8x8xf32>
      %cst_54 = arith.constant dense<0xFF800000> : vector<2x8xf32>
      %117 = vector.multi_reduction <maximumf>, %116, %cst_54 [2] : vector<2x8x8xf32> to vector<2x8xf32>
      %118 = vector.shape_cast %117 : vector<2x8xf32> to vector<2x8x1xf32>
      %119 = vector.broadcast %118 : vector<2x8x1xf32> to vector<2x8x8xf32>
      %120 = arith.subf %116, %119 : vector<2x8x8xf32>
      %121 = math.exp %120 : vector<2x8x8xf32>
      %cst_55 = arith.constant dense<0.000000e+00> : vector<2x8xf32>
      %122 = vector.multi_reduction <add>, %121, %cst_55 [2] : vector<2x8x8xf32> to vector<2x8xf32>
      %123 = vector.shape_cast %122 : vector<2x8xf32> to vector<2x8x1xf32>
      %124 = tpu.reciprocal %123 {approx = true} : vector<2x8x1xf32> -> vector<2x8x1xf32>
      %125 = vector.broadcast %124 : vector<2x8x1xf32> to vector<2x8x8xf32>
      %126 = arith.mulf %121, %125 : vector<2x8x8xf32>
      %127 = arith.truncf %126 : vector<2x8x8xf32> to vector<2x8x8xbf16>
      "tpu.trace_start"() <{level = 10 : i32, message = "bqk,bkc->bqc"}> : () -> ()
      %cst_56 = arith.constant dense<0.000000e+00> : vector<2x8x8xf32>
      %128 = tpu.matmul %127, %111, %cst_56 {dimension_numbers = #tpu.dot_dimension_numbers<[2], [1], [1], [2], [0, 0, 0, 1, 1, 2], [0], [0]>} : vector<2x8x8xbf16>, vector<2x8x8xbf16>, vector<2x8x8xf32> -> vector<2x8x8xf32>
      "tpu.trace_stop"() : () -> ()
      %129 = vector.extract_strided_slice %68 {offsets = [0, 0, 24], sizes = [2, 8, 8], strides = [1, 1, 1]} : vector<2x8x96xbf16> to vector<2x8x8xbf16>
      %130 = vector.extract_strided_slice %68 {offsets = [0, 0, 56], sizes = [2, 8, 8], strides = [1, 1, 1]} : vector<2x8x96xbf16> to vector<2x8x8xbf16>
      %131 = vector.extract_strided_slice %68 {offsets = [0, 0, 88], sizes = [2, 8, 8], strides = [1, 1, 1]} : vector<2x8x96xbf16> to vector<2x8x8xbf16>
      "tpu.trace_start"() <{level = 10 : i32, message = "bqc,bkc->bqk"}> : () -> ()
      %cst_57 = arith.constant dense<0.000000e+00> : vector<2x8x8xf32>
      %132 = tpu.matmul %129, %130, %cst_57 {dimension_numbers = #tpu.dot_dimension_numbers<[2], [2], [1], [1], [0, 0, 0, 1, 1, 1], [0], [0]>} : vector<2x8x8xbf16>, vector<2x8x8xbf16>, vector<2x8x8xf32> -> vector<2x8x8xf32>
      "tpu.trace_stop"() : () -> ()
      %cst_58 = arith.constant 0.353553385 : f32
      %133 = vector.broadcast %cst_58 : f32 to vector<2x8x8xf32>
      %134 = arith.mulf %132, %133 : vector<2x8x8xf32>
      %135 = vector.broadcast %16 : vector<1x1x8xf32> to vector<2x8x8xf32>
      %136 = arith.addf %134, %135 : vector<2x8x8xf32>
      %cst_59 = arith.constant dense<0xFF800000> : vector<2x8xf32>
      %137 = vector.multi_reduction <maximumf>, %136, %cst_59 [2] : vector<2x8x8xf32> to vector<2x8xf32>
      %138 = vector.shape_cast %137 : vector<2x8xf32> to vector<2x8x1xf32>
      %139 = vector.broadcast %138 : vector<2x8x1xf32> to vector<2x8x8xf32>
      %140 = arith.subf %136, %139 : vector<2x8x8xf32>
      %141 = math.exp %140 : vector<2x8x8xf32>
      %cst_60 = arith.constant dense<0.000000e+00> : vector<2x8xf32>
      %142 = vector.multi_reduction <add>, %141, %cst_60 [2] : vector<2x8x8xf32> to vector<2x8xf32>
      %143 = vector.shape_cast %142 : vector<2x8xf32> to vector<2x8x1xf32>
      %144 = tpu.reciprocal %143 {approx = true} : vector<2x8x1xf32> -> vector<2x8x1xf32>
      %145 = vector.broadcast %144 : vector<2x8x1xf32> to vector<2x8x8xf32>
      %146 = arith.mulf %141, %145 : vector<2x8x8xf32>
      %147 = arith.truncf %146 : vector<2x8x8xf32> to vector<2x8x8xbf16>
      "tpu.trace_start"() <{level = 10 : i32, message = "bqk,bkc->bqc"}> : () -> ()
      %cst_61 = arith.constant dense<0.000000e+00> : vector<2x8x8xf32>
      %148 = tpu.matmul %147, %131, %cst_61 {dimension_numbers = #tpu.dot_dimension_numbers<[2], [1], [1], [2], [0, 0, 0, 1, 1, 2], [0], [0]>} : vector<2x8x8xbf16>, vector<2x8x8xbf16>, vector<2x8x8xf32> -> vector<2x8x8xf32>
      "tpu.trace_stop"() : () -> ()
      %149 = tpu.concatenate %88, %108, %128, %148 in 2 : vector<2x8x8xf32>, vector<2x8x8xf32>, vector<2x8x8xf32>, vector<2x8x8xf32> -> vector<2x8x32xf32>
      %150 = vector.shape_cast %149 : vector<2x8x32xf32> to vector<16x32xf32>
      %151 = arith.truncf %150 : vector<16x32xf32> to vector<16x32xbf16>
      %cst_62 = arith.constant dense<0.000000e+00> : vector<16x32xf32>
      %152 = tpu.matmul %151, %20, %cst_62 {dimension_numbers = #tpu.dot_dimension_numbers<[1], [0], [0], [1], [0, 0, 1, 1], [], []>} : vector<16x32xbf16>, vector<32x32xbf16>, vector<16x32xf32> -> vector<16x32xf32>
      %153 = vector.broadcast %28 : vector<1x32xf32> to vector<16x32xf32>
      %154 = arith.addf %152, %153 : vector<16x32xf32>
      %155 = arith.addf %10, %154 : vector<16x32xf32>
      %cst_63 = arith.constant dense<0.000000e+00> : vector<16xf32>
      %156 = vector.multi_reduction <add>, %155, %cst_63 [1] : vector<16x32xf32> to vector<16xf32>
      %157 = vector.shape_cast %156 : vector<16xf32> to vector<16x1xf32>
      %cst_64 = arith.constant 3.200000e+01 : f32
      %158 = vector.broadcast %cst_64 : f32 to vector<16x1xf32>
      %159 = arith.divf %157, %158 : vector<16x1xf32>
      %160 = vector.broadcast %159 : vector<16x1xf32> to vector<16x32xf32>
      %161 = arith.subf %155, %160 : vector<16x32xf32>
      %162 = arith.mulf %161, %161 : vector<16x32xf32>
      %cst_65 = arith.constant dense<0.000000e+00> : vector<16xf32>
      %163 = vector.multi_reduction <add>, %162, %cst_65 [1] : vector<16x32xf32> to vector<16xf32>
      %164 = vector.shape_cast %163 : vector<16xf32> to vector<16x1xf32>
      %cst_66 = arith.constant 3.200000e+01 : f32
      %165 = vector.broadcast %cst_66 : f32 to vector<16x1xf32>
      %166 = arith.divf %164, %165 : vector<16x1xf32>
      %167 = vector.broadcast %159 : vector<16x1xf32> to vector<16x32xf32>
      %168 = arith.subf %155, %167 : vector<16x32xf32>
      %cst_67 = arith.constant 9.99999974E-6 : f32
      %169 = vector.broadcast %cst_67 : f32 to vector<16x1xf32>
      %170 = arith.addf %166, %169 : vector<16x1xf32>
      %171 = math.rsqrt %170 : vector<16x1xf32>
      %172 = vector.broadcast %171 : vector<16x1xf32> to vector<16x32xf32>
      %173 = arith.mulf %168, %172 : vector<16x32xf32>
      %174 = vector.broadcast %38 : vector<1x32xf32> to vector<16x32xf32>
      %175 = arith.mulf %173, %174 : vector<16x32xf32>
      %176 = vector.broadcast %40 : vector<1x32xf32> to vector<16x32xf32>
      %177 = arith.addf %175, %176 : vector<16x32xf32>
      %178 = arith.truncf %177 : vector<16x32xf32> to vector<16x32xbf16>
      %cst_68 = arith.constant dense<0.000000e+00> : vector<16x64xf32>
      %179 = tpu.matmul %178, %22, %cst_68 {dimension_numbers = #tpu.dot_dimension_numbers<[1], [0], [0], [1], [0, 0, 1, 1], [], []>} : vector<16x32xbf16>, vector<32x64xbf16>, vector<16x64xf32> -> vector<16x64xf32>
      %180 = vector.broadcast %34 : vector<1x64xf32> to vector<16x64xf32>
      %181 = arith.addf %179, %180 : vector<16x64xf32>
      %182 = arith.mulf %181, %181 : vector<16x64xf32>
      %183 = arith.mulf %181, %182 : vector<16x64xf32>
      %cst_69 = arith.constant 4.471500e-02 : f32
      %184 = vector.broadcast %cst_69 : f32 to vector<16x64xf32>
      %185 = arith.mulf %184, %183 : vector<16x64xf32>
      %186 = arith.addf %181, %185 : vector<16x64xf32>
      %cst_70 = arith.constant 0.797884583 : f32
      %187 = vector.broadcast %cst_70 : f32 to vector<16x64xf32>
      %188 = arith.mulf %187, %186 : vector<16x64xf32>
      %189 = math.tanh %188 : vector<16x64xf32>
      %cst_71 = arith.constant 1.000000e+00 : f32
      %190 = vector.broadcast %cst_71 : f32 to vector<16x64xf32>
      %191 = arith.addf %190, %189 : vector<16x64xf32>
      %cst_72 = arith.constant 5.000000e-01 : f32
      %192 = vector.broadcast %cst_72 : f32 to vector<16x64xf32>
      %193 = arith.mulf %192, %191 : vector<16x64xf32>
      %194 = arith.mulf %181, %193 : vector<16x64xf32>
      %195 = arith.truncf %194 : vector<16x64xf32> to vector<16x64xbf16>
      %cst_73 = arith.constant dense<0.000000e+00> : vector<16x32xf32>
      %196 = tpu.matmul %195, %24, %cst_73 {dimension_numbers = #tpu.dot_dimension_numbers<[1], [0], [0], [1], [0, 0, 1, 1], [], []>} : vector<16x64xbf16>, vector<64x32xbf16>, vector<16x32xf32> -> vector<16x32xf32>
      %197 = vector.broadcast %36 : vector<1x32xf32> to vector<16x32xf32>
      %198 = arith.addf %196, %197 : vector<16x32xf32>
      %199 = arith.addf %155, %198 : vector<16x32xf32>
      %c1_74 = arith.constant 1 : index
      %c0_75 = arith.constant 0 : index
      %c0_76 = arith.constant 0 : index
      %200 = vector.load %arg4[%c1_74, %c0_75, %c0_76] : memref<2x32x192xbf16, #tpu.memory_space<vmem>>, vector<1x32x96xbf16>
      %201 = vector.shape_cast %200 : vector<1x32x96xbf16> to vector<32x96xbf16>
      %c1_77 = arith.constant 1 : index
      %c0_78 = arith.constant 0 : index
      %c96_79 = arith.constant 96 : index
      %202 = vector.load %arg4[%c1_77, %c0_78, %c96_79] : memref<2x32x192xbf16, #tpu.memory_space<vmem>>, vector<1x32x32xbf16>
      %203 = vector.shape_cast %202 : vector<1x32x32xbf16> to vector<32x32xbf16>
      %c1_80 = arith.constant 1 : index
      %c0_81 = arith.constant 0 : index
      %c128_82 = arith.constant 128 : index
      %204 = vector.load %arg4[%c1_80, %c0_81, %c128_82] : memref<2x32x192xbf16, #tpu.memory_space<vmem>>, vector<1x32x64xbf16>
      %205 = vector.shape_cast %204 : vector<1x32x64xbf16> to vector<32x64xbf16>
      %c1_83 = arith.constant 1 : index
      %c0_84 = arith.constant 0 : index
      %c0_85 = arith.constant 0 : index
      %206 = vector.load %arg5[%c1_83, %c0_84, %c0_85] : memref<2x64x32xbf16, #tpu.memory_space<vmem>>, vector<1x64x32xbf16>
      %207 = vector.shape_cast %206 : vector<1x64x32xbf16> to vector<64x32xbf16>
      %c1_86 = arith.constant 1 : index
      %c0_87 = arith.constant 0 : index
      %c0_88 = arith.constant 0 : index
      %208 = vector.load %arg6[%c1_86, %c0_87, %c0_88] : memref<2x8x128xf32, #tpu.memory_space<vmem>>, vector<1x1x96xf32>
      %209 = vector.shape_cast %208 : vector<1x1x96xf32> to vector<1x96xf32>
      %c1_89 = arith.constant 1 : index
      %c1_90 = arith.constant 1 : index
      %c0_91 = arith.constant 0 : index
      %210 = vector.load %arg6[%c1_89, %c1_90, %c0_91] : memref<2x8x128xf32, #tpu.memory_space<vmem>>, vector<1x1x32xf32>
      %211 = vector.shape_cast %210 : vector<1x1x32xf32> to vector<1x32xf32>
      %c1_92 = arith.constant 1 : index
      %c2_93 = arith.constant 2 : index
      %c0_94 = arith.constant 0 : index
      %212 = vector.load %arg6[%c1_92, %c2_93, %c0_94] : memref<2x8x128xf32, #tpu.memory_space<vmem>>, vector<1x1x32xf32>
      %213 = vector.shape_cast %212 : vector<1x1x32xf32> to vector<1x32xf32>
      %c1_95 = arith.constant 1 : index
      %c3_96 = arith.constant 3 : index
      %c0_97 = arith.constant 0 : index
      %214 = vector.load %arg6[%c1_95, %c3_96, %c0_97] : memref<2x8x128xf32, #tpu.memory_space<vmem>>, vector<1x1x32xf32>
      %215 = vector.shape_cast %214 : vector<1x1x32xf32> to vector<1x32xf32>
      %c1_98 = arith.constant 1 : index
      %c4_99 = arith.constant 4 : index
      %c0_100 = arith.constant 0 : index
      %216 = vector.load %arg6[%c1_98, %c4_99, %c0_100] : memref<2x8x128xf32, #tpu.memory_space<vmem>>, vector<1x1x64xf32>
      %217 = vector.shape_cast %216 : vector<1x1x64xf32> to vector<1x64xf32>
      %c1_101 = arith.constant 1 : index
      %c5_102 = arith.constant 5 : index
      %c0_103 = arith.constant 0 : index
      %218 = vector.load %arg6[%c1_101, %c5_102, %c0_103] : memref<2x8x128xf32, #tpu.memory_space<vmem>>, vector<1x1x32xf32>
      %219 = vector.shape_cast %218 : vector<1x1x32xf32> to vector<1x32xf32>
      %c1_104 = arith.constant 1 : index
      %c6_105 = arith.constant 6 : index
      %c0_106 = arith.constant 0 : index
      %220 = vector.load %arg6[%c1_104, %c6_105, %c0_106] : memref<2x8x128xf32, #tpu.memory_space<vmem>>, vector<1x1x32xf32>
      %221 = vector.shape_cast %220 : vector<1x1x32xf32> to vector<1x32xf32>
      %c1_107 = arith.constant 1 : index
      %c7_108 = arith.constant 7 : index
      %c0_109 = arith.constant 0 : index
      %222 = vector.load %arg6[%c1_107, %c7_108, %c0_109] : memref<2x8x128xf32, #tpu.memory_space<vmem>>, vector<1x1x32xf32>
      %223 = vector.shape_cast %222 : vector<1x1x32xf32> to vector<1x32xf32>
      %cst_110 = arith.constant dense<0.000000e+00> : vector<16xf32>
      %224 = vector.multi_reduction <add>, %199, %cst_110 [1] : vector<16x32xf32> to vector<16xf32>
      %225 = vector.shape_cast %224 : vector<16xf32> to vector<16x1xf32>
      %cst_111 = arith.constant 3.200000e+01 : f32
      %226 = vector.broadcast %cst_111 : f32 to vector<16x1xf32>
      %227 = arith.divf %225, %226 : vector<16x1xf32>
      %228 = vector.broadcast %227 : vector<16x1xf32> to vector<16x32xf32>
      %229 = arith.subf %199, %228 : vector<16x32xf32>
      %230 = arith.mulf %229, %229 : vector<16x32xf32>
      %cst_112 = arith.constant dense<0.000000e+00> : vector<16xf32>
      %231 = vector.multi_reduction <add>, %230, %cst_112 [1] : vector<16x32xf32> to vector<16xf32>
      %232 = vector.shape_cast %231 : vector<16xf32> to vector<16x1xf32>
      %cst_113 = arith.constant 3.200000e+01 : f32
      %233 = vector.broadcast %cst_113 : f32 to vector<16x1xf32>
      %234 = arith.divf %232, %233 : vector<16x1xf32>
      %235 = vector.broadcast %227 : vector<16x1xf32> to vector<16x32xf32>
      %236 = arith.subf %199, %235 : vector<16x32xf32>
      %cst_114 = arith.constant 9.99999974E-6 : f32
      %237 = vector.broadcast %cst_114 : f32 to vector<16x1xf32>
      %238 = arith.addf %234, %237 : vector<16x1xf32>
      %239 = math.rsqrt %238 : vector<16x1xf32>
      %240 = vector.broadcast %239 : vector<16x1xf32> to vector<16x32xf32>
      %241 = arith.mulf %236, %240 : vector<16x32xf32>
      %242 = vector.broadcast %213 : vector<1x32xf32> to vector<16x32xf32>
      %243 = arith.mulf %241, %242 : vector<16x32xf32>
      %244 = vector.broadcast %215 : vector<1x32xf32> to vector<16x32xf32>
      %245 = arith.addf %243, %244 : vector<16x32xf32>
      %246 = arith.truncf %245 : vector<16x32xf32> to vector<16x32xbf16>
      %cst_115 = arith.constant dense<0.000000e+00> : vector<16x96xf32>
      %247 = tpu.matmul %246, %201, %cst_115 {dimension_numbers = #tpu.dot_dimension_numbers<[1], [0], [0], [1], [0, 0, 1, 1], [], []>} : vector<16x32xbf16>, vector<32x96xbf16>, vector<16x96xf32> -> vector<16x96xf32>
      %248 = vector.broadcast %209 : vector<1x96xf32> to vector<16x96xf32>
      %249 = arith.addf %247, %248 : vector<16x96xf32>
      %250 = vector.shape_cast %249 : vector<16x96xf32> to vector<2x8x96xf32>
      %251 = arith.truncf %250 : vector<2x8x96xf32> to vector<2x8x96xbf16>
      %252 = vector.extract_strided_slice %251 {offsets = [0, 0, 0], sizes = [2, 8, 8], strides = [1, 1, 1]} : vector<2x8x96xbf16> to vector<2x8x8xbf16>
      %253 = vector.extract_strided_slice %251 {offsets = [0, 0, 32], sizes = [2, 8, 8], strides = [1, 1, 1]} : vector<2x8x96xbf16> to vector<2x8x8xbf16>
      %254 = vector.extract_strided_slice %251 {offsets = [0, 0, 64], sizes = [2, 8, 8], strides = [1, 1, 1]} : vector<2x8x96xbf16> to vector<2x8x8xbf16>
      "tpu.trace_start"() <{level = 10 : i32, message = "bqc,bkc->bqk"}> : () -> ()
      %cst_116 = arith.constant dense<0.000000e+00> : vector<2x8x8xf32>
      %255 = tpu.matmul %252, %253, %cst_116 {dimension_numbers = #tpu.dot_dimension_numbers<[2], [2], [1], [1], [0, 0, 0, 1, 1, 1], [0], [0]>} : vector<2x8x8xbf16>, vector<2x8x8xbf16>, vector<2x8x8xf32> -> vector<2x8x8xf32>
      "tpu.trace_stop"() : () -> ()
      %cst_117 = arith.constant 0.353553385 : f32
      %256 = vector.broadcast %cst_117 : f32 to vector<2x8x8xf32>
      %257 = arith.mulf %255, %256 : vector<2x8x8xf32>
      %258 = vector.broadcast %16 : vector<1x1x8xf32> to vector<2x8x8xf32>
      %259 = arith.addf %257, %258 : vector<2x8x8xf32>
      %cst_118 = arith.constant dense<0xFF800000> : vector<2x8xf32>
      %260 = vector.multi_reduction <maximumf>, %259, %cst_118 [2] : vector<2x8x8xf32> to vector<2x8xf32>
      %261 = vector.shape_cast %260 : vector<2x8xf32> to vector<2x8x1xf32>
      %262 = vector.broadcast %261 : vector<2x8x1xf32> to vector<2x8x8xf32>
      %263 = arith.subf %259, %262 : vector<2x8x8xf32>
      %264 = math.exp %263 : vector<2x8x8xf32>
      %cst_119 = arith.constant dense<0.000000e+00> : vector<2x8xf32>
      %265 = vector.multi_reduction <add>, %264, %cst_119 [2] : vector<2x8x8xf32> to vector<2x8xf32>
      %266 = vector.shape_cast %265 : vector<2x8xf32> to vector<2x8x1xf32>
      %267 = tpu.reciprocal %266 {approx = true} : vector<2x8x1xf32> -> vector<2x8x1xf32>
      %268 = vector.broadcast %267 : vector<2x8x1xf32> to vector<2x8x8xf32>
      %269 = arith.mulf %264, %268 : vector<2x8x8xf32>
      %270 = arith.truncf %269 : vector<2x8x8xf32> to vector<2x8x8xbf16>
      "tpu.trace_start"() <{level = 10 : i32, message = "bqk,bkc->bqc"}> : () -> ()
      %cst_120 = arith.constant dense<0.000000e+00> : vector<2x8x8xf32>
      %271 = tpu.matmul %270, %254, %cst_120 {dimension_numbers = #tpu.dot_dimension_numbers<[2], [1], [1], [2], [0, 0, 0, 1, 1, 2], [0], [0]>} : vector<2x8x8xbf16>, vector<2x8x8xbf16>, vector<2x8x8xf32> -> vector<2x8x8xf32>
      "tpu.trace_stop"() : () -> ()
      %272 = vector.extract_strided_slice %251 {offsets = [0, 0, 8], sizes = [2, 8, 8], strides = [1, 1, 1]} : vector<2x8x96xbf16> to vector<2x8x8xbf16>
      %273 = vector.extract_strided_slice %251 {offsets = [0, 0, 40], sizes = [2, 8, 8], strides = [1, 1, 1]} : vector<2x8x96xbf16> to vector<2x8x8xbf16>
      %274 = vector.extract_strided_slice %251 {offsets = [0, 0, 72], sizes = [2, 8, 8], strides = [1, 1, 1]} : vector<2x8x96xbf16> to vector<2x8x8xbf16>
      "tpu.trace_start"() <{level = 10 : i32, message = "bqc,bkc->bqk"}> : () -> ()
      %cst_121 = arith.constant dense<0.000000e+00> : vector<2x8x8xf32>
      %275 = tpu.matmul %272, %273, %cst_121 {dimension_numbers = #tpu.dot_dimension_numbers<[2], [2], [1], [1], [0, 0, 0, 1, 1, 1], [0], [0]>} : vector<2x8x8xbf16>, vector<2x8x8xbf16>, vector<2x8x8xf32> -> vector<2x8x8xf32>
      "tpu.trace_stop"() : () -> ()
      %cst_122 = arith.constant 0.353553385 : f32
      %276 = vector.broadcast %cst_122 : f32 to vector<2x8x8xf32>
      %277 = arith.mulf %275, %276 : vector<2x8x8xf32>
      %278 = vector.broadcast %16 : vector<1x1x8xf32> to vector<2x8x8xf32>
      %279 = arith.addf %277, %278 : vector<2x8x8xf32>
      %cst_123 = arith.constant dense<0xFF800000> : vector<2x8xf32>
      %280 = vector.multi_reduction <maximumf>, %279, %cst_123 [2] : vector<2x8x8xf32> to vector<2x8xf32>
      %281 = vector.shape_cast %280 : vector<2x8xf32> to vector<2x8x1xf32>
      %282 = vector.broadcast %281 : vector<2x8x1xf32> to vector<2x8x8xf32>
      %283 = arith.subf %279, %282 : vector<2x8x8xf32>
      %284 = math.exp %283 : vector<2x8x8xf32>
      %cst_124 = arith.constant dense<0.000000e+00> : vector<2x8xf32>
      %285 = vector.multi_reduction <add>, %284, %cst_124 [2] : vector<2x8x8xf32> to vector<2x8xf32>
      %286 = vector.shape_cast %285 : vector<2x8xf32> to vector<2x8x1xf32>
      %287 = tpu.reciprocal %286 {approx = true} : vector<2x8x1xf32> -> vector<2x8x1xf32>
      %288 = vector.broadcast %287 : vector<2x8x1xf32> to vector<2x8x8xf32>
      %289 = arith.mulf %284, %288 : vector<2x8x8xf32>
      %290 = arith.truncf %289 : vector<2x8x8xf32> to vector<2x8x8xbf16>
      "tpu.trace_start"() <{level = 10 : i32, message = "bqk,bkc->bqc"}> : () -> ()
      %cst_125 = arith.constant dense<0.000000e+00> : vector<2x8x8xf32>
      %291 = tpu.matmul %290, %274, %cst_125 {dimension_numbers = #tpu.dot_dimension_numbers<[2], [1], [1], [2], [0, 0, 0, 1, 1, 2], [0], [0]>} : vector<2x8x8xbf16>, vector<2x8x8xbf16>, vector<2x8x8xf32> -> vector<2x8x8xf32>
      "tpu.trace_stop"() : () -> ()
      %292 = vector.extract_strided_slice %251 {offsets = [0, 0, 16], sizes = [2, 8, 8], strides = [1, 1, 1]} : vector<2x8x96xbf16> to vector<2x8x8xbf16>
      %293 = vector.extract_strided_slice %251 {offsets = [0, 0, 48], sizes = [2, 8, 8], strides = [1, 1, 1]} : vector<2x8x96xbf16> to vector<2x8x8xbf16>
      %294 = vector.extract_strided_slice %251 {offsets = [0, 0, 80], sizes = [2, 8, 8], strides = [1, 1, 1]} : vector<2x8x96xbf16> to vector<2x8x8xbf16>
      "tpu.trace_start"() <{level = 10 : i32, message = "bqc,bkc->bqk"}> : () -> ()
      %cst_126 = arith.constant dense<0.000000e+00> : vector<2x8x8xf32>
      %295 = tpu.matmul %292, %293, %cst_126 {dimension_numbers = #tpu.dot_dimension_numbers<[2], [2], [1], [1], [0, 0, 0, 1, 1, 1], [0], [0]>} : vector<2x8x8xbf16>, vector<2x8x8xbf16>, vector<2x8x8xf32> -> vector<2x8x8xf32>
      "tpu.trace_stop"() : () -> ()
      %cst_127 = arith.constant 0.353553385 : f32
      %296 = vector.broadcast %cst_127 : f32 to vector<2x8x8xf32>
      %297 = arith.mulf %295, %296 : vector<2x8x8xf32>
      %298 = vector.broadcast %16 : vector<1x1x8xf32> to vector<2x8x8xf32>
      %299 = arith.addf %297, %298 : vector<2x8x8xf32>
      %cst_128 = arith.constant dense<0xFF800000> : vector<2x8xf32>
      %300 = vector.multi_reduction <maximumf>, %299, %cst_128 [2] : vector<2x8x8xf32> to vector<2x8xf32>
      %301 = vector.shape_cast %300 : vector<2x8xf32> to vector<2x8x1xf32>
      %302 = vector.broadcast %301 : vector<2x8x1xf32> to vector<2x8x8xf32>
      %303 = arith.subf %299, %302 : vector<2x8x8xf32>
      %304 = math.exp %303 : vector<2x8x8xf32>
      %cst_129 = arith.constant dense<0.000000e+00> : vector<2x8xf32>
      %305 = vector.multi_reduction <add>, %304, %cst_129 [2] : vector<2x8x8xf32> to vector<2x8xf32>
      %306 = vector.shape_cast %305 : vector<2x8xf32> to vector<2x8x1xf32>
      %307 = tpu.reciprocal %306 {approx = true} : vector<2x8x1xf32> -> vector<2x8x1xf32>
      %308 = vector.broadcast %307 : vector<2x8x1xf32> to vector<2x8x8xf32>
      %309 = arith.mulf %304, %308 : vector<2x8x8xf32>
      %310 = arith.truncf %309 : vector<2x8x8xf32> to vector<2x8x8xbf16>
      "tpu.trace_start"() <{level = 10 : i32, message = "bqk,bkc->bqc"}> : () -> ()
      %cst_130 = arith.constant dense<0.000000e+00> : vector<2x8x8xf32>
      %311 = tpu.matmul %310, %294, %cst_130 {dimension_numbers = #tpu.dot_dimension_numbers<[2], [1], [1], [2], [0, 0, 0, 1, 1, 2], [0], [0]>} : vector<2x8x8xbf16>, vector<2x8x8xbf16>, vector<2x8x8xf32> -> vector<2x8x8xf32>
      "tpu.trace_stop"() : () -> ()
      %312 = vector.extract_strided_slice %251 {offsets = [0, 0, 24], sizes = [2, 8, 8], strides = [1, 1, 1]} : vector<2x8x96xbf16> to vector<2x8x8xbf16>
      %313 = vector.extract_strided_slice %251 {offsets = [0, 0, 56], sizes = [2, 8, 8], strides = [1, 1, 1]} : vector<2x8x96xbf16> to vector<2x8x8xbf16>
      %314 = vector.extract_strided_slice %251 {offsets = [0, 0, 88], sizes = [2, 8, 8], strides = [1, 1, 1]} : vector<2x8x96xbf16> to vector<2x8x8xbf16>
      "tpu.trace_start"() <{level = 10 : i32, message = "bqc,bkc->bqk"}> : () -> ()
      %cst_131 = arith.constant dense<0.000000e+00> : vector<2x8x8xf32>
      %315 = tpu.matmul %312, %313, %cst_131 {dimension_numbers = #tpu.dot_dimension_numbers<[2], [2], [1], [1], [0, 0, 0, 1, 1, 1], [0], [0]>} : vector<2x8x8xbf16>, vector<2x8x8xbf16>, vector<2x8x8xf32> -> vector<2x8x8xf32>
      "tpu.trace_stop"() : () -> ()
      %cst_132 = arith.constant 0.353553385 : f32
      %316 = vector.broadcast %cst_132 : f32 to vector<2x8x8xf32>
      %317 = arith.mulf %315, %316 : vector<2x8x8xf32>
      %318 = vector.broadcast %16 : vector<1x1x8xf32> to vector<2x8x8xf32>
      %319 = arith.addf %317, %318 : vector<2x8x8xf32>
      %cst_133 = arith.constant dense<0xFF800000> : vector<2x8xf32>
      %320 = vector.multi_reduction <maximumf>, %319, %cst_133 [2] : vector<2x8x8xf32> to vector<2x8xf32>
      %321 = vector.shape_cast %320 : vector<2x8xf32> to vector<2x8x1xf32>
      %322 = vector.broadcast %321 : vector<2x8x1xf32> to vector<2x8x8xf32>
      %323 = arith.subf %319, %322 : vector<2x8x8xf32>
      %324 = math.exp %323 : vector<2x8x8xf32>
      %cst_134 = arith.constant dense<0.000000e+00> : vector<2x8xf32>
      %325 = vector.multi_reduction <add>, %324, %cst_134 [2] : vector<2x8x8xf32> to vector<2x8xf32>
      %326 = vector.shape_cast %325 : vector<2x8xf32> to vector<2x8x1xf32>
      %327 = tpu.reciprocal %326 {approx = true} : vector<2x8x1xf32> -> vector<2x8x1xf32>
      %328 = vector.broadcast %327 : vector<2x8x1xf32> to vector<2x8x8xf32>
      %329 = arith.mulf %324, %328 : vector<2x8x8xf32>
      %330 = arith.truncf %329 : vector<2x8x8xf32> to vector<2x8x8xbf16>
      "tpu.trace_start"() <{level = 10 : i32, message = "bqk,bkc->bqc"}> : () -> ()
      %cst_135 = arith.constant dense<0.000000e+00> : vector<2x8x8xf32>
      %331 = tpu.matmul %330, %314, %cst_135 {dimension_numbers = #tpu.dot_dimension_numbers<[2], [1], [1], [2], [0, 0, 0, 1, 1, 2], [0], [0]>} : vector<2x8x8xbf16>, vector<2x8x8xbf16>, vector<2x8x8xf32> -> vector<2x8x8xf32>
      "tpu.trace_stop"() : () -> ()
      %332 = tpu.concatenate %271, %291, %311, %331 in 2 : vector<2x8x8xf32>, vector<2x8x8xf32>, vector<2x8x8xf32>, vector<2x8x8xf32> -> vector<2x8x32xf32>
      %333 = vector.shape_cast %332 : vector<2x8x32xf32> to vector<16x32xf32>
      %334 = arith.truncf %333 : vector<16x32xf32> to vector<16x32xbf16>
      %cst_136 = arith.constant dense<0.000000e+00> : vector<16x32xf32>
      %335 = tpu.matmul %334, %203, %cst_136 {dimension_numbers = #tpu.dot_dimension_numbers<[1], [0], [0], [1], [0, 0, 1, 1], [], []>} : vector<16x32xbf16>, vector<32x32xbf16>, vector<16x32xf32> -> vector<16x32xf32>
      %336 = vector.broadcast %211 : vector<1x32xf32> to vector<16x32xf32>
      %337 = arith.addf %335, %336 : vector<16x32xf32>
      %338 = arith.addf %199, %337 : vector<16x32xf32>
      %cst_137 = arith.constant dense<0.000000e+00> : vector<16xf32>
      %339 = vector.multi_reduction <add>, %338, %cst_137 [1] : vector<16x32xf32> to vector<16xf32>
      %340 = vector.shape_cast %339 : vector<16xf32> to vector<16x1xf32>
      %cst_138 = arith.constant 3.200000e+01 : f32
      %341 = vector.broadcast %cst_138 : f32 to vector<16x1xf32>
      %342 = arith.divf %340, %341 : vector<16x1xf32>
      %343 = vector.broadcast %342 : vector<16x1xf32> to vector<16x32xf32>
      %344 = arith.subf %338, %343 : vector<16x32xf32>
      %345 = arith.mulf %344, %344 : vector<16x32xf32>
      %cst_139 = arith.constant dense<0.000000e+00> : vector<16xf32>
      %346 = vector.multi_reduction <add>, %345, %cst_139 [1] : vector<16x32xf32> to vector<16xf32>
      %347 = vector.shape_cast %346 : vector<16xf32> to vector<16x1xf32>
      %cst_140 = arith.constant 3.200000e+01 : f32
      %348 = vector.broadcast %cst_140 : f32 to vector<16x1xf32>
      %349 = arith.divf %347, %348 : vector<16x1xf32>
      %350 = vector.broadcast %342 : vector<16x1xf32> to vector<16x32xf32>
      %351 = arith.subf %338, %350 : vector<16x32xf32>
      %cst_141 = arith.constant 9.99999974E-6 : f32
      %352 = vector.broadcast %cst_141 : f32 to vector<16x1xf32>
      %353 = arith.addf %349, %352 : vector<16x1xf32>
      %354 = math.rsqrt %353 : vector<16x1xf32>
      %355 = vector.broadcast %354 : vector<16x1xf32> to vector<16x32xf32>
      %356 = arith.mulf %351, %355 : vector<16x32xf32>
      %357 = vector.broadcast %221 : vector<1x32xf32> to vector<16x32xf32>
      %358 = arith.mulf %356, %357 : vector<16x32xf32>
      %359 = vector.broadcast %223 : vector<1x32xf32> to vector<16x32xf32>
      %360 = arith.addf %358, %359 : vector<16x32xf32>
      %361 = arith.truncf %360 : vector<16x32xf32> to vector<16x32xbf16>
      %cst_142 = arith.constant dense<0.000000e+00> : vector<16x64xf32>
      %362 = tpu.matmul %361, %205, %cst_142 {dimension_numbers = #tpu.dot_dimension_numbers<[1], [0], [0], [1], [0, 0, 1, 1], [], []>} : vector<16x32xbf16>, vector<32x64xbf16>, vector<16x64xf32> -> vector<16x64xf32>
      %363 = vector.broadcast %217 : vector<1x64xf32> to vector<16x64xf32>
      %364 = arith.addf %362, %363 : vector<16x64xf32>
      %365 = arith.mulf %364, %364 : vector<16x64xf32>
      %366 = arith.mulf %364, %365 : vector<16x64xf32>
      %cst_143 = arith.constant 4.471500e-02 : f32
      %367 = vector.broadcast %cst_143 : f32 to vector<16x64xf32>
      %368 = arith.mulf %367, %366 : vector<16x64xf32>
      %369 = arith.addf %364, %368 : vector<16x64xf32>
      %cst_144 = arith.constant 0.797884583 : f32
      %370 = vector.broadcast %cst_144 : f32 to vector<16x64xf32>
      %371 = arith.mulf %370, %369 : vector<16x64xf32>
      %372 = math.tanh %371 : vector<16x64xf32>
      %cst_145 = arith.constant 1.000000e+00 : f32
      %373 = vector.broadcast %cst_145 : f32 to vector<16x64xf32>
      %374 = arith.addf %373, %372 : vector<16x64xf32>
      %cst_146 = arith.constant 5.000000e-01 : f32
      %375 = vector.broadcast %cst_146 : f32 to vector<16x64xf32>
      %376 = arith.mulf %375, %374 : vector<16x64xf32>
      %377 = arith.mulf %364, %376 : vector<16x64xf32>
      %378 = arith.truncf %377 : vector<16x64xf32> to vector<16x64xbf16>
      %cst_147 = arith.constant dense<0.000000e+00> : vector<16x32xf32>
      %379 = tpu.matmul %378, %207, %cst_147 {dimension_numbers = #tpu.dot_dimension_numbers<[1], [0], [0], [1], [0, 0, 1, 1], [], []>} : vector<16x64xbf16>, vector<64x32xbf16>, vector<16x32xf32> -> vector<16x32xf32>
      %380 = vector.broadcast %219 : vector<1x32xf32> to vector<16x32xf32>
      %381 = arith.addf %379, %380 : vector<16x32xf32>
      %382 = arith.addf %338, %381 : vector<16x32xf32>
      %383 = vector.shape_cast %382 : vector<16x32xf32> to vector<2x8x32xf32>
      %384 = vector.extract_strided_slice %383 {offsets = [0, 0, 0], sizes = [2, 1, 32], strides = [1, 1, 1]} : vector<2x8x32xf32> to vector<2x1x32xf32>
      %385 = vector.shape_cast %384 : vector<2x1x32xf32> to vector<2x32xf32>
      %c0_148 = arith.constant 0 : index
      %c0_149 = arith.constant 0 : index
      %386 = vector.load %arg7[%c0_148, %c0_149] : memref<2x32xf32, #tpu.memory_space<vmem>>, vector<1x32xf32>
      %c1_150 = arith.constant 1 : index
      %c0_151 = arith.constant 0 : index
      %387 = vector.load %arg7[%c1_150, %c0_151] : memref<2x32xf32, #tpu.memory_space<vmem>>, vector<1x32xf32>
      %cst_152 = arith.constant dense<0.000000e+00> : vector<2xf32>
      %388 = vector.multi_reduction <add>, %385, %cst_152 [1] : vector<2x32xf32> to vector<2xf32>
      %389 = vector.shape_cast %388 : vector<2xf32> to vector<2x1xf32>
      %cst_153 = arith.constant 3.200000e+01 : f32
      %390 = vector.broadcast %cst_153 : f32 to vector<2x1xf32>
      %391 = arith.divf %389, %390 : vector<2x1xf32>
      %392 = vector.broadcast %391 : vector<2x1xf32> to vector<2x32xf32>
      %393 = arith.subf %385, %392 : vector<2x32xf32>
      %394 = arith.mulf %393, %393 : vector<2x32xf32>
      %cst_154 = arith.constant dense<0.000000e+00> : vector<2xf32>
      %395 = vector.multi_reduction <add>, %394, %cst_154 [1] : vector<2x32xf32> to vector<2xf32>
      %396 = vector.shape_cast %395 : vector<2xf32> to vector<2x1xf32>
      %cst_155 = arith.constant 3.200000e+01 : f32
      %397 = vector.broadcast %cst_155 : f32 to vector<2x1xf32>
      %398 = arith.divf %396, %397 : vector<2x1xf32>
      %399 = vector.broadcast %391 : vector<2x1xf32> to vector<2x32xf32>
      %400 = arith.subf %385, %399 : vector<2x32xf32>
      %cst_156 = arith.constant 9.99999974E-6 : f32
      %401 = vector.broadcast %cst_156 : f32 to vector<2x1xf32>
      %402 = arith.addf %398, %401 : vector<2x1xf32>
      %403 = math.rsqrt %402 : vector<2x1xf32>
      %404 = vector.broadcast %403 : vector<2x1xf32> to vector<2x32xf32>
      %405 = arith.mulf %400, %404 : vector<2x32xf32>
      %406 = vector.broadcast %386 : vector<1x32xf32> to vector<2x32xf32>
      %407 = arith.mulf %405, %406 : vector<2x32xf32>
      %408 = vector.broadcast %387 : vector<1x32xf32> to vector<2x32xf32>
      %409 = arith.addf %407, %408 : vector<2x32xf32>
      %c0_157 = arith.constant 0 : index
      %c0_158 = arith.constant 0 : index
      %410 = vector.load %arg8[%c0_157, %c0_158] : memref<48x16xbf16, #tpu.memory_space<vmem>>, vector<32x16xbf16>
      %c32 = arith.constant 32 : index
      %c0_159 = arith.constant 0 : index
      %411 = vector.load %arg8[%c32, %c0_159] : memref<48x16xbf16, #tpu.memory_space<vmem>>, vector<16x16xbf16>
      %c0_160 = arith.constant 0 : index
      %c0_161 = arith.constant 0 : index
      %412 = vector.load %arg9[%c0_160, %c0_161] : memref<4x16xf32, #tpu.memory_space<vmem>>, vector<1x16xf32>
      %c1_162 = arith.constant 1 : index
      %c0_163 = arith.constant 0 : index
      %413 = vector.load %arg9[%c1_162, %c0_163] : memref<4x16xf32, #tpu.memory_space<vmem>>, vector<1x16xf32>
      %c2_164 = arith.constant 2 : index
      %c0_165 = arith.constant 0 : index
      %414 = vector.load %arg9[%c2_164, %c0_165] : memref<4x16xf32, #tpu.memory_space<vmem>>, vector<1x16xf32>
      %c3_166 = arith.constant 3 : index
      %c0_167 = arith.constant 0 : index
      %415 = vector.load %arg9[%c3_166, %c0_167] : memref<4x16xf32, #tpu.memory_space<vmem>>, vector<1x16xf32>
      %416 = arith.truncf %409 : vector<2x32xf32> to vector<2x32xbf16>
      %cst_168 = arith.constant dense<0.000000e+00> : vector<2x16xf32>
      %417 = tpu.matmul %416, %410, %cst_168 {dimension_numbers = #tpu.dot_dimension_numbers<[1], [0], [0], [1], [0, 0, 1, 1], [], []>} : vector<2x32xbf16>, vector<32x16xbf16>, vector<2x16xf32> -> vector<2x16xf32>
      %418 = vector.broadcast %412 : vector<1x16xf32> to vector<2x16xf32>
      %419 = arith.addf %417, %418 : vector<2x16xf32>
      %420 = arith.mulf %419, %419 : vector<2x16xf32>
      %421 = arith.mulf %419, %420 : vector<2x16xf32>
      %cst_169 = arith.constant 4.471500e-02 : f32
      %422 = vector.broadcast %cst_169 : f32 to vector<2x16xf32>
      %423 = arith.mulf %422, %421 : vector<2x16xf32>
      %424 = arith.addf %419, %423 : vector<2x16xf32>
      %cst_170 = arith.constant 0.797884583 : f32
      %425 = vector.broadcast %cst_170 : f32 to vector<2x16xf32>
      %426 = arith.mulf %425, %424 : vector<2x16xf32>
      %427 = math.tanh %426 : vector<2x16xf32>
      %cst_171 = arith.constant 1.000000e+00 : f32
      %428 = vector.broadcast %cst_171 : f32 to vector<2x16xf32>
      %429 = arith.addf %428, %427 : vector<2x16xf32>
      %cst_172 = arith.constant 5.000000e-01 : f32
      %430 = vector.broadcast %cst_172 : f32 to vector<2x16xf32>
      %431 = arith.mulf %430, %429 : vector<2x16xf32>
      %432 = arith.mulf %419, %431 : vector<2x16xf32>
      %433 = arith.truncf %432 : vector<2x16xf32> to vector<2x16xbf16>
      %cst_173 = arith.constant dense<0.000000e+00> : vector<2x16xf32>
      %434 = tpu.matmul %433, %411, %cst_173 {dimension_numbers = #tpu.dot_dimension_numbers<[1], [0], [0], [1], [0, 0, 1, 1], [], []>} : vector<2x16xbf16>, vector<16x16xbf16>, vector<2x16xf32> -> vector<2x16xf32>
      %435 = vector.broadcast %413 : vector<1x16xf32> to vector<2x16xf32>
      %436 = arith.addf %434, %435 : vector<2x16xf32>
      %437 = arith.addf %436, %419 : vector<2x16xf32>
      %cst_174 = arith.constant dense<0.000000e+00> : vector<2xf32>
      %438 = vector.multi_reduction <add>, %437, %cst_174 [1] : vector<2x16xf32> to vector<2xf32>
      %439 = vector.shape_cast %438 : vector<2xf32> to vector<2x1xf32>
      %cst_175 = arith.constant 1.600000e+01 : f32
      %440 = vector.broadcast %cst_175 : f32 to vector<2x1xf32>
      %441 = arith.divf %439, %440 : vector<2x1xf32>
      %442 = vector.broadcast %441 : vector<2x1xf32> to vector<2x16xf32>
      %443 = arith.subf %437, %442 : vector<2x16xf32>
      %444 = arith.mulf %443, %443 : vector<2x16xf32>
      %cst_176 = arith.constant dense<0.000000e+00> : vector<2xf32>
      %445 = vector.multi_reduction <add>, %444, %cst_176 [1] : vector<2x16xf32> to vector<2xf32>
      %446 = vector.shape_cast %445 : vector<2xf32> to vector<2x1xf32>
      %cst_177 = arith.constant 1.600000e+01 : f32
      %447 = vector.broadcast %cst_177 : f32 to vector<2x1xf32>
      %448 = arith.divf %446, %447 : vector<2x1xf32>
      %449 = vector.broadcast %441 : vector<2x1xf32> to vector<2x16xf32>
      %450 = arith.subf %437, %449 : vector<2x16xf32>
      %cst_178 = arith.constant 9.99999974E-6 : f32
      %451 = vector.broadcast %cst_178 : f32 to vector<2x1xf32>
      %452 = arith.addf %448, %451 : vector<2x1xf32>
      %453 = math.rsqrt %452 : vector<2x1xf32>
      %454 = vector.broadcast %453 : vector<2x1xf32> to vector<2x16xf32>
      %455 = arith.mulf %450, %454 : vector<2x16xf32>
      %456 = vector.broadcast %414 : vector<1x16xf32> to vector<2x16xf32>
      %457 = arith.mulf %455, %456 : vector<2x16xf32>
      %458 = vector.broadcast %415 : vector<1x16xf32> to vector<2x16xf32>
      %459 = arith.addf %457, %458 : vector<2x16xf32>
      %c0_179 = arith.constant 0 : index
      %c0_180 = arith.constant 0 : index
      %c0_181 = arith.constant 0 : index
      %460 = vector.load %arg17[%c0_179, %c0_180, %c0_181] : memref<1x2x16xf32, #tpu.memory_space<vmem>>, vector<1x2x16xf32>
      %461 = vector.shape_cast %460 : vector<1x2x16xf32> to vector<2x16xf32>
      %462 = vector.shape_cast %459 : vector<2x16xf32> to vector<1x2x16xf32>
      tpu.vector_store %arg17[%c0_179, %c0_180, %c0_181], %462 {strides = array<i32>} : memref<1x2x16xf32, #tpu.memory_space<vmem>>, vector<1x2x16xf32>,
    } else {
    }
    %c1_i32 = arith.constant 1 : i32
    %3 = arith.cmpi eq, %arg0, %c1_i32 : i32
    %4 = arith.extui %3 : i1 to i32
    %c0_i32_1 = arith.constant 0 : i32
    %5 = arith.cmpi ne, %4, %c0_i32_1 : i32
    scf.if %5 {
      %c0 = arith.constant 0 : index
      %c0_2 = arith.constant 0 : index
      %6 = vector.load %arg10[%c0, %c0_2] : memref<16x32xf32, #tpu.memory_space<vmem>>, vector<16x32xf32>
      %c0_3 = arith.constant 0 : index
      %c0_4 = arith.constant 0 : index
      %7 = vector.load %arg11[%c0_3, %c0_4] : memref<2x32xf32, #tpu.memory_space<vmem>>, vector<1x32xf32>
      %c1 = arith.constant 1 : index
      %c0_5 = arith.constant 0 : index
      %8 = vector.load %arg11[%c1, %c0_5] : memref<2x32xf32, #tpu.memory_space<vmem>>, vector<1x32xf32>
      %cst = arith.constant dense<0.000000e+00> : vector<16xf32>
      %9 = vector.multi_reduction <add>, %6, %cst [1] : vector<16x32xf32> to vector<16xf32>
      %10 = vector.shape_cast %9 : vector<16xf32> to vector<16x1xf32>
      %cst_6 = arith.constant 3.200000e+01 : f32
      %11 = vector.broadcast %cst_6 : f32 to vector<16x1xf32>
      %12 = arith.divf %10, %11 : vector<16x1xf32>
      %13 = vector.broadcast %12 : vector<16x1xf32> to vector<16x32xf32>
      %14 = arith.subf %6, %13 : vector<16x32xf32>
      %15 = arith.mulf %14, %14 : vector<16x32xf32>
      %cst_7 = arith.constant dense<0.000000e+00> : vector<16xf32>
      %16 = vector.multi_reduction <add>, %15, %cst_7 [1] : vector<16x32xf32> to vector<16xf32>
      %17 = vector.shape_cast %16 : vector<16xf32> to vector<16x1xf32>
      %cst_8 = arith.constant 3.200000e+01 : f32
      %18 = vector.broadcast %cst_8 : f32 to vector<16x1xf32>
      %19 = arith.divf %17, %18 : vector<16x1xf32>
      %20 = vector.broadcast %12 : vector<16x1xf32> to vector<16x32xf32>
      %21 = arith.subf %6, %20 : vector<16x32xf32>
      %cst_9 = arith.constant 9.99999974E-6 : f32
      %22 = vector.broadcast %cst_9 : f32 to vector<16x1xf32>
      %23 = arith.addf %19, %22 : vector<16x1xf32>
      %24 = math.rsqrt %23 : vector<16x1xf32>
      %25 = vector.broadcast %24 : vector<16x1xf32> to vector<16x32xf32>
      %26 = arith.mulf %21, %25 : vector<16x32xf32>
      %27 = vector.broadcast %7 : vector<1x32xf32> to vector<16x32xf32>
      %28 = arith.mulf %26, %27 : vector<16x32xf32>
      %29 = vector.broadcast %8 : vector<1x32xf32> to vector<16x32xf32>
      %30 = arith.addf %28, %29 : vector<16x32xf32>
      %c0_10 = arith.constant 0 : index
      %c0_11 = arith.constant 0 : index
      %c0_12 = arith.constant 0 : index
      %31 = vector.load %arg12[%c0_10, %c0_11, %c0_12] : memref<2x32x192xbf16, #tpu.memory_space<vmem>>, vector<1x32x96xbf16>
      %32 = vector.shape_cast %31 : vector<1x32x96xbf16> to vector<32x96xbf16>
      %c0_13 = arith.constant 0 : index
      %c0_14 = arith.constant 0 : index
      %c96 = arith.constant 96 : index
      %33 = vector.load %arg12[%c0_13, %c0_14, %c96] : memref<2x32x192xbf16, #tpu.memory_space<vmem>>, vector<1x32x32xbf16>
      %34 = vector.shape_cast %33 : vector<1x32x32xbf16> to vector<32x32xbf16>
      %c0_15 = arith.constant 0 : index
      %c0_16 = arith.constant 0 : index
      %c128 = arith.constant 128 : index
      %35 = vector.load %arg12[%c0_15, %c0_16, %c128] : memref<2x32x192xbf16, #tpu.memory_space<vmem>>, vector<1x32x64xbf16>
      %36 = vector.shape_cast %35 : vector<1x32x64xbf16> to vector<32x64xbf16>
      %c0_17 = arith.constant 0 : index
      %c0_18 = arith.constant 0 : index
      %c0_19 = arith.constant 0 : index
      %37 = vector.load %arg13[%c0_17, %c0_18, %c0_19] : memref<2x64x32xbf16, #tpu.memory_space<vmem>>, vector<1x64x32xbf16>
      %38 = vector.shape_cast %37 : vector<1x64x32xbf16> to vector<64x32xbf16>
      %c0_20 = arith.constant 0 : index
      %c0_21 = arith.constant 0 : index
      %c0_22 = arith.constant 0 : index
      %39 = vector.load %arg14[%c0_20, %c0_21, %c0_22] : memref<2x8x128xf32, #tpu.memory_space<vmem>>, vector<1x1x96xf32>
      %40 = vector.shape_cast %39 : vector<1x1x96xf32> to vector<1x96xf32>
      %c0_23 = arith.constant 0 : index
      %c1_24 = arith.constant 1 : index
      %c0_25 = arith.constant 0 : index
      %41 = vector.load %arg14[%c0_23, %c1_24, %c0_25] : memref<2x8x128xf32, #tpu.memory_space<vmem>>, vector<1x1x32xf32>
      %42 = vector.shape_cast %41 : vector<1x1x32xf32> to vector<1x32xf32>
      %c0_26 = arith.constant 0 : index
      %c2 = arith.constant 2 : index
      %c0_27 = arith.constant 0 : index
      %43 = vector.load %arg14[%c0_26, %c2, %c0_27] : memref<2x8x128xf32, #tpu.memory_space<vmem>>, vector<1x1x32xf32>
      %44 = vector.shape_cast %43 : vector<1x1x32xf32> to vector<1x32xf32>
      %c0_28 = arith.constant 0 : index
      %c3 = arith.constant 3 : index
      %c0_29 = arith.constant 0 : index
      %45 = vector.load %arg14[%c0_28, %c3, %c0_29] : memref<2x8x128xf32, #tpu.memory_space<vmem>>, vector<1x1x32xf32>
      %46 = vector.shape_cast %45 : vector<1x1x32xf32> to vector<1x32xf32>
      %c0_30 = arith.constant 0 : index
      %c4 = arith.constant 4 : index
      %c0_31 = arith.constant 0 : index
      %47 = vector.load %arg14[%c0_30, %c4, %c0_31] : memref<2x8x128xf32, #tpu.memory_space<vmem>>, vector<1x1x64xf32>
      %48 = vector.shape_cast %47 : vector<1x1x64xf32> to vector<1x64xf32>
      %c0_32 = arith.constant 0 : index
      %c5 = arith.constant 5 : index
      %c0_33 = arith.constant 0 : index
      %49 = vector.load %arg14[%c0_32, %c5, %c0_33] : memref<2x8x128xf32, #tpu.memory_space<vmem>>, vector<1x1x32xf32>
      %50 = vector.shape_cast %49 : vector<1x1x32xf32> to vector<1x32xf32>
      %c0_34 = arith.constant 0 : index
      %c6 = arith.constant 6 : index
      %c0_35 = arith.constant 0 : index
      %51 = vector.load %arg14[%c0_34, %c6, %c0_35] : memref<2x8x128xf32, #tpu.memory_space<vmem>>, vector<1x1x32xf32>
      %52 = vector.shape_cast %51 : vector<1x1x32xf32> to vector<1x32xf32>
      %c0_36 = arith.constant 0 : index
      %c7 = arith.constant 7 : index
      %c0_37 = arith.constant 0 : index
      %53 = vector.load %arg14[%c0_36, %c7, %c0_37] : memref<2x8x128xf32, #tpu.memory_space<vmem>>, vector<1x1x32xf32>
      %54 = vector.shape_cast %53 : vector<1x1x32xf32> to vector<1x32xf32>
      %55 = arith.truncf %30 : vector<16x32xf32> to vector<16x32xbf16>
      %cst_38 = arith.constant dense<0.000000e+00> : vector<16x96xf32>
      %56 = tpu.matmul %55, %32, %cst_38 {dimension_numbers = #tpu.dot_dimension_numbers<[1], [0], [0], [1], [0, 0, 1, 1], [], []>} : vector<16x32xbf16>, vector<32x96xbf16>, vector<16x96xf32> -> vector<16x96xf32>
      %57 = vector.broadcast %40 : vector<1x96xf32> to vector<16x96xf32>
      %58 = arith.addf %56, %57 : vector<16x96xf32>
      %59 = vector.shape_cast %58 : vector<16x96xf32> to vector<2x8x96xf32>
      %60 = arith.truncf %59 : vector<2x8x96xf32> to vector<2x8x96xbf16>
      %61 = vector.extract_strided_slice %60 {offsets = [0, 0, 0], sizes = [2, 8, 8], strides = [1, 1, 1]} : vector<2x8x96xbf16> to vector<2x8x8xbf16>
      %62 = vector.extract_strided_slice %60 {offsets = [0, 0, 32], sizes = [2, 8, 8], strides = [1, 1, 1]} : vector<2x8x96xbf16> to vector<2x8x8xbf16>
      %63 = vector.extract_strided_slice %60 {offsets = [0, 0, 64], sizes = [2, 8, 8], strides = [1, 1, 1]} : vector<2x8x96xbf16> to vector<2x8x8xbf16>
      "tpu.trace_start"() <{level = 10 : i32, message = "bqc,bkc->bqk"}> : () -> ()
      %cst_39 = arith.constant dense<0.000000e+00> : vector<2x8x8xf32>
      %64 = tpu.matmul %61, %62, %cst_39 {dimension_numbers = #tpu.dot_dimension_numbers<[2], [2], [1], [1], [0, 0, 0, 1, 1, 1], [0], [0]>} : vector<2x8x8xbf16>, vector<2x8x8xbf16>, vector<2x8x8xf32> -> vector<2x8x8xf32>
      "tpu.trace_stop"() : () -> ()
      %cst_40 = arith.constant 0.353553385 : f32
      %65 = vector.broadcast %cst_40 : f32 to vector<2x8x8xf32>
      %66 = arith.mulf %64, %65 : vector<2x8x8xf32>
      %cst_41 = arith.constant dense<0xFF800000> : vector<2x8xf32>
      %67 = vector.multi_reduction <maximumf>, %66, %cst_41 [2] : vector<2x8x8xf32> to vector<2x8xf32>
      %68 = vector.shape_cast %67 : vector<2x8xf32> to vector<2x8x1xf32>
      %69 = vector.broadcast %68 : vector<2x8x1xf32> to vector<2x8x8xf32>
      %70 = arith.subf %66, %69 : vector<2x8x8xf32>
      %71 = math.exp %70 : vector<2x8x8xf32>
      %cst_42 = arith.constant dense<0.000000e+00> : vector<2x8xf32>
      %72 = vector.multi_reduction <add>, %71, %cst_42 [2] : vector<2x8x8xf32> to vector<2x8xf32>
      %73 = vector.shape_cast %72 : vector<2x8xf32> to vector<2x8x1xf32>
      %74 = tpu.reciprocal %73 {approx = true} : vector<2x8x1xf32> -> vector<2x8x1xf32>
      %75 = vector.broadcast %74 : vector<2x8x1xf32> to vector<2x8x8xf32>
      %76 = arith.mulf %71, %75 : vector<2x8x8xf32>
      %77 = arith.truncf %76 : vector<2x8x8xf32> to vector<2x8x8xbf16>
      "tpu.trace_start"() <{level = 10 : i32, message = "bqk,bkc->bqc"}> : () -> ()
      %cst_43 = arith.constant dense<0.000000e+00> : vector<2x8x8xf32>
      %78 = tpu.matmul %77, %63, %cst_43 {dimension_numbers = #tpu.dot_dimension_numbers<[2], [1], [1], [2], [0, 0, 0, 1, 1, 2], [0], [0]>} : vector<2x8x8xbf16>, vector<2x8x8xbf16>, vector<2x8x8xf32> -> vector<2x8x8xf32>
      "tpu.trace_stop"() : () -> ()
      %79 = vector.extract_strided_slice %60 {offsets = [0, 0, 8], sizes = [2, 8, 8], strides = [1, 1, 1]} : vector<2x8x96xbf16> to vector<2x8x8xbf16>
      %80 = vector.extract_strided_slice %60 {offsets = [0, 0, 40], sizes = [2, 8, 8], strides = [1, 1, 1]} : vector<2x8x96xbf16> to vector<2x8x8xbf16>
      %81 = vector.extract_strided_slice %60 {offsets = [0, 0, 72], sizes = [2, 8, 8], strides = [1, 1, 1]} : vector<2x8x96xbf16> to vector<2x8x8xbf16>
      "tpu.trace_start"() <{level = 10 : i32, message = "bqc,bkc->bqk"}> : () -> ()
      %cst_44 = arith.constant dense<0.000000e+00> : vector<2x8x8xf32>
      %82 = tpu.matmul %79, %80, %cst_44 {dimension_numbers = #tpu.dot_dimension_numbers<[2], [2], [1], [1], [0, 0, 0, 1, 1, 1], [0], [0]>} : vector<2x8x8xbf16>, vector<2x8x8xbf16>, vector<2x8x8xf32> -> vector<2x8x8xf32>
      "tpu.trace_stop"() : () -> ()
      %cst_45 = arith.constant 0.353553385 : f32
      %83 = vector.broadcast %cst_45 : f32 to vector<2x8x8xf32>
      %84 = arith.mulf %82, %83 : vector<2x8x8xf32>
      %cst_46 = arith.constant dense<0xFF800000> : vector<2x8xf32>
      %85 = vector.multi_reduction <maximumf>, %84, %cst_46 [2] : vector<2x8x8xf32> to vector<2x8xf32>
      %86 = vector.shape_cast %85 : vector<2x8xf32> to vector<2x8x1xf32>
      %87 = vector.broadcast %86 : vector<2x8x1xf32> to vector<2x8x8xf32>
      %88 = arith.subf %84, %87 : vector<2x8x8xf32>
      %89 = math.exp %88 : vector<2x8x8xf32>
      %cst_47 = arith.constant dense<0.000000e+00> : vector<2x8xf32>
      %90 = vector.multi_reduction <add>, %89, %cst_47 [2] : vector<2x8x8xf32> to vector<2x8xf32>
      %91 = vector.shape_cast %90 : vector<2x8xf32> to vector<2x8x1xf32>
      %92 = tpu.reciprocal %91 {approx = true} : vector<2x8x1xf32> -> vector<2x8x1xf32>
      %93 = vector.broadcast %92 : vector<2x8x1xf32> to vector<2x8x8xf32>
      %94 = arith.mulf %89, %93 : vector<2x8x8xf32>
      %95 = arith.truncf %94 : vector<2x8x8xf32> to vector<2x8x8xbf16>
      "tpu.trace_start"() <{level = 10 : i32, message = "bqk,bkc->bqc"}> : () -> ()
      %cst_48 = arith.constant dense<0.000000e+00> : vector<2x8x8xf32>
      %96 = tpu.matmul %95, %81, %cst_48 {dimension_numbers = #tpu.dot_dimension_numbers<[2], [1], [1], [2], [0, 0, 0, 1, 1, 2], [0], [0]>} : vector<2x8x8xbf16>, vector<2x8x8xbf16>, vector<2x8x8xf32> -> vector<2x8x8xf32>
      "tpu.trace_stop"() : () -> ()
      %97 = vector.extract_strided_slice %60 {offsets = [0, 0, 16], sizes = [2, 8, 8], strides = [1, 1, 1]} : vector<2x8x96xbf16> to vector<2x8x8xbf16>
      %98 = vector.extract_strided_slice %60 {offsets = [0, 0, 48], sizes = [2, 8, 8], strides = [1, 1, 1]} : vector<2x8x96xbf16> to vector<2x8x8xbf16>
      %99 = vector.extract_strided_slice %60 {offsets = [0, 0, 80], sizes = [2, 8, 8], strides = [1, 1, 1]} : vector<2x8x96xbf16> to vector<2x8x8xbf16>
      "tpu.trace_start"() <{level = 10 : i32, message = "bqc,bkc->bqk"}> : () -> ()
      %cst_49 = arith.constant dense<0.000000e+00> : vector<2x8x8xf32>
      %100 = tpu.matmul %97, %98, %cst_49 {dimension_numbers = #tpu.dot_dimension_numbers<[2], [2], [1], [1], [0, 0, 0, 1, 1, 1], [0], [0]>} : vector<2x8x8xbf16>, vector<2x8x8xbf16>, vector<2x8x8xf32> -> vector<2x8x8xf32>
      "tpu.trace_stop"() : () -> ()
      %cst_50 = arith.constant 0.353553385 : f32
      %101 = vector.broadcast %cst_50 : f32 to vector<2x8x8xf32>
      %102 = arith.mulf %100, %101 : vector<2x8x8xf32>
      %cst_51 = arith.constant dense<0xFF800000> : vector<2x8xf32>
      %103 = vector.multi_reduction <maximumf>, %102, %cst_51 [2] : vector<2x8x8xf32> to vector<2x8xf32>
      %104 = vector.shape_cast %103 : vector<2x8xf32> to vector<2x8x1xf32>
      %105 = vector.broadcast %104 : vector<2x8x1xf32> to vector<2x8x8xf32>
      %106 = arith.subf %102, %105 : vector<2x8x8xf32>
      %107 = math.exp %106 : vector<2x8x8xf32>
      %cst_52 = arith.constant dense<0.000000e+00> : vector<2x8xf32>
      %108 = vector.multi_reduction <add>, %107, %cst_52 [2] : vector<2x8x8xf32> to vector<2x8xf32>
      %109 = vector.shape_cast %108 : vector<2x8xf32> to vector<2x8x1xf32>
      %110 = tpu.reciprocal %109 {approx = true} : vector<2x8x1xf32> -> vector<2x8x1xf32>
      %111 = vector.broadcast %110 : vector<2x8x1xf32> to vector<2x8x8xf32>
      %112 = arith.mulf %107, %111 : vector<2x8x8xf32>
      %113 = arith.truncf %112 : vector<2x8x8xf32> to vector<2x8x8xbf16>
      "tpu.trace_start"() <{level = 10 : i32, message = "bqk,bkc->bqc"}> : () -> ()
      %cst_53 = arith.constant dense<0.000000e+00> : vector<2x8x8xf32>
      %114 = tpu.matmul %113, %99, %cst_53 {dimension_numbers = #tpu.dot_dimension_numbers<[2], [1], [1], [2], [0, 0, 0, 1, 1, 2], [0], [0]>} : vector<2x8x8xbf16>, vector<2x8x8xbf16>, vector<2x8x8xf32> -> vector<2x8x8xf32>
      "tpu.trace_stop"() : () -> ()
      %115 = vector.extract_strided_slice %60 {offsets = [0, 0, 24], sizes = [2, 8, 8], strides = [1, 1, 1]} : vector<2x8x96xbf16> to vector<2x8x8xbf16>
      %116 = vector.extract_strided_slice %60 {offsets = [0, 0, 56], sizes = [2, 8, 8], strides = [1, 1, 1]} : vector<2x8x96xbf16> to vector<2x8x8xbf16>
      %117 = vector.extract_strided_slice %60 {offsets = [0, 0, 88], sizes = [2, 8, 8], strides = [1, 1, 1]} : vector<2x8x96xbf16> to vector<2x8x8xbf16>
      "tpu.trace_start"() <{level = 10 : i32, message = "bqc,bkc->bqk"}> : () -> ()
      %cst_54 = arith.constant dense<0.000000e+00> : vector<2x8x8xf32>
      %118 = tpu.matmul %115, %116, %cst_54 {dimension_numbers = #tpu.dot_dimension_numbers<[2], [2], [1], [1], [0, 0, 0, 1, 1, 1], [0], [0]>} : vector<2x8x8xbf16>, vector<2x8x8xbf16>, vector<2x8x8xf32> -> vector<2x8x8xf32>
      "tpu.trace_stop"() : () -> ()
      %cst_55 = arith.constant 0.353553385 : f32
      %119 = vector.broadcast %cst_55 : f32 to vector<2x8x8xf32>
      %120 = arith.mulf %118, %119 : vector<2x8x8xf32>
      %cst_56 = arith.constant dense<0xFF800000> : vector<2x8xf32>
      %121 = vector.multi_reduction <maximumf>, %120, %cst_56 [2] : vector<2x8x8xf32> to vector<2x8xf32>
      %122 = vector.shape_cast %121 : vector<2x8xf32> to vector<2x8x1xf32>
      %123 = vector.broadcast %122 : vector<2x8x1xf32> to vector<2x8x8xf32>
      %124 = arith.subf %120, %123 : vector<2x8x8xf32>
      %125 = math.exp %124 : vector<2x8x8xf32>
      %cst_57 = arith.constant dense<0.000000e+00> : vector<2x8xf32>
      %126 = vector.multi_reduction <add>, %125, %cst_57 [2] : vector<2x8x8xf32> to vector<2x8xf32>
      %127 = vector.shape_cast %126 : vector<2x8xf32> to vector<2x8x1xf32>
      %128 = tpu.reciprocal %127 {approx = true} : vector<2x8x1xf32> -> vector<2x8x1xf32>
      %129 = vector.broadcast %128 : vector<2x8x1xf32> to vector<2x8x8xf32>
      %130 = arith.mulf %125, %129 : vector<2x8x8xf32>
      %131 = arith.truncf %130 : vector<2x8x8xf32> to vector<2x8x8xbf16>
      "tpu.trace_start"() <{level = 10 : i32, message = "bqk,bkc->bqc"}> : () -> ()
      %cst_58 = arith.constant dense<0.000000e+00> : vector<2x8x8xf32>
      %132 = tpu.matmul %131, %117, %cst_58 {dimension_numbers = #tpu.dot_dimension_numbers<[2], [1], [1], [2], [0, 0, 0, 1, 1, 2], [0], [0]>} : vector<2x8x8xbf16>, vector<2x8x8xbf16>, vector<2x8x8xf32> -> vector<2x8x8xf32>
      "tpu.trace_stop"() : () -> ()
      %133 = tpu.concatenate %78, %96, %114, %132 in 2 : vector<2x8x8xf32>, vector<2x8x8xf32>, vector<2x8x8xf32>, vector<2x8x8xf32> -> vector<2x8x32xf32>
      %134 = vector.shape_cast %133 : vector<2x8x32xf32> to vector<16x32xf32>
      %135 = arith.truncf %134 : vector<16x32xf32> to vector<16x32xbf16>
      %cst_59 = arith.constant dense<0.000000e+00> : vector<16x32xf32>
      %136 = tpu.matmul %135, %34, %cst_59 {dimension_numbers = #tpu.dot_dimension_numbers<[1], [0], [0], [1], [0, 0, 1, 1], [], []>} : vector<16x32xbf16>, vector<32x32xbf16>, vector<16x32xf32> -> vector<16x32xf32>
      %137 = vector.broadcast %42 : vector<1x32xf32> to vector<16x32xf32>
      %138 = arith.addf %136, %137 : vector<16x32xf32>
      %139 = arith.addf %30, %138 : vector<16x32xf32>
      %cst_60 = arith.constant dense<0.000000e+00> : vector<16xf32>
      %140 = vector.multi_reduction <add>, %139, %cst_60 [1] : vector<16x32xf32> to vector<16xf32>
      %141 = vector.shape_cast %140 : vector<16xf32> to vector<16x1xf32>
      %cst_61 = arith.constant 3.200000e+01 : f32
      %142 = vector.broadcast %cst_61 : f32 to vector<16x1xf32>
      %143 = arith.divf %141, %142 : vector<16x1xf32>
      %144 = vector.broadcast %143 : vector<16x1xf32> to vector<16x32xf32>
      %145 = arith.subf %139, %144 : vector<16x32xf32>
      %146 = arith.mulf %145, %145 : vector<16x32xf32>
      %cst_62 = arith.constant dense<0.000000e+00> : vector<16xf32>
      %147 = vector.multi_reduction <add>, %146, %cst_62 [1] : vector<16x32xf32> to vector<16xf32>
      %148 = vector.shape_cast %147 : vector<16xf32> to vector<16x1xf32>
      %cst_63 = arith.constant 3.200000e+01 : f32
      %149 = vector.broadcast %cst_63 : f32 to vector<16x1xf32>
      %150 = arith.divf %148, %149 : vector<16x1xf32>
      %151 = vector.broadcast %143 : vector<16x1xf32> to vector<16x32xf32>
      %152 = arith.subf %139, %151 : vector<16x32xf32>
      %cst_64 = arith.constant 9.99999974E-6 : f32
      %153 = vector.broadcast %cst_64 : f32 to vector<16x1xf32>
      %154 = arith.addf %150, %153 : vector<16x1xf32>
      %155 = math.rsqrt %154 : vector<16x1xf32>
      %156 = vector.broadcast %155 : vector<16x1xf32> to vector<16x32xf32>
      %157 = arith.mulf %152, %156 : vector<16x32xf32>
      %158 = vector.broadcast %44 : vector<1x32xf32> to vector<16x32xf32>
      %159 = arith.mulf %157, %158 : vector<16x32xf32>
      %160 = vector.broadcast %46 : vector<1x32xf32> to vector<16x32xf32>
      %161 = arith.addf %159, %160 : vector<16x32xf32>
      %162 = arith.truncf %161 : vector<16x32xf32> to vector<16x32xbf16>
      %cst_65 = arith.constant dense<0.000000e+00> : vector<16x64xf32>
      %163 = tpu.matmul %162, %36, %cst_65 {dimension_numbers = #tpu.dot_dimension_numbers<[1], [0], [0], [1], [0, 0, 1, 1], [], []>} : vector<16x32xbf16>, vector<32x64xbf16>, vector<16x64xf32> -> vector<16x64xf32>
      %164 = vector.broadcast %48 : vector<1x64xf32> to vector<16x64xf32>
      %165 = arith.addf %163, %164 : vector<16x64xf32>
      %166 = arith.mulf %165, %165 : vector<16x64xf32>
      %167 = arith.mulf %165, %166 : vector<16x64xf32>
      %cst_66 = arith.constant 4.471500e-02 : f32
      %168 = vector.broadcast %cst_66 : f32 to vector<16x64xf32>
      %169 = arith.mulf %168, %167 : vector<16x64xf32>
      %170 = arith.addf %165, %169 : vector<16x64xf32>
      %cst_67 = arith.constant 0.797884583 : f32
      %171 = vector.broadcast %cst_67 : f32 to vector<16x64xf32>
      %172 = arith.mulf %171, %170 : vector<16x64xf32>
      %173 = math.tanh %172 : vector<16x64xf32>
      %cst_68 = arith.constant 1.000000e+00 : f32
      %174 = vector.broadcast %cst_68 : f32 to vector<16x64xf32>
      %175 = arith.addf %174, %173 : vector<16x64xf32>
      %cst_69 = arith.constant 5.000000e-01 : f32
      %176 = vector.broadcast %cst_69 : f32 to vector<16x64xf32>
      %177 = arith.mulf %176, %175 : vector<16x64xf32>
      %178 = arith.mulf %165, %177 : vector<16x64xf32>
      %179 = arith.truncf %178 : vector<16x64xf32> to vector<16x64xbf16>
      %cst_70 = arith.constant dense<0.000000e+00> : vector<16x32xf32>
      %180 = tpu.matmul %179, %38, %cst_70 {dimension_numbers = #tpu.dot_dimension_numbers<[1], [0], [0], [1], [0, 0, 1, 1], [], []>} : vector<16x64xbf16>, vector<64x32xbf16>, vector<16x32xf32> -> vector<16x32xf32>
      %181 = vector.broadcast %50 : vector<1x32xf32> to vector<16x32xf32>
      %182 = arith.addf %180, %181 : vector<16x32xf32>
      %183 = arith.addf %161, %182 : vector<16x32xf32>
      %cst_71 = arith.constant dense<0.000000e+00> : vector<16xf32>
      %184 = vector.multi_reduction <add>, %183, %cst_71 [1] : vector<16x32xf32> to vector<16xf32>
      %185 = vector.shape_cast %184 : vector<16xf32> to vector<16x1xf32>
      %cst_72 = arith.constant 3.200000e+01 : f32
      %186 = vector.broadcast %cst_72 : f32 to vector<16x1xf32>
      %187 = arith.divf %185, %186 : vector<16x1xf32>
      %188 = vector.broadcast %187 : vector<16x1xf32> to vector<16x32xf32>
      %189 = arith.subf %183, %188 : vector<16x32xf32>
      %190 = arith.mulf %189, %189 : vector<16x32xf32>
      %cst_73 = arith.constant dense<0.000000e+00> : vector<16xf32>
      %191 = vector.multi_reduction <add>, %190, %cst_73 [1] : vector<16x32xf32> to vector<16xf32>
      %192 = vector.shape_cast %191 : vector<16xf32> to vector<16x1xf32>
      %cst_74 = arith.constant 3.200000e+01 : f32
      %193 = vector.broadcast %cst_74 : f32 to vector<16x1xf32>
      %194 = arith.divf %192, %193 : vector<16x1xf32>
      %195 = vector.broadcast %187 : vector<16x1xf32> to vector<16x32xf32>
      %196 = arith.subf %183, %195 : vector<16x32xf32>
      %cst_75 = arith.constant 9.99999974E-6 : f32
      %197 = vector.broadcast %cst_75 : f32 to vector<16x1xf32>
      %198 = arith.addf %194, %197 : vector<16x1xf32>
      %199 = math.rsqrt %198 : vector<16x1xf32>
      %200 = vector.broadcast %199 : vector<16x1xf32> to vector<16x32xf32>
      %201 = arith.mulf %196, %200 : vector<16x32xf32>
      %202 = vector.broadcast %52 : vector<1x32xf32> to vector<16x32xf32>
      %203 = arith.mulf %201, %202 : vector<16x32xf32>
      %204 = vector.broadcast %54 : vector<1x32xf32> to vector<16x32xf32>
      %205 = arith.addf %203, %204 : vector<16x32xf32>
      %c1_76 = arith.constant 1 : index
      %c0_77 = arith.constant 0 : index
      %c0_78 = arith.constant 0 : index
      %206 = vector.load %arg12[%c1_76, %c0_77, %c0_78] : memref<2x32x192xbf16, #tpu.memory_space<vmem>>, vector<1x32x96xbf16>
      %207 = vector.shape_cast %206 : vector<1x32x96xbf16> to vector<32x96xbf16>
      %c1_79 = arith.constant 1 : index
      %c0_80 = arith.constant 0 : index
      %c96_81 = arith.constant 96 : index
      %208 = vector.load %arg12[%c1_79, %c0_80, %c96_81] : memref<2x32x192xbf16, #tpu.memory_space<vmem>>, vector<1x32x32xbf16>
      %209 = vector.shape_cast %208 : vector<1x32x32xbf16> to vector<32x32xbf16>
      %c1_82 = arith.constant 1 : index
      %c0_83 = arith.constant 0 : index
      %c128_84 = arith.constant 128 : index
      %210 = vector.load %arg12[%c1_82, %c0_83, %c128_84] : memref<2x32x192xbf16, #tpu.memory_space<vmem>>, vector<1x32x64xbf16>
      %211 = vector.shape_cast %210 : vector<1x32x64xbf16> to vector<32x64xbf16>
      %c1_85 = arith.constant 1 : index
      %c0_86 = arith.constant 0 : index
      %c0_87 = arith.constant 0 : index
      %212 = vector.load %arg13[%c1_85, %c0_86, %c0_87] : memref<2x64x32xbf16, #tpu.memory_space<vmem>>, vector<1x64x32xbf16>
      %213 = vector.shape_cast %212 : vector<1x64x32xbf16> to vector<64x32xbf16>
      %c1_88 = arith.constant 1 : index
      %c0_89 = arith.constant 0 : index
      %c0_90 = arith.constant 0 : index
      %214 = vector.load %arg14[%c1_88, %c0_89, %c0_90] : memref<2x8x128xf32, #tpu.memory_space<vmem>>, vector<1x1x96xf32>
      %215 = vector.shape_cast %214 : vector<1x1x96xf32> to vector<1x96xf32>
      %c1_91 = arith.constant 1 : index
      %c1_92 = arith.constant 1 : index
      %c0_93 = arith.constant 0 : index
      %216 = vector.load %arg14[%c1_91, %c1_92, %c0_93] : memref<2x8x128xf32, #tpu.memory_space<vmem>>, vector<1x1x32xf32>
      %217 = vector.shape_cast %216 : vector<1x1x32xf32> to vector<1x32xf32>
      %c1_94 = arith.constant 1 : index
      %c2_95 = arith.constant 2 : index
      %c0_96 = arith.constant 0 : index
      %218 = vector.load %arg14[%c1_94, %c2_95, %c0_96] : memref<2x8x128xf32, #tpu.memory_space<vmem>>, vector<1x1x32xf32>
      %219 = vector.shape_cast %218 : vector<1x1x32xf32> to vector<1x32xf32>
      %c1_97 = arith.constant 1 : index
      %c3_98 = arith.constant 3 : index
      %c0_99 = arith.constant 0 : index
      %220 = vector.load %arg14[%c1_97, %c3_98, %c0_99] : memref<2x8x128xf32, #tpu.memory_space<vmem>>, vector<1x1x32xf32>
      %221 = vector.shape_cast %220 : vector<1x1x32xf32> to vector<1x32xf32>
      %c1_100 = arith.constant 1 : index
      %c4_101 = arith.constant 4 : index
      %c0_102 = arith.constant 0 : index
      %222 = vector.load %arg14[%c1_100, %c4_101, %c0_102] : memref<2x8x128xf32, #tpu.memory_space<vmem>>, vector<1x1x64xf32>
      %223 = vector.shape_cast %222 : vector<1x1x64xf32> to vector<1x64xf32>
      %c1_103 = arith.constant 1 : index
      %c5_104 = arith.constant 5 : index
      %c0_105 = arith.constant 0 : index
      %224 = vector.load %arg14[%c1_103, %c5_104, %c0_105] : memref<2x8x128xf32, #tpu.memory_space<vmem>>, vector<1x1x32xf32>
      %225 = vector.shape_cast %224 : vector<1x1x32xf32> to vector<1x32xf32>
      %c1_106 = arith.constant 1 : index
      %c6_107 = arith.constant 6 : index
      %c0_108 = arith.constant 0 : index
      %226 = vector.load %arg14[%c1_106, %c6_107, %c0_108] : memref<2x8x128xf32, #tpu.memory_space<vmem>>, vector<1x1x32xf32>
      %227 = vector.shape_cast %226 : vector<1x1x32xf32> to vector<1x32xf32>
      %c1_109 = arith.constant 1 : index
      %c7_110 = arith.constant 7 : index
      %c0_111 = arith.constant 0 : index
      %228 = vector.load %arg14[%c1_109, %c7_110, %c0_111] : memref<2x8x128xf32, #tpu.memory_space<vmem>>, vector<1x1x32xf32>
      %229 = vector.shape_cast %228 : vector<1x1x32xf32> to vector<1x32xf32>
      %230 = arith.truncf %205 : vector<16x32xf32> to vector<16x32xbf16>
      %cst_112 = arith.constant dense<0.000000e+00> : vector<16x96xf32>
      %231 = tpu.matmul %230, %207, %cst_112 {dimension_numbers = #tpu.dot_dimension_numbers<[1], [0], [0], [1], [0, 0, 1, 1], [], []>} : vector<16x32xbf16>, vector<32x96xbf16>, vector<16x96xf32> -> vector<16x96xf32>
      %232 = vector.broadcast %215 : vector<1x96xf32> to vector<16x96xf32>
      %233 = arith.addf %231, %232 : vector<16x96xf32>
      %234 = vector.shape_cast %233 : vector<16x96xf32> to vector<2x8x96xf32>
      %235 = arith.truncf %234 : vector<2x8x96xf32> to vector<2x8x96xbf16>
      %236 = vector.extract_strided_slice %235 {offsets = [0, 0, 0], sizes = [2, 8, 8], strides = [1, 1, 1]} : vector<2x8x96xbf16> to vector<2x8x8xbf16>
      %237 = vector.extract_strided_slice %235 {offsets = [0, 0, 32], sizes = [2, 8, 8], strides = [1, 1, 1]} : vector<2x8x96xbf16> to vector<2x8x8xbf16>
      %238 = vector.extract_strided_slice %235 {offsets = [0, 0, 64], sizes = [2, 8, 8], strides = [1, 1, 1]} : vector<2x8x96xbf16> to vector<2x8x8xbf16>
      "tpu.trace_start"() <{level = 10 : i32, message = "bqc,bkc->bqk"}> : () -> ()
      %cst_113 = arith.constant dense<0.000000e+00> : vector<2x8x8xf32>
      %239 = tpu.matmul %236, %237, %cst_113 {dimension_numbers = #tpu.dot_dimension_numbers<[2], [2], [1], [1], [0, 0, 0, 1, 1, 1], [0], [0]>} : vector<2x8x8xbf16>, vector<2x8x8xbf16>, vector<2x8x8xf32> -> vector<2x8x8xf32>
      "tpu.trace_stop"() : () -> ()
      %cst_114 = arith.constant 0.353553385 : f32
      %240 = vector.broadcast %cst_114 : f32 to vector<2x8x8xf32>
      %241 = arith.mulf %239, %240 : vector<2x8x8xf32>
      %cst_115 = arith.constant dense<0xFF800000> : vector<2x8xf32>
      %242 = vector.multi_reduction <maximumf>, %241, %cst_115 [2] : vector<2x8x8xf32> to vector<2x8xf32>
      %243 = vector.shape_cast %242 : vector<2x8xf32> to vector<2x8x1xf32>
      %244 = vector.broadcast %243 : vector<2x8x1xf32> to vector<2x8x8xf32>
      %245 = arith.subf %241, %244 : vector<2x8x8xf32>
      %246 = math.exp %245 : vector<2x8x8xf32>
      %cst_116 = arith.constant dense<0.000000e+00> : vector<2x8xf32>
      %247 = vector.multi_reduction <add>, %246, %cst_116 [2] : vector<2x8x8xf32> to vector<2x8xf32>
      %248 = vector.shape_cast %247 : vector<2x8xf32> to vector<2x8x1xf32>
      %249 = tpu.reciprocal %248 {approx = true} : vector<2x8x1xf32> -> vector<2x8x1xf32>
      %250 = vector.broadcast %249 : vector<2x8x1xf32> to vector<2x8x8xf32>
      %251 = arith.mulf %246, %250 : vector<2x8x8xf32>
      %252 = arith.truncf %251 : vector<2x8x8xf32> to vector<2x8x8xbf16>
      "tpu.trace_start"() <{level = 10 : i32, message = "bqk,bkc->bqc"}> : () -> ()
      %cst_117 = arith.constant dense<0.000000e+00> : vector<2x8x8xf32>
      %253 = tpu.matmul %252, %238, %cst_117 {dimension_numbers = #tpu.dot_dimension_numbers<[2], [1], [1], [2], [0, 0, 0, 1, 1, 2], [0], [0]>} : vector<2x8x8xbf16>, vector<2x8x8xbf16>, vector<2x8x8xf32> -> vector<2x8x8xf32>
      "tpu.trace_stop"() : () -> ()
      %254 = vector.extract_strided_slice %235 {offsets = [0, 0, 8], sizes = [2, 8, 8], strides = [1, 1, 1]} : vector<2x8x96xbf16> to vector<2x8x8xbf16>
      %255 = vector.extract_strided_slice %235 {offsets = [0, 0, 40], sizes = [2, 8, 8], strides = [1, 1, 1]} : vector<2x8x96xbf16> to vector<2x8x8xbf16>
      %256 = vector.extract_strided_slice %235 {offsets = [0, 0, 72], sizes = [2, 8, 8], strides = [1, 1, 1]} : vector<2x8x96xbf16> to vector<2x8x8xbf16>
      "tpu.trace_start"() <{level = 10 : i32, message = "bqc,bkc->bqk"}> : () -> ()
      %cst_118 = arith.constant dense<0.000000e+00> : vector<2x8x8xf32>
      %257 = tpu.matmul %254, %255, %cst_118 {dimension_numbers = #tpu.dot_dimension_numbers<[2], [2], [1], [1], [0, 0, 0, 1, 1, 1], [0], [0]>} : vector<2x8x8xbf16>, vector<2x8x8xbf16>, vector<2x8x8xf32> -> vector<2x8x8xf32>
      "tpu.trace_stop"() : () -> ()
      %cst_119 = arith.constant 0.353553385 : f32
      %258 = vector.broadcast %cst_119 : f32 to vector<2x8x8xf32>
      %259 = arith.mulf %257, %258 : vector<2x8x8xf32>
      %cst_120 = arith.constant dense<0xFF800000> : vector<2x8xf32>
      %260 = vector.multi_reduction <maximumf>, %259, %cst_120 [2] : vector<2x8x8xf32> to vector<2x8xf32>
      %261 = vector.shape_cast %260 : vector<2x8xf32> to vector<2x8x1xf32>
      %262 = vector.broadcast %261 : vector<2x8x1xf32> to vector<2x8x8xf32>
      %263 = arith.subf %259, %262 : vector<2x8x8xf32>
      %264 = math.exp %263 : vector<2x8x8xf32>
      %cst_121 = arith.constant dense<0.000000e+00> : vector<2x8xf32>
      %265 = vector.multi_reduction <add>, %264, %cst_121 [2] : vector<2x8x8xf32> to vector<2x8xf32>
      %266 = vector.shape_cast %265 : vector<2x8xf32> to vector<2x8x1xf32>
      %267 = tpu.reciprocal %266 {approx = true} : vector<2x8x1xf32> -> vector<2x8x1xf32>
      %268 = vector.broadcast %267 : vector<2x8x1xf32> to vector<2x8x8xf32>
      %269 = arith.mulf %264, %268 : vector<2x8x8xf32>
      %270 = arith.truncf %269 : vector<2x8x8xf32> to vector<2x8x8xbf16>
      "tpu.trace_start"() <{level = 10 : i32, message = "bqk,bkc->bqc"}> : () -> ()
      %cst_122 = arith.constant dense<0.000000e+00> : vector<2x8x8xf32>
      %271 = tpu.matmul %270, %256, %cst_122 {dimension_numbers = #tpu.dot_dimension_numbers<[2], [1], [1], [2], [0, 0, 0, 1, 1, 2], [0], [0]>} : vector<2x8x8xbf16>, vector<2x8x8xbf16>, vector<2x8x8xf32> -> vector<2x8x8xf32>
      "tpu.trace_stop"() : () -> ()
      %272 = vector.extract_strided_slice %235 {offsets = [0, 0, 16], sizes = [2, 8, 8], strides = [1, 1, 1]} : vector<2x8x96xbf16> to vector<2x8x8xbf16>
      %273 = vector.extract_strided_slice %235 {offsets = [0, 0, 48], sizes = [2, 8, 8], strides = [1, 1, 1]} : vector<2x8x96xbf16> to vector<2x8x8xbf16>
      %274 = vector.extract_strided_slice %235 {offsets = [0, 0, 80], sizes = [2, 8, 8], strides = [1, 1, 1]} : vector<2x8x96xbf16> to vector<2x8x8xbf16>
      "tpu.trace_start"() <{level = 10 : i32, message = "bqc,bkc->bqk"}> : () -> ()
      %cst_123 = arith.constant dense<0.000000e+00> : vector<2x8x8xf32>
      %275 = tpu.matmul %272, %273, %cst_123 {dimension_numbers = #tpu.dot_dimension_numbers<[2], [2], [1], [1], [0, 0, 0, 1, 1, 1], [0], [0]>} : vector<2x8x8xbf16>, vector<2x8x8xbf16>, vector<2x8x8xf32> -> vector<2x8x8xf32>
      "tpu.trace_stop"() : () -> ()
      %cst_124 = arith.constant 0.353553385 : f32
      %276 = vector.broadcast %cst_124 : f32 to vector<2x8x8xf32>
      %277 = arith.mulf %275, %276 : vector<2x8x8xf32>
      %cst_125 = arith.constant dense<0xFF800000> : vector<2x8xf32>
      %278 = vector.multi_reduction <maximumf>, %277, %cst_125 [2] : vector<2x8x8xf32> to vector<2x8xf32>
      %279 = vector.shape_cast %278 : vector<2x8xf32> to vector<2x8x1xf32>
      %280 = vector.broadcast %279 : vector<2x8x1xf32> to vector<2x8x8xf32>
      %281 = arith.subf %277, %280 : vector<2x8x8xf32>
      %282 = math.exp %281 : vector<2x8x8xf32>
      %cst_126 = arith.constant dense<0.000000e+00> : vector<2x8xf32>
      %283 = vector.multi_reduction <add>, %282, %cst_126 [2] : vector<2x8x8xf32> to vector<2x8xf32>
      %284 = vector.shape_cast %283 : vector<2x8xf32> to vector<2x8x1xf32>
      %285 = tpu.reciprocal %284 {approx = true} : vector<2x8x1xf32> -> vector<2x8x1xf32>
      %286 = vector.broadcast %285 : vector<2x8x1xf32> to vector<2x8x8xf32>
      %287 = arith.mulf %282, %286 : vector<2x8x8xf32>
      %288 = arith.truncf %287 : vector<2x8x8xf32> to vector<2x8x8xbf16>
      "tpu.trace_start"() <{level = 10 : i32, message = "bqk,bkc->bqc"}> : () -> ()
      %cst_127 = arith.constant dense<0.000000e+00> : vector<2x8x8xf32>
      %289 = tpu.matmul %288, %274, %cst_127 {dimension_numbers = #tpu.dot_dimension_numbers<[2], [1], [1], [2], [0, 0, 0, 1, 1, 2], [0], [0]>} : vector<2x8x8xbf16>, vector<2x8x8xbf16>, vector<2x8x8xf32> -> vector<2x8x8xf32>
      "tpu.trace_stop"() : () -> ()
      %290 = vector.extract_strided_slice %235 {offsets = [0, 0, 24], sizes = [2, 8, 8], strides = [1, 1, 1]} : vector<2x8x96xbf16> to vector<2x8x8xbf16>
      %291 = vector.extract_strided_slice %235 {offsets = [0, 0, 56], sizes = [2, 8, 8], strides = [1, 1, 1]} : vector<2x8x96xbf16> to vector<2x8x8xbf16>
      %292 = vector.extract_strided_slice %235 {offsets = [0, 0, 88], sizes = [2, 8, 8], strides = [1, 1, 1]} : vector<2x8x96xbf16> to vector<2x8x8xbf16>
      "tpu.trace_start"() <{level = 10 : i32, message = "bqc,bkc->bqk"}> : () -> ()
      %cst_128 = arith.constant dense<0.000000e+00> : vector<2x8x8xf32>
      %293 = tpu.matmul %290, %291, %cst_128 {dimension_numbers = #tpu.dot_dimension_numbers<[2], [2], [1], [1], [0, 0, 0, 1, 1, 1], [0], [0]>} : vector<2x8x8xbf16>, vector<2x8x8xbf16>, vector<2x8x8xf32> -> vector<2x8x8xf32>
      "tpu.trace_stop"() : () -> ()
      %cst_129 = arith.constant 0.353553385 : f32
      %294 = vector.broadcast %cst_129 : f32 to vector<2x8x8xf32>
      %295 = arith.mulf %293, %294 : vector<2x8x8xf32>
      %cst_130 = arith.constant dense<0xFF800000> : vector<2x8xf32>
      %296 = vector.multi_reduction <maximumf>, %295, %cst_130 [2] : vector<2x8x8xf32> to vector<2x8xf32>
      %297 = vector.shape_cast %296 : vector<2x8xf32> to vector<2x8x1xf32>
      %298 = vector.broadcast %297 : vector<2x8x1xf32> to vector<2x8x8xf32>
      %299 = arith.subf %295, %298 : vector<2x8x8xf32>
      %300 = math.exp %299 : vector<2x8x8xf32>
      %cst_131 = arith.constant dense<0.000000e+00> : vector<2x8xf32>
      %301 = vector.multi_reduction <add>, %300, %cst_131 [2] : vector<2x8x8xf32> to vector<2x8xf32>
      %302 = vector.shape_cast %301 : vector<2x8xf32> to vector<2x8x1xf32>
      %303 = tpu.reciprocal %302 {approx = true} : vector<2x8x1xf32> -> vector<2x8x1xf32>
      %304 = vector.broadcast %303 : vector<2x8x1xf32> to vector<2x8x8xf32>
      %305 = arith.mulf %300, %304 : vector<2x8x8xf32>
      %306 = arith.truncf %305 : vector<2x8x8xf32> to vector<2x8x8xbf16>
      "tpu.trace_start"() <{level = 10 : i32, message = "bqk,bkc->bqc"}> : () -> ()
      %cst_132 = arith.constant dense<0.000000e+00> : vector<2x8x8xf32>
      %307 = tpu.matmul %306, %292, %cst_132 {dimension_numbers = #tpu.dot_dimension_numbers<[2], [1], [1], [2], [0, 0, 0, 1, 1, 2], [0], [0]>} : vector<2x8x8xbf16>, vector<2x8x8xbf16>, vector<2x8x8xf32> -> vector<2x8x8xf32>
      "tpu.trace_stop"() : () -> ()
      %308 = tpu.concatenate %253, %271, %289, %307 in 2 : vector<2x8x8xf32>, vector<2x8x8xf32>, vector<2x8x8xf32>, vector<2x8x8xf32> -> vector<2x8x32xf32>
      %309 = vector.shape_cast %308 : vector<2x8x32xf32> to vector<16x32xf32>
      %310 = arith.truncf %309 : vector<16x32xf32> to vector<16x32xbf16>
      %cst_133 = arith.constant dense<0.000000e+00> : vector<16x32xf32>
      %311 = tpu.matmul %310, %209, %cst_133 {dimension_numbers = #tpu.dot_dimension_numbers<[1], [0], [0], [1], [0, 0, 1, 1], [], []>} : vector<16x32xbf16>, vector<32x32xbf16>, vector<16x32xf32> -> vector<16x32xf32>
      %312 = vector.broadcast %217 : vector<1x32xf32> to vector<16x32xf32>
      %313 = arith.addf %311, %312 : vector<16x32xf32>
      %314 = arith.addf %205, %313 : vector<16x32xf32>
      %cst_134 = arith.constant dense<0.000000e+00> : vector<16xf32>
      %315 = vector.multi_reduction <add>, %314, %cst_134 [1] : vector<16x32xf32> to vector<16xf32>
      %316 = vector.shape_cast %315 : vector<16xf32> to vector<16x1xf32>
      %cst_135 = arith.constant 3.200000e+01 : f32
      %317 = vector.broadcast %cst_135 : f32 to vector<16x1xf32>
      %318 = arith.divf %316, %317 : vector<16x1xf32>
      %319 = vector.broadcast %318 : vector<16x1xf32> to vector<16x32xf32>
      %320 = arith.subf %314, %319 : vector<16x32xf32>
      %321 = arith.mulf %320, %320 : vector<16x32xf32>
      %cst_136 = arith.constant dense<0.000000e+00> : vector<16xf32>
      %322 = vector.multi_reduction <add>, %321, %cst_136 [1] : vector<16x32xf32> to vector<16xf32>
      %323 = vector.shape_cast %322 : vector<16xf32> to vector<16x1xf32>
      %cst_137 = arith.constant 3.200000e+01 : f32
      %324 = vector.broadcast %cst_137 : f32 to vector<16x1xf32>
      %325 = arith.divf %323, %324 : vector<16x1xf32>
      %326 = vector.broadcast %318 : vector<16x1xf32> to vector<16x32xf32>
      %327 = arith.subf %314, %326 : vector<16x32xf32>
      %cst_138 = arith.constant 9.99999974E-6 : f32
      %328 = vector.broadcast %cst_138 : f32 to vector<16x1xf32>
      %329 = arith.addf %325, %328 : vector<16x1xf32>
      %330 = math.rsqrt %329 : vector<16x1xf32>
      %331 = vector.broadcast %330 : vector<16x1xf32> to vector<16x32xf32>
      %332 = arith.mulf %327, %331 : vector<16x32xf32>
      %333 = vector.broadcast %219 : vector<1x32xf32> to vector<16x32xf32>
      %334 = arith.mulf %332, %333 : vector<16x32xf32>
      %335 = vector.broadcast %221 : vector<1x32xf32> to vector<16x32xf32>
      %336 = arith.addf %334, %335 : vector<16x32xf32>
      %337 = arith.truncf %336 : vector<16x32xf32> to vector<16x32xbf16>
      %cst_139 = arith.constant dense<0.000000e+00> : vector<16x64xf32>
      %338 = tpu.matmul %337, %211, %cst_139 {dimension_numbers = #tpu.dot_dimension_numbers<[1], [0], [0], [1], [0, 0, 1, 1], [], []>} : vector<16x32xbf16>, vector<32x64xbf16>, vector<16x64xf32> -> vector<16x64xf32>
      %339 = vector.broadcast %223 : vector<1x64xf32> to vector<16x64xf32>
      %340 = arith.addf %338, %339 : vector<16x64xf32>
      %341 = arith.mulf %340, %340 : vector<16x64xf32>
      %342 = arith.mulf %340, %341 : vector<16x64xf32>
      %cst_140 = arith.constant 4.471500e-02 : f32
      %343 = vector.broadcast %cst_140 : f32 to vector<16x64xf32>
      %344 = arith.mulf %343, %342 : vector<16x64xf32>
      %345 = arith.addf %340, %344 : vector<16x64xf32>
      %cst_141 = arith.constant 0.797884583 : f32
      %346 = vector.broadcast %cst_141 : f32 to vector<16x64xf32>
      %347 = arith.mulf %346, %345 : vector<16x64xf32>
      %348 = math.tanh %347 : vector<16x64xf32>
      %cst_142 = arith.constant 1.000000e+00 : f32
      %349 = vector.broadcast %cst_142 : f32 to vector<16x64xf32>
      %350 = arith.addf %349, %348 : vector<16x64xf32>
      %cst_143 = arith.constant 5.000000e-01 : f32
      %351 = vector.broadcast %cst_143 : f32 to vector<16x64xf32>
      %352 = arith.mulf %351, %350 : vector<16x64xf32>
      %353 = arith.mulf %340, %352 : vector<16x64xf32>
      %354 = arith.truncf %353 : vector<16x64xf32> to vector<16x64xbf16>
      %cst_144 = arith.constant dense<0.000000e+00> : vector<16x32xf32>
      %355 = tpu.matmul %354, %213, %cst_144 {dimension_numbers = #tpu.dot_dimension_numbers<[1], [0], [0], [1], [0, 0, 1, 1], [], []>} : vector<16x64xbf16>, vector<64x32xbf16>, vector<16x32xf32> -> vector<16x32xf32>
      %356 = vector.broadcast %225 : vector<1x32xf32> to vector<16x32xf32>
      %357 = arith.addf %355, %356 : vector<16x32xf32>
      %358 = arith.addf %336, %357 : vector<16x32xf32>
      %cst_145 = arith.constant dense<0.000000e+00> : vector<16xf32>
      %359 = vector.multi_reduction <add>, %358, %cst_145 [1] : vector<16x32xf32> to vector<16xf32>
      %360 = vector.shape_cast %359 : vector<16xf32> to vector<16x1xf32>
      %cst_146 = arith.constant 3.200000e+01 : f32
      %361 = vector.broadcast %cst_146 : f32 to vector<16x1xf32>
      %362 = arith.divf %360, %361 : vector<16x1xf32>
      %363 = vector.broadcast %362 : vector<16x1xf32> to vector<16x32xf32>
      %364 = arith.subf %358, %363 : vector<16x32xf32>
      %365 = arith.mulf %364, %364 : vector<16x32xf32>
      %cst_147 = arith.constant dense<0.000000e+00> : vector<16xf32>
      %366 = vector.multi_reduction <add>, %365, %cst_147 [1] : vector<16x32xf32> to vector<16xf32>
      %367 = vector.shape_cast %366 : vector<16xf32> to vector<16x1xf32>
      %cst_148 = arith.constant 3.200000e+01 : f32
      %368 = vector.broadcast %cst_148 : f32 to vector<16x1xf32>
      %369 = arith.divf %367, %368 : vector<16x1xf32>
      %370 = vector.broadcast %362 : vector<16x1xf32> to vector<16x32xf32>
      %371 = arith.subf %358, %370 : vector<16x32xf32>
      %cst_149 = arith.constant 9.99999974E-6 : f32
      %372 = vector.broadcast %cst_149 : f32 to vector<16x1xf32>
      %373 = arith.addf %369, %372 : vector<16x1xf32>
      %374 = math.rsqrt %373 : vector<16x1xf32>
      %375 = vector.broadcast %374 : vector<16x1xf32> to vector<16x32xf32>
      %376 = arith.mulf %371, %375 : vector<16x32xf32>
      %377 = vector.broadcast %227 : vector<1x32xf32> to vector<16x32xf32>
      %378 = arith.mulf %376, %377 : vector<16x32xf32>
      %379 = vector.broadcast %229 : vector<1x32xf32> to vector<16x32xf32>
      %380 = arith.addf %378, %379 : vector<16x32xf32>
      %381 = vector.shape_cast %380 : vector<16x32xf32> to vector<2x8x32xf32>
      %382 = vector.extract_strided_slice %381 {offsets = [0, 0, 0], sizes = [2, 1, 32], strides = [1, 1, 1]} : vector<2x8x32xf32> to vector<2x1x32xf32>
      %383 = vector.shape_cast %382 : vector<2x1x32xf32> to vector<2x32xf32>
      %c0_150 = arith.constant 0 : index
      %c0_151 = arith.constant 0 : index
      %384 = vector.load %arg15[%c0_150, %c0_151] : memref<48x16xbf16, #tpu.memory_space<vmem>>, vector<32x16xbf16>
      %c32 = arith.constant 32 : index
      %c0_152 = arith.constant 0 : index
      %385 = vector.load %arg15[%c32, %c0_152] : memref<48x16xbf16, #tpu.memory_space<vmem>>, vector<16x16xbf16>
      %c0_153 = arith.constant 0 : index
      %c0_154 = arith.constant 0 : index
      %386 = vector.load %arg16[%c0_153, %c0_154] : memref<4x16xf32, #tpu.memory_space<vmem>>, vector<1x16xf32>
      %c1_155 = arith.constant 1 : index
      %c0_156 = arith.constant 0 : index
      %387 = vector.load %arg16[%c1_155, %c0_156] : memref<4x16xf32, #tpu.memory_space<vmem>>, vector<1x16xf32>
      %c2_157 = arith.constant 2 : index
      %c0_158 = arith.constant 0 : index
      %388 = vector.load %arg16[%c2_157, %c0_158] : memref<4x16xf32, #tpu.memory_space<vmem>>, vector<1x16xf32>
      %c3_159 = arith.constant 3 : index
      %c0_160 = arith.constant 0 : index
      %389 = vector.load %arg16[%c3_159, %c0_160] : memref<4x16xf32, #tpu.memory_space<vmem>>, vector<1x16xf32>
      %390 = arith.truncf %383 : vector<2x32xf32> to vector<2x32xbf16>
      %cst_161 = arith.constant dense<0.000000e+00> : vector<2x16xf32>
      %391 = tpu.matmul %390, %384, %cst_161 {dimension_numbers = #tpu.dot_dimension_numbers<[1], [0], [0], [1], [0, 0, 1, 1], [], []>} : vector<2x32xbf16>, vector<32x16xbf16>, vector<2x16xf32> -> vector<2x16xf32>
      %392 = vector.broadcast %386 : vector<1x16xf32> to vector<2x16xf32>
      %393 = arith.addf %391, %392 : vector<2x16xf32>
      %394 = arith.mulf %393, %393 : vector<2x16xf32>
      %395 = arith.mulf %393, %394 : vector<2x16xf32>
      %cst_162 = arith.constant 4.471500e-02 : f32
      %396 = vector.broadcast %cst_162 : f32 to vector<2x16xf32>
      %397 = arith.mulf %396, %395 : vector<2x16xf32>
      %398 = arith.addf %393, %397 : vector<2x16xf32>
      %cst_163 = arith.constant 0.797884583 : f32
      %399 = vector.broadcast %cst_163 : f32 to vector<2x16xf32>
      %400 = arith.mulf %399, %398 : vector<2x16xf32>
      %401 = math.tanh %400 : vector<2x16xf32>
      %cst_164 = arith.constant 1.000000e+00 : f32
      %402 = vector.broadcast %cst_164 : f32 to vector<2x16xf32>
      %403 = arith.addf %402, %401 : vector<2x16xf32>
      %cst_165 = arith.constant 5.000000e-01 : f32
      %404 = vector.broadcast %cst_165 : f32 to vector<2x16xf32>
      %405 = arith.mulf %404, %403 : vector<2x16xf32>
      %406 = arith.mulf %393, %405 : vector<2x16xf32>
      %407 = arith.truncf %406 : vector<2x16xf32> to vector<2x16xbf16>
      %cst_166 = arith.constant dense<0.000000e+00> : vector<2x16xf32>
      %408 = tpu.matmul %407, %385, %cst_166 {dimension_numbers = #tpu.dot_dimension_numbers<[1], [0], [0], [1], [0, 0, 1, 1], [], []>} : vector<2x16xbf16>, vector<16x16xbf16>, vector<2x16xf32> -> vector<2x16xf32>
      %409 = vector.broadcast %387 : vector<1x16xf32> to vector<2x16xf32>
      %410 = arith.addf %408, %409 : vector<2x16xf32>
      %411 = arith.addf %410, %393 : vector<2x16xf32>
      %cst_167 = arith.constant dense<0.000000e+00> : vector<2xf32>
      %412 = vector.multi_reduction <add>, %411, %cst_167 [1] : vector<2x16xf32> to vector<2xf32>
      %413 = vector.shape_cast %412 : vector<2xf32> to vector<2x1xf32>
      %cst_168 = arith.constant 1.600000e+01 : f32
      %414 = vector.broadcast %cst_168 : f32 to vector<2x1xf32>
      %415 = arith.divf %413, %414 : vector<2x1xf32>
      %416 = vector.broadcast %415 : vector<2x1xf32> to vector<2x16xf32>
      %417 = arith.subf %411, %416 : vector<2x16xf32>
      %418 = arith.mulf %417, %417 : vector<2x16xf32>
      %cst_169 = arith.constant dense<0.000000e+00> : vector<2xf32>
      %419 = vector.multi_reduction <add>, %418, %cst_169 [1] : vector<2x16xf32> to vector<2xf32>
      %420 = vector.shape_cast %419 : vector<2xf32> to vector<2x1xf32>
      %cst_170 = arith.constant 1.600000e+01 : f32
      %421 = vector.broadcast %cst_170 : f32 to vector<2x1xf32>
      %422 = arith.divf %420, %421 : vector<2x1xf32>
      %423 = vector.broadcast %415 : vector<2x1xf32> to vector<2x16xf32>
      %424 = arith.subf %411, %423 : vector<2x16xf32>
      %cst_171 = arith.constant 9.99999974E-6 : f32
      %425 = vector.broadcast %cst_171 : f32 to vector<2x1xf32>
      %426 = arith.addf %422, %425 : vector<2x1xf32>
      %427 = math.rsqrt %426 : vector<2x1xf32>
      %428 = vector.broadcast %427 : vector<2x1xf32> to vector<2x16xf32>
      %429 = arith.mulf %424, %428 : vector<2x16xf32>
      %430 = vector.broadcast %388 : vector<1x16xf32> to vector<2x16xf32>
      %431 = arith.mulf %429, %430 : vector<2x16xf32>
      %432 = vector.broadcast %389 : vector<1x16xf32> to vector<2x16xf32>
      %433 = arith.addf %431, %432 : vector<2x16xf32>
      %c0_172 = arith.constant 0 : index
      %c0_173 = arith.constant 0 : index
      %c0_174 = arith.constant 0 : index
      %434 = vector.load %arg17[%c0_172, %c0_173, %c0_174] : memref<1x2x16xf32, #tpu.memory_space<vmem>>, vector<1x2x16xf32>
      %435 = vector.shape_cast %434 : vector<1x2x16xf32> to vector<2x16xf32>
      %436 = vector.shape_cast %433 : vector<2x16xf32> to vector<1x2x16xf32>
      tpu.vector_store %arg17[%c0_172, %c0_173, %c0_174], %436 {strides = array<i32>} : memref<1x2x16xf32, #tpu.memory_space<vmem>>, vector<1x2x16xf32>,
    } else {
    }
    return
  }
  func.func @transform_0(%arg0: i32) -> (i32, i32) {
    %c0_i32 = arith.constant 0 : i32
    %c0_i32_0 = arith.constant 0 : i32
    %c0_i32_1 = arith.constant 0 : i32
    return %c0_i32, %c0_i32_0 : i32, i32
  }
  func.func @transform_1(%arg0: i32) -> (i32, i32) {
    %c0_i32 = arith.constant 0 : i32
    %c0_i32_0 = arith.constant 0 : i32
    %c0_i32_1 = arith.constant 0 : i32
    return %c0_i32, %c0_i32_0 : i32, i32
  }
  func.func @transform_2(%arg0: i32) -> (i32, i32) {
    %c0_i32 = arith.constant 0 : i32
    %c0_i32_0 = arith.constant 0 : i32
    %c0_i32_1 = arith.constant 0 : i32
    return %c0_i32, %c0_i32_0 : i32, i32
  }
  func.func @transform_3(%arg0: i32) -> (i32, i32, i32) {
    %c0_i32 = arith.constant 0 : i32
    %c0_i32_0 = arith.constant 0 : i32
    %c0_i32_1 = arith.constant 0 : i32
    %c0_i32_2 = arith.constant 0 : i32
    return %c0_i32, %c0_i32_0, %c0_i32_1 : i32, i32, i32
  }
  func.func @transform_4(%arg0: i32) -> (i32, i32, i32) {
    %c0_i32 = arith.constant 0 : i32
    %c0_i32_0 = arith.constant 0 : i32
    %c0_i32_1 = arith.constant 0 : i32
    %c0_i32_2 = arith.constant 0 : i32
    return %c0_i32, %c0_i32_0, %c0_i32_1 : i32, i32, i32
  }
  func.func @transform_5(%arg0: i32) -> (i32, i32, i32) {
    %c0_i32 = arith.constant 0 : i32
    %c0_i32_0 = arith.constant 0 : i32
    %c0_i32_1 = arith.constant 0 : i32
    %c0_i32_2 = arith.constant 0 : i32
    return %c0_i32, %c0_i32_0, %c0_i32_1 : i32, i32, i32
  }
  func.func @transform_6(%arg0: i32) -> (i32, i32) {
    %c0_i32 = arith.constant 0 : i32
    %c0_i32_0 = arith.constant 0 : i32
    %c0_i32_1 = arith.constant 0 : i32
    return %c0_i32, %c0_i32_0 : i32, i32
  }
  func.func @transform_7(%arg0: i32) -> (i32, i32) {
    %c0_i32 = arith.constant 0 : i32
    %c0_i32_0 = arith.constant 0 : i32
    %c0_i32_1 = arith.constant 0 : i32
    return %c0_i32, %c0_i32_0 : i32, i32
  }
  func.func @transform_8(%arg0: i32) -> (i32, i32) {
    %c0_i32 = arith.constant 0 : i32
    %c0_i32_0 = arith.constant 0 : i32
    %c0_i32_1 = arith.constant 0 : i32
    return %c0_i32, %c0_i32_0 : i32, i32
  }
  func.func @transform_9(%arg0: i32) -> (i32, i32) {
    %c0_i32 = arith.constant 0 : i32
    %c0_i32_0 = arith.constant 0 : i32
    %c0_i32_1 = arith.constant 0 : i32
    return %c0_i32, %c0_i32_0 : i32, i32
  }
  func.func @transform_10(%arg0: i32) -> (i32, i32) {
    %c0_i32 = arith.constant 0 : i32
    %c0_i32_0 = arith.constant 0 : i32
    %c0_i32_1 = arith.constant 0 : i32
    return %c0_i32, %c0_i32_0 : i32, i32
  }
  func.func @transform_11(%arg0: i32) -> (i32, i32, i32) {
    %c0_i32 = arith.constant 0 : i32
    %c0_i32_0 = arith.constant 0 : i32
    %c0_i32_1 = arith.constant 0 : i32
    %c0_i32_2 = arith.constant 0 : i32
    return %c0_i32, %c0_i32_0, %c0_i32_1 : i32, i32, i32
  }
  func.func @transform_12(%arg0: i32) -> (i32, i32, i32) {
    %c0_i32 = arith.constant 0 : i32
    %c0_i32_0 = arith.constant 0 : i32
    %c0_i32_1 = arith.constant 0 : i32
    %c0_i32_2 = arith.constant 0 : i32
    return %c0_i32, %c0_i32_0, %c0_i32_1 : i32, i32, i32
  }
  func.func @transform_13(%arg0: i32) -> (i32, i32, i32) {
    %c0_i32 = arith.constant 0 : i32
    %c0_i32_0 = arith.constant 0 : i32
    %c0_i32_1 = arith.constant 0 : i32
    %c0_i32_2 = arith.constant 0 : i32
    return %c0_i32, %c0_i32_0, %c0_i32_1 : i32, i32, i32
  }
  func.func @transform_14(%arg0: i32) -> (i32, i32) {
    %c0_i32 = arith.constant 0 : i32
    %c0_i32_0 = arith.constant 0 : i32
    %c0_i32_1 = arith.constant 0 : i32
    return %c0_i32, %c0_i32_0 : i32, i32
  }
  func.func @transform_15(%arg0: i32) -> (i32, i32) {
    %c0_i32 = arith.constant 0 : i32
    %c0_i32_0 = arith.constant 0 : i32
    %c0_i32_1 = arith.constant 0 : i32
    return %c0_i32, %c0_i32_0 : i32, i32
  }
  func.func @transform_16(%arg0: i32) -> (i32, i32, i32) {
    %c0_i32 = arith.constant 0 : i32
    %c0_i32_0 = arith.constant 0 : i32
    %c0_i32_1 = arith.constant 0 : i32
    return %arg0, %c0_i32, %c0_i32_0 : i32, i32, i32
  }
}

</mosaic_0001>

<bundles_post_ra>
// kernel: clip_forward.1
= control target key start
LH: loop header
LB: loop body
LE: loop exit
PB: predicated region body
PF: predicated region fallthrough
CT: control target
= control target key end

     0   :  { %s7796_s21 = smov 0   ;;  %s9066_s0 = inlined_call_operand.vmem [shape: bf16[16,192], index: 0, kind: input, shape index: {}]   ;;  %s9067_s1 = inlined_call_operand.vmem [shape: bf16[192,32], index: 1, kind: input, shape index: {}]   ;;  %s9068_s2 = inlined_call_operand.vmem [shape: f32[16,32], index: 2, kind: input, shape index: {}]   ;;  %s9069_s3 = inlined_call_operand.vmem [shape: bf16[2,32,192], index: 3, kind: input, shape index: {}]   ;;  %s9070_s4 = inlined_call_operand.vmem [shape: bf16[2,64,32], index: 4, kind: input, shape index: {}]   ;;  %s9071_s5 = inlined_call_operand.vmem [shape: f32[2,8,128], index: 5, kind: input, shape index: {}]   ;;  %s9072_s6 = inlined_call_operand.vmem [shape: f32[2,32], index: 6, kind: input, shape index: {}]   ;;  %s9073_s7 = inlined_call_operand.vmem [shape: bf16[48,16], index: 7, kind: input, shape index: {}]   ;;  %s9074_s8 = inlined_call_operand.vmem [shape: f32[4,16], index: 8, kind: input, shape index: {}]   ;;  %s9075_s9 = inlined_call_operand.vmem [shape: f32[16,32], index: 9, kind: input, shape index: {}]   ;;  %s9076_s10 = inlined_call_operand.vmem [shape: f32[2,32], index: 10, kind: input, shape index: {}]   ;;  %s9077_s11 = inlined_call_operand.vmem [shape: bf16[2,32,192], index: 11, kind: input, shape index: {}]   ;;  %s9078_s12 = inlined_call_operand.vmem [shape: bf16[2,64,32], index: 12, kind: input, shape index: {}]   ;;  %s9079_s13 = inlined_call_operand.vmem [shape: f32[2,8,128], index: 13, kind: input, shape index: {}]   ;;  %s9080_s14 = inlined_call_operand.vmem [shape: bf16[48,16], index: 14, kind: input, shape index: {}]   ;;  %s9081_s15 = inlined_call_operand.vmem [shape: f32[4,16], index: 15, kind: input, shape index: {}]   ;;  %s9082_s16 = inlined_call_operand.vmem [shape: f32[2,2,16], index: 16, kind: output, shape index: {}]  }
   0x1   :  { %9120 = sst [smem:[#allocation2_spill]] %s9066_s0 }
   0x2 LB: > { %s7802_s22 = sadd.s32 4294967295, %s7673_s21   ;;  %p6335_p0 = scmp.ge.s32.totalorder %s7673_s21, 1  ;;  %s7673_s21 = sphi %s7796_s21, %s26_s21  }
   0x3   : > { %p452_p1 = scmp.lt.s32.totalorder %s7673_s21, 3 }
   0x5   : > { %p453_p2 = pnand %p6335_p0, %p452_p1 }
   0x6   : > { %p496_p3 = scmp.lt.s32.totalorder (!%p453_p2), %s7802_s22, 1  ;;  %p6337_p4 = scmp.ne.s32.totalorder (!%p453_p2), %s7802_s22, 0 }
   0x7   : > { %456 = sbr.rel (%p453_p2) target bundleno = 19049 (0x4a69), region = 84 }
   0xe   : > { %s497_s23 = scalar_select %p496_p3, %s7802_s22, 1 }
   0xf   : > { %504 = sbr.rel (%p6337_p4) target bundleno = 9676 (0x25cc), region = 88  ;;  %v7394_v0 = vld [vmem:[%s9067_s1] sm:$0xff] (!%p6337_p4)   ;;  %v7675_v1 = vmov (!%p6337_p4), 0   ;;  %v7395_v2 = vld [vmem:[%s9067_s1 + $0x8] sm:$0xff] (!%p6337_p4)   ;;  %v7396_v3 = vld [vmem:[%s9067_s1 + $0x10] sm:$0xff] (!%p6337_p4)   ;;  %vm614_vm0 = vcmask (!%p6337_p4), 523264  }
  0x10   : > { %s6336_s24 = sshll.u32 %s497_s23, 1  ;;  %618 = vmatprep.subr.bf16.mxu0 (!%p6337_p4), %v7675_v1  ;;  %v7397_v4 = vld [vmem:[%s9067_s1 + $0x18] sm:$0xff] (!%p6337_p4)   ;;  %v7398_v5 = vld [vmem:[%s9067_s1 + $0x20] sm:$0xff] (!%p6337_p4)   ;;  %s9121_s28 = sld [smem:[#allocation2_spill]] (!%p6337_p4)  ;;  %v7399_v7 = vld [vmem:[%s9067_s1 + $0x28] sm:$0xff] (!%p6337_p4)   ;;  %vm687_vm1 = vcmask (!%p6337_p4), 261120  }
  0x11   : > { %s7811_s27 = scalar_lea.vmem %s9082_s16, %s6336_s24  ;;  %619 = vmatpush1.bf16.msra.mxu0 (!%p6337_p4), %v7394_v0  ;;  %v7400_v8 = vld [vmem:[%s9067_s1 + $0x30] sm:$0xff] (!%p6337_p4)   ;;  %v7401_v9 = vld [vmem:[%s9067_s1 + $0x38] sm:$0xff] (!%p6337_p4)   ;;  %v7402_v10 = vld [vmem:[%s9067_s1 + $0x40] sm:$0xff] (!%p6337_p4)   ;;  %v7676_v36 = vmov (!%p6337_p4), 0.0   ;;  %vm7677_vm2 = vmmov (!%p6337_p4), 0   ;;  %s7678_s24 = smov (!%p6337_p4), 96  }
  0x12   : > { %620 = vmatprep.subr.bf16.mxu0 (!%p6337_p4), %v7675_v1  ;;  %v7403_v11 = vld [vmem:[%s9067_s1 + $0x48] sm:$0xff] (!%p6337_p4)   ;;  %v7404_v12 = vld [vmem:[%s9067_s1 + $0x50] sm:$0xff] (!%p6337_p4)   ;;  %v7405_v13 = vld [vmem:[%s9067_s1 + $0x58] sm:$0xff] (!%p6337_p4)   ;;  %6764 = vmatprep.subr.bf16.mxu1 (!%p6337_p4), %v7676_v36  ;;  %vm793_vm3 = vcmask (!%p6337_p4), 64512   ;;  %s7680_s25 = smov (!%p6337_p4), 64   ;;  %s7681_s26 = smov (!%p6337_p4), 88  }
  0x13   : > { %v531_v15 = vld [vmem:[%s9068_s2] sm:$0xff] (!%p6337_p4)  ;;  %v532_v17 = vld [vmem:[%s9068_s2 + $0x8] sm:$0xff] (!%p6337_p4)  ;;  %6768 = vmatprep.mubr.msk.bf16.mxu1 (!%p6337_p4), %vm7677_vm2, %v7676_v36  ;;  %v7887_v37 = vld [vmem:[%s9069_s3 + $0x10] ss:$8 sps:$4 sm:$0xff] (!%p6337_p4)   ;;  %s7682_s29 = smov (!%p6337_p4), 120   ;;  %vm922_vm5 = vcmask (!%p6337_p4), 1043456  }
  0x14   : > { %v7878_v35 = vld [vmem:[%s9069_s3] ss:$8 sps:$4 sm:$0xff] (!%p6337_p4)   ;;  %s9101_s30 = smov (!%p6337_p4), 56   ;;  %s9099_s0 = smov (!%p6337_p4), 80   ;;  %vm1712_vm6 = vcmask (!%p6337_p4), 130048   ;;  %vm1715_vm7 = vcmask (!%p6337_p4), 195584  }
  0x15   : > { %621 = vmatpush1.bf16.msra.mxu0 (!%p6337_p4), %v7395_v2  ;;  %6765 = vmatpush3.bf16.msra.mxu1 (!%p6337_p4), %v7878_v35  ;;  %v6353_v46 = vld [vmem:[%s9071_s5 + $0x2] ss:$0 sm:$0xff] (!%p6337_p4)  ;;  %v6354_v50 = vld [vmem:[%s9071_s5 + $0x3] ss:$0 sm:$0xff] (!%p6337_p4)  ;;  %v6355_v55 = vld [vmem:[%s9071_s5] ss:$0 sm:$0xff] (!%p6337_p4) }
  0x16   : > { %622 = vmatprep.subr.bf16.mxu0 %v7675_v1  ;;  %v7408_v6 = vld [vmem:[%s9121_s28 + $0x4] ss:$8 sps:$4 sm:$0xff]   ;;  %v7406_v14 = vld [vmem:[%s9121_s28] ss:$8 sps:$4 sm:$0xff]   ;;  %6766 = vmatprep.subr.bf16.mxu1 %v7676_v36  ;;  %s9097_s17 = smov 112   ;;  %s9095_s18 = smov 48  }
  0x17   : > { %6352 = vmatprep.mubr.msk.bf16.mxu0 %vm614_vm0, %v7408_v6  ;;  %s9086_s19 = smov 72   ;;  %s9084_s20 = smov 104   ;;  %vm3273_vm8 = vcmask 1041409   ;;  %vm3276_vm9 = vcmask 254976   ;;  %vm3460_vm10 = vcmask 123904  }
  0x18   : > { %s9093_s23 = smov 40  }
  0x19   : > { %623 = vmatpush1.bf16.msra.mxu0 %v7396_v3  ;;  %6767 = vmatpush3.bf16.msra.mxu1 %v7887_v37 }
  0x1a   : > { %624 = vmatprep.subr.bf16.mxu0 %v7675_v1  ;;  %6772 = vmatprep.subr.bf16.mxu1 %v7676_v36 }
  0x1d   : > { %625 = vmatpush1.bf16.msra.mxu0 %v7397_v4  ;;  %v659_v4 = vlaneseq }
  0x1e   : > { %626 = vmatprep.subr.bf16.mxu0 %v7675_v1 }
  0x21   : > { %627 = vmatpush1.bf16.msra.mxu0 %v7398_v5  ;;  %v660_v5 = vand.u32 127, %v659_v4 }
  0x22   : > { %628 = vmatprep.subr.bf16.mxu0 %v7675_v1 }
  0x23   : > { %vm661_vm4 = vcmp.lt.s32.totalorder %v660_v5, 5 }
  0x25   : > { %629 = vmatpush1.bf16.msra.mxu0 %v7399_v7  ;;  %v7679_v7 = vmov -1e+30  }
  0x26   : > { %630 = vmatprep.subr.bf16.mxu0 %v7675_v1 }
  0x29   : > { %631 = vmatpush1.bf16.msra.mxu0 %v7400_v8  ;;  %v7927_v8 = vsel %vm661_vm4, 0.0, %v7679_v7 }
  0x2a   : > { %632 = vmatprep.subr.bf16.mxu0 %v7675_v1 }
  0x2d   : > { %633 = vmatpush1.bf16.msra.mxu0 %v7401_v9 }
  0x2e   : > { %634 = vmatprep.subr.bf16.mxu0 %v7675_v1 }
  0x31   : > { %635 = vmatpush1.bf16.msra.mxu0 %v7402_v10 }
  0x32   : > { %636 = vmatprep.subr.bf16.mxu0 %v7675_v1 }
  0x35   : > { %637 = vmatpush1.bf16.msra.mxu0 %v7403_v11 }
  0x36   : > { %638 = vmatprep.subr.bf16.mxu0 %v7675_v1 }
  0x39   : > { %639 = vmatpush1.bf16.msra.mxu0 %v7404_v12 }
  0x3a   : > { %640 = vmatprep.subr.bf16.mxu0 %v7675_v1 }
  0x3d   : > { %641 = vmatpush1.bf16.msra.mxu0 %v7405_v13 }
  0x3e   : > { %6802 = vmatprep.subr.bf16.mxu0 %v7676_v36 }
  0x40   : > { %651 = vmatmul.mubr.bf16.vlgmr.msra.gmra.mrb[0].mxu0 %v7406_v14 }
  0x41   : > { %6804 = vmatprep.mubr.msk.bf16.mxu0 %vm7677_vm2, %v7676_v36 }
 0x113   : > { %v652_v16 = vpop.f32.mrb[0].mxu0 }
 0x114   : > { %v7863_v18 = vadd.f32 %v652_v16, %v531_v15  ;;  %v654_v19 = vpop.f32.mrb[1].mxu0 }
 0x115   : > { %v655_v20 = vpop.f32.mrb[2].mxu0 }
 0x116   : > { %v7865_v21 = vadd.f32 %v655_v20, %v532_v17  ;;  %v657_v22 = vpop.f32.mrb[3].mxu0  ;;  %v688_v23 = vsel %vm687_vm1, %v7863_v18, 0.0 }
 0x117   : > { %689 = vadd.xlane.f32.xlu0 %v688_v23 }
 0x118   : > { %v691_v24 = vsel %vm687_vm1, %v7865_v21, 0.0 }
 0x11b   : > { %692 = vadd.xlane.f32.xlu0 %v691_v24 }
 0x1a4   : > { %v690_v25 = vpop.xlane.xlu0 %689 }
 0x1a5   : > { %v695_v26 = vmul.f32 0.03125, %v690_v25 }
 0x1a7   : > { %v697_v27 = vsub.f32 %v7863_v18, %v695_v26 }
 0x1a8   : > { %v693_v28 = vpop.xlane.xlu0 %692 }
 0x1a9   : > { %v696_v29 = vmul.f32 0.03125, %v693_v28  ;;  %v699_v30 = vmul.f32 %v697_v27, %v697_v27 }
 0x1ab   : > { %v698_v31 = vsub.f32 %v7865_v21, %v696_v29  ;;  %v701_v32 = vsel %vm687_vm1, %v699_v30, 0.0 }
 0x1ac   : > { %702 = vadd.xlane.f32.xlu1 %v701_v32 }
 0x1ad   : > { %v700_v33 = vmul.f32 %v698_v31, %v698_v31 }
 0x1af   : > { %v704_v34 = vsel %vm687_vm1, %v700_v33, 0.0 }
 0x1b0   : > { %705 = vadd.xlane.f32.xlu1 %v704_v34 }
 0x239   : > { %v703_v38 = vpop.xlane.xlu1 %702 }
 0x23a   : > { %v707_v39 = vmul.f32 0.03125, %v703_v38 }
 0x23c   : > { %v709_v40 = vadd.f32 1e-05, %v707_v39 }
 0x23d   : > { %v706_v41 = vpop.xlane.xlu1 %705 }
 0x23e   : > { %7428 = vrsqrt.f32 %v709_v40  ;;  %v708_v42 = vmul.f32 0.03125, %v706_v41 }
 0x240   : > { %v710_v43 = vadd.f32 1e-05, %v708_v42 }
 0x242   : > { %7430 = vrsqrt.f32 %v710_v43 }
 0x248   : > { %v7429_v44 = vpop.eup %7428 }
 0x249   : > { %v713_v45 = vmul.f32 %v7429_v44, %v697_v27 }
 0x24b   : > { %v719_v49 = vmul.f32 %v6353_v46, %v713_v45 }
 0x24c   : > { %v7431_v47 = vpop.eup %7430 }
 0x24d   : > { %v714_v48 = vmul.f32 %v7431_v47, %v698_v31  ;;  %v725_v52 = vadd.f32 %v6354_v50, %v719_v49 }
 0x24f   : > { %v720_v51 = vmul.f32 %v6353_v46, %v714_v48 }
 0x251   : > { %v726_v53 = vadd.f32 %v6354_v50, %v720_v51 }
 0x253   : > { %v727_v54 = vpack.c.bf16 %v726_v53, %v725_v52 }
 0x255   : > { %6769 = vmatmul.mubr.msk.bf16.vlgmr.msra.gmra.mrb[0].mxu1 %vm687_vm1, %v727_v54 }
 0x256   : > { %6774 = vmatprep.mubr.msk.bf16.mxu1 %vm7677_vm2, %v7676_v36 }
 0x328   : > { %v781_v56 = vpop.f32.mrb[0].mxu1 }
 0x329   : > { %v782_v57 = vadd.f32 %v6355_v55, %v781_v56  ;;  %v6770_v58 = vpop.f32.mrb[1].mxu1 }
 0x32a   : > { %v784_v59 = vpop.f32.mrb[2].mxu1 }
 0x32b   : > { %v7907_v60 = vpack.c.bf16 %v782_v57, %v782_v57  ;;  %v785_v61 = vadd.f32 %v6355_v55, %v784_v59  ;;  %v6771_v62 = vpop.f32.mrb[3].mxu1 }
 0x32d   : > { %v7909_v63 = vpack.c.bf16 %v785_v61, %v785_v61  ;;  %791 = vrot.lane.b32.xlu0 %v7907_v60, %s7678_s24 }
 0x32f   : > { %841 = vrot.lane.b32.xlu1 %v7909_v63, %s7678_s24 }
 0x39f   : > { %v792_v0 = vpop.permute.xlu0 %791 }
 0x3a0   : > { %v798_v1 = vsel %vm793_vm3, %v792_v0, 0 }
 0x3a1   : > { %6773 = vmatpush3.bf16.xpose.msra.mxu1 %v798_v1  ;;  %v842_v2 = vpop.permute.xlu1 %841 }
 0x3a2   : > { %6778 = vmatprep.subr.bf16.mxu1 %v7676_v36  ;;  %v847_v3 = vsel %vm793_vm3, %v842_v2, 0 }
 0x3a8   : > { %6775 = vmatmul.mubr.msk.bf16.vlgmr.msra.gmra.mrb[4].mxu1 %vm793_vm3, %v7907_v60 }
 0x3a9   : > { %6779 = vmatpush3.bf16.xpose.msra.mxu1 %v847_v3  ;;  %6780 = vmatprep.mubr.msk.bf16.mxu1 %vm7677_vm2, %v7676_v36 }
 0x3aa   : > { %6784 = vmatprep.subr.bf16.mxu1 %v7676_v36 }
 0x3b0   : > { %6781 = vmatmul.mubr.msk.bf16.vlgmr.msra.gmra.mrb[8].mxu1 %vm793_vm3, %v7909_v63 }
 0x3b1   : > { %6786 = vmatprep.mubr.msk.bf16.mxu1 %vm7677_vm2, %v7676_v36 }
 0x47b   : > { %v834_v6 = vpop.f32.mrb[4].mxu1 }
 0x47c   : > { %v889_v9 = vmul.f32 0.35355338, %v834_v6  ;;  %v6776_v10 = vpop.f32.mrb[5].mxu1 }
 0x47d   : > { %v837_v11 = vpop.f32.mrb[6].mxu1 }
 0x47e   : > { %v6777_v12 = vpop.f32.mrb[7].mxu1  ;;  %v891_v13 = vadd.f32 %v889_v9, %v7927_v8 }
 0x480   : > { %v893_v14 = vsel %vm793_vm3, %v891_v13, -inf }
 0x481   : > { %894 = vmax.xlane.f32.xlu1 %v893_v14 }
 0x483   : > { %v883_v15 = vpop.f32.mrb[8].mxu1 }
 0x484   : > { %v890_v16 = vmul.f32 0.35355338, %v883_v15  ;;  %v6782_v17 = vpop.f32.mrb[9].mxu1 }
 0x485   : > { %v886_v19 = vpop.f32.mrb[10].mxu1 }
 0x486   : > { %v6783_v20 = vpop.f32.mrb[11].mxu1  ;;  %v892_v22 = vadd.f32 %v890_v16, %v7927_v8 }
 0x488   : > { %v896_v23 = vsel %vm793_vm3, %v892_v22, -inf }
 0x489   : > { %897 = vmax.xlane.f32.xlu0 %v896_v23 }
 0x492   : > { %966 = vrot.lane.b32.xlu1 %v7909_v63, %s7680_s25 }
 0x496   : > { %1016 = vrot.lane.b32.xlu1 %v7907_v60, %s7681_s26 }
 0x50e   : > { %v895_v24 = vpop.xlane.xlu1 %894 }
 0x50f   : > { %v899_v25 = vsub.f32 %v891_v13, %v895_v24 }
 0x511   : > { %v901_v26 = vmul.f32 1.442695, %v899_v25 }
 0x512   : > { %v967_v34 = vpop.permute.xlu1 %966 }
 0x513   : > { %7432 = vpow2.f32 %v901_v26  ;;  %v972_v48 = vsel %vm922_vm5, %v967_v34, 0 }
 0x516   : > { %v898_v27 = vpop.xlane.xlu0 %897  ;;  %v1017_v39 = vpop.permute.xlu1 %1016 }
 0x517   : > { %v900_v28 = vsub.f32 %v892_v22, %v898_v27  ;;  %v1022_v53 = vsel %vm793_vm3, %v1017_v39, 0 }
 0x519   : > { %v903_v29 = vmul.f32 1.442695, %v900_v28 }
 0x51b   : > { %7434 = vpow2.f32 %v903_v29 }
 0x51d   : > { %v7433_v30 = vpop.eup %7432 }
 0x51e   : > { %v905_v31 = vsel %vm793_vm3, %v7433_v30, 0.0 }
 0x51f   : > { %906 = vadd.xlane.f32.xlu0 %v905_v31 }
 0x525   : > { %v7435_v32 = vpop.eup %7434 }
 0x526   : > { %v908_v33 = vsel %vm793_vm3, %v7435_v32, 0.0 }
 0x527   : > { %909 = vadd.xlane.f32.xlu1 %v908_v33 }
 0x535   : > { %917 = vrot.lane.b32.xlu0 %v7907_v60, %s7680_s25 }
 0x538   : > { %1066 = vrot.lane.b32.xlu1 %v7909_v63, %s7681_s26 }
 0x539   : > { %1014 = vrot.lane.b32.xlu0 %v7907_v60, %s7682_s29 }
 0x53c   : > { %1064 = vrot.lane.b32.xlu1 %v7909_v63, %s7682_s29 }
 0x5ac   : > { %v907_v38 = vpop.xlane.xlu0 %906 }
 0x5ad   : > { %7436 = vrcp.f32 %v907_v38 }
 0x5b0   : > { %v918_v40 = vpop.permute.xlu0 %917 }
 0x5b1   : > { %v924_v41 = vsel %vm922_vm5, %v918_v40, 0 }
 0x5b2   : > { %6785 = vmatpush3.bf16.msra.mxu1 %v924_v41 }
 0x5b3   : > { %6790 = vmatprep.subr.bf16.mxu1 %v7676_v36 }
 0x5b4   : > { %v910_v42 = vpop.xlane.xlu1 %909  ;;  %v1015_v54 = vpop.permute.xlu0 %1014 }
 0x5b5   : > { %7438 = vrcp.f32 %v910_v42 }
 0x5b7   : > { %v7437_v43 = vpop.eup %7436 }
 0x5b8   : > { %v913_v44 = vmul.f32 %v7437_v43, %v7433_v30  ;;  %v1067_v45 = vpop.permute.xlu1 %1066 }
 0x5b9   : > { %v1072_v46 = vsel %vm793_vm3, %v1067_v45, 0 }
 0x5ba   : > { %6803 = vmatpush3.bf16.xpose.msra.mxu0 %v1072_v46  ;;  %v915_v47 = vpack.c.bf16 %v913_v44, %v913_v44 }
 0x5bb   : > { %6814 = vmatprep.subr.bf16.mxu0 %v7676_v36 }
 0x5bc   : > { %6787 = vmatmul.mubr.msk.bf16.vlgmr.msra.gmra.mrb[12].mxu1 %vm793_vm3, %v915_v47  ;;  %v1065_v51 = vpop.permute.xlu1 %1064 }
 0x5bd   : > { %6791 = vmatpush3.bf16.msra.mxu1 %v972_v48  ;;  %6792 = vmatprep.mubr.msk.bf16.mxu1 %vm7677_vm2, %v7676_v36 }
 0x5be   : > { %6796 = vmatprep.subr.bf16.mxu1 %v7676_v36 }
 0x5bf   : > { %v7439_v49 = vpop.eup %7438 }
 0x5c0   : > { %v914_v50 = vmul.f32 %v7439_v49, %v7435_v32 }
 0x5c1   : > { %6805 = vmatmul.mubr.msk.bf16.vlgmr.msra.gmra.mrb[4].mxu0 %vm793_vm3, %v1065_v51 }
 0x5c2   : > { %v916_v52 = vpack.c.bf16 %v914_v50, %v914_v50  ;;  %6816 = vmatprep.mubr.msk.bf16.mxu0 %vm7677_vm2, %v7676_v36 }
 0x5c4   : > { %6793 = vmatmul.mubr.msk.bf16.vlgmr.msra.gmra.mrb[16].mxu1 %vm793_vm3, %v916_v52 }
 0x5c5   : > { %6798 = vmatprep.mubr.msk.bf16.mxu1 %vm7677_vm2, %v7676_v36 }
 0x5c6   : > { %6797 = vmatpush3.bf16.xpose.msra.mxu1 %v1022_v53 }
 0x5c7   : > { %6808 = vmatprep.subr.bf16.mxu1 %v7676_v36 }
 0x5cd   : > { %6799 = vmatmul.mubr.msk.bf16.vlgmr.msra.gmra.mrb[20].mxu1 %vm793_vm3, %v1015_v54 }
 0x5ce   : > { %6810 = vmatprep.mubr.msk.bf16.mxu1 %vm7677_vm2, %v7676_v36 }
 0x68f   : > { %v7967_v55 = vpop.f32.mrb[12].mxu1 }
 0x690   : > { %v6788_v56 = vpop.f32.mrb[13].mxu1 }
 0x691   : > { %v963_v57 = vpop.f32.mrb[14].mxu1 }
 0x692   : > { %v6789_v58 = vpop.f32.mrb[15].mxu1 }
 0x694   : > { %v1108_v59 = vpop.f32.mrb[4].mxu0 }
 0x695   : > { %v1115_v61 = vmul.f32 0.35355338, %v1108_v59  ;;  %v6806_v62 = vpop.f32.mrb[5].mxu0 }
 0x696   : > { %v1111_v0 = vpop.f32.mrb[6].mxu0 }
 0x697   : > { %v7969_v1 = vpop.f32.mrb[16].mxu1  ;;  %v6807_v2 = vpop.f32.mrb[7].mxu0  ;;  %v1117_v3 = vadd.f32 %v1115_v61, %v7927_v8 }
 0x698   : > { %v6794_v4 = vpop.f32.mrb[17].mxu1 }
 0x699   : > { %v1011_v5 = vpop.f32.mrb[18].mxu1  ;;  %v1121_v6 = vsel %vm793_vm3, %v1117_v3, -inf }
 0x69a   : > { %1122 = vmax.xlane.f32.xlu1 %v1121_v6  ;;  %v6795_v7 = vpop.f32.mrb[19].mxu1 }
 0x6a0   : > { %v1058_v9 = vpop.f32.mrb[20].mxu1 }
 0x6a1   : > { %v1114_v10 = vmul.f32 0.35355338, %v1058_v9  ;;  %v6800_v11 = vpop.f32.mrb[21].mxu1 }
 0x6a2   : > { %v1061_v12 = vpop.f32.mrb[22].mxu1 }
 0x6a3   : > { %v6801_v13 = vpop.f32.mrb[23].mxu1  ;;  %v1116_v14 = vadd.f32 %v1114_v10, %v7927_v8 }
 0x6a5   : > { %v1118_v15 = vsel %vm793_vm3, %v1116_v14, -inf }
 0x6a6   : > { %1119 = vmax.xlane.f32.xlu0 %v1118_v15 }
 0x6ab   : > { %1190 = vrot.lane.b32.xlu1 %v7909_v63, %s9101_s30 }
 0x6af   : > { %1240 = vrot.lane.b32.xlu1 %v7907_v60, %s9099_s0 }
 0x6b3   : > { %1290 = vrot.lane.b32.xlu1 %v7909_v63, %s9099_s0  ;;  %s9132_s0 = smov 24  }
 0x6b7   : > { %1288 = vrot.lane.b32.xlu1 %v7909_v63, %s9097_s17 }
 0x727   : > { %v1123_v16 = vpop.xlane.xlu1 %1122 }
 0x728   : > { %v1125_v17 = vsub.f32 %v1117_v3, %v1123_v16 }
 0x72a   : > { %v1128_v19 = vmul.f32 1.442695, %v1125_v17 }
 0x72b   : > { %v1191_v20 = vpop.permute.xlu1 %1190 }
 0x72c   : > { %7440 = vpow2.f32 %v1128_v19  ;;  %v1196_v22 = vsel %vm922_vm5, %v1191_v20, 0 }
 0x72d   : > { %6815 = vmatpush3.bf16.msra.mxu0 %v1196_v22 }
 0x72e   : > { %6826 = vmatprep.subr.bf16.mxu0 %v7676_v36 }
 0x72f   : > { %v1241_v31 = vpop.permute.xlu1 %1240 }
 0x730   : > { %v1246_v47 = vsel %vm793_vm3, %v1241_v31, 0 }
 0x733   : > { %v1120_v23 = vpop.xlane.xlu0 %1119  ;;  %v1291_v38 = vpop.permute.xlu1 %1290 }
 0x734   : > { %v1124_v24 = vsub.f32 %v1116_v14, %v1120_v23  ;;  %v1296_v40 = vsel %vm793_vm3, %v1291_v38, 0 }
 0x736   : > { %v7441_v25 = vpop.eup %7440  ;;  %v1126_v26 = vmul.f32 1.442695, %v1124_v24 }
 0x737   : > { %v1133_v27 = vsel %vm793_vm3, %v7441_v25, 0.0  ;;  %v1289_v44 = vpop.permute.xlu1 %1288 }
 0x738   : > { %7442 = vpow2.f32 %v1126_v26  ;;  %1134 = vadd.xlane.f32.xlu0 %v1133_v27 }
 0x742   : > { %v7443_v28 = vpop.eup %7442 }
 0x743   : > { %v1130_v29 = vsel %vm793_vm3, %v7443_v28, 0.0 }
 0x744   : > { %1131 = vadd.xlane.f32.xlu0 %v1130_v29 }
 0x75a   : > { %1142 = vrot.lane.b32.xlu0 %v7907_v60, %s9101_s30  ;;  %s9128_s30 = smov 40  }
 0x75e   : > { %1238 = vrot.lane.b32.xlu0 %v7907_v60, %s9097_s17  ;;  %s9126_s17 = smov 72  }
 0x7c5   : > { %v1135_v30 = vpop.xlane.xlu0 %1134 }
 0x7c6   : > { %7444 = vrcp.f32 %v1135_v30 }
 0x7d0   : > { %v7445_v32 = vpop.eup %7444 }
 0x7d1   : > { %v1139_v33 = vmul.f32 %v7445_v32, %v7441_v25  ;;  %v1132_v34 = vpop.xlane.xlu0 %1131 }
 0x7d2   : > { %7446 = vrcp.f32 %v1132_v34 }
 0x7d3   : > { %v1141_v39 = vpack.c.bf16 %v1139_v33, %v1139_v33 }
 0x7d5   : > { %v1143_v41 = vpop.permute.xlu0 %1142  ;;  %6817 = vmatmul.mubr.msk.bf16.vlgmr.msra.gmra.mrb[8].mxu0 %vm793_vm3, %v1141_v39 }
 0x7d6   : > { %v1148_v42 = vsel %vm922_vm5, %v1143_v41, 0  ;;  %6827 = vmatpush3.bf16.xpose.msra.mxu0 %v1296_v40  ;;  %6828 = vmatprep.mubr.msk.bf16.mxu0 %vm7677_vm2, %v7676_v36 }
 0x7d7   : > { %6809 = vmatpush3.bf16.msra.mxu1 %v1148_v42  ;;  %6838 = vmatprep.subr.bf16.mxu0 %v7676_v36 }
 0x7d8   : > { %6820 = vmatprep.subr.bf16.mxu1 %v7676_v36 }
 0x7d9   : > { %v1239_v48 = vpop.permute.xlu0 %1238 }
 0x7dc   : > { %v7447_v43 = vpop.eup %7446 }
 0x7dd   : > { %v1138_v45 = vmul.f32 %v7447_v43, %v7443_v28  ;;  %6829 = vmatmul.mubr.msk.bf16.vlgmr.msra.gmra.mrb[12].mxu0 %vm793_vm3, %v1289_v44 }
 0x7de   : > { %6840 = vmatprep.mubr.msk.bf16.mxu0 %vm7677_vm2, %v7676_v36 }
 0x7df   : > { %v1140_v46 = vpack.c.bf16 %v1138_v45, %v1138_v45 }
 0x7e1   : > { %6811 = vmatmul.mubr.msk.bf16.vlgmr.msra.gmra.mrb[24].mxu1 %vm793_vm3, %v1140_v46 }
 0x7e2   : > { %6821 = vmatpush3.bf16.xpose.msra.mxu1 %v1246_v47  ;;  %6822 = vmatprep.mubr.msk.bf16.mxu1 %vm7677_vm2, %v7676_v36 }
 0x7e3   : > { %6832 = vmatprep.subr.bf16.mxu1 %v7676_v36 }
 0x7e9   : > { %6823 = vmatmul.mubr.msk.bf16.vlgmr.msra.gmra.mrb[28].mxu1 %vm793_vm3, %v1239_v48 }
 0x7ea   : > { %6834 = vmatprep.mubr.msk.bf16.mxu1 %vm7677_vm2, %v7676_v36 }
 0x8a8   : > { %v8009_v49 = vpop.f32.mrb[8].mxu0 }
 0x8a9   : > { %v6818_v50 = vpop.f32.mrb[9].mxu0 }
 0x8aa   : > { %v1235_v51 = vpop.f32.mrb[10].mxu0 }
 0x8ab   : > { %v6819_v52 = vpop.f32.mrb[11].mxu0 }
 0x8b0   : > { %v1332_v53 = vpop.f32.mrb[12].mxu0 }
 0x8b1   : > { %v1339_v54 = vmul.f32 0.35355338, %v1332_v53  ;;  %v6830_v56 = vpop.f32.mrb[13].mxu0 }
 0x8b2   : > { %v1335_v57 = vpop.f32.mrb[14].mxu0 }
 0x8b3   : > { %v6831_v58 = vpop.f32.mrb[15].mxu0  ;;  %v1341_v59 = vadd.f32 %v1339_v54, %v7927_v8 }
 0x8b4   : > { %v8012_v61 = vpop.f32.mrb[24].mxu1 }
 0x8b5   : > { %v7364_v62 = vpack.i.bf16 %v8009_v49, %v8012_v61  ;;  %v6812_v0 = vpop.f32.mrb[25].mxu1  ;;  %v1345_v2 = vsel %vm793_vm3, %v1341_v59, -inf }
 0x8b6   : > { %v1187_v3 = vpop.f32.mrb[26].mxu1  ;;  %1346 = vmax.xlane.f32.xlu1 %v1345_v2 }
 0x8b7   : > { %v6813_v4 = vpop.f32.mrb[27].mxu1 }
 0x8bc   : > { %v1282_v5 = vpop.f32.mrb[28].mxu1 }
 0x8bd   : > { %v1338_v6 = vmul.f32 0.35355338, %v1282_v5  ;;  %v6824_v7 = vpop.f32.mrb[29].mxu1 }
 0x8be   : > { %v1285_v9 = vpop.f32.mrb[30].mxu1 }
 0x8bf   : > { %v6825_v10 = vpop.f32.mrb[31].mxu1  ;;  %v1340_v11 = vadd.f32 %v1338_v6, %v7927_v8 }
 0x8c1   : > { %v1342_v12 = vsel %vm793_vm3, %v1340_v11, -inf }
 0x8c2   : > { %1343 = vmax.xlane.f32.xlu0 %v1342_v12 }
 0x8c7   : > { %1414 = vrot.lane.b32.xlu1 %v7909_v63, %s9095_s18 }
 0x8cb   : > { %1464 = vrot.lane.b32.xlu1 %v7907_v60, %s9086_s19 }
 0x8cf   : > { %1514 = vrot.lane.b32.xlu1 %v7909_v63, %s9086_s19  ;;  %s9088_s19 = smov 8  }
 0x8d3   : > { %1512 = vrot.lane.b32.xlu1 %v7909_v63, %s9084_s20 }
 0x943   : > { %v1347_v13 = vpop.xlane.xlu1 %1346 }
 0x944   : > { %v1349_v14 = vsub.f32 %v1341_v59, %v1347_v13 }
 0x946   : > { %v1352_v15 = vmul.f32 1.442695, %v1349_v14 }
 0x947   : > { %v1415_v16 = vpop.permute.xlu1 %1414 }
 0x948   : > { %7448 = vpow2.f32 %v1352_v15  ;;  %v1420_v17 = vsel %vm922_vm5, %v1415_v16, 0 }
 0x949   : > { %6839 = vmatpush3.bf16.msra.mxu0 %v1420_v17 }
 0x94a   : > { %6850 = vmatprep.subr.bf16.mxu0 %v7676_v36 }
 0x94b   : > { %v1465_v28 = vpop.permute.xlu1 %1464 }
 0x94c   : > { %v1470_v44 = vsel %vm793_vm3, %v1465_v28, 0 }
 0x94f   : > { %v1344_v19 = vpop.xlane.xlu0 %1343  ;;  %v1515_v32 = vpop.permute.xlu1 %1514 }
 0x950   : > { %v1348_v20 = vsub.f32 %v1340_v11, %v1344_v19  ;;  %v1520_v34 = vsel %vm793_vm3, %v1515_v32, 0 }
 0x952   : > { %v7449_v22 = vpop.eup %7448  ;;  %v1350_v23 = vmul.f32 1.442695, %v1348_v20 }
 0x953   : > { %v1357_v24 = vsel %vm793_vm3, %v7449_v22, 0.0  ;;  %v1513_v41 = vpop.permute.xlu1 %1512 }
 0x954   : > { %7450 = vpow2.f32 %v1350_v23  ;;  %1358 = vadd.xlane.f32.xlu0 %v1357_v24 }
 0x95e   : > { %v7451_v25 = vpop.eup %7450 }
 0x95f   : > { %v1354_v26 = vsel %vm793_vm3, %v7451_v25, 0.0 }
 0x960   : > { %1355 = vadd.xlane.f32.xlu0 %v1354_v26 }
 0x976   : > { %1366 = vrot.lane.b32.xlu0 %v7907_v60, %s9095_s18  ;;  %s9130_s18 = smov 8  }
 0x97a   : > { %1462 = vrot.lane.b32.xlu0 %v7907_v60, %s9084_s20  ;;  %s9091_s20 = smov 32  }
 0x9e1   : > { %v1359_v27 = vpop.xlane.xlu0 %1358 }
 0x9e2   : > { %7452 = vrcp.f32 %v1359_v27 }
 0x9ec   : > { %v7453_v29 = vpop.eup %7452 }
 0x9ed   : > { %v1363_v30 = vmul.f32 %v7453_v29, %v7449_v22  ;;  %v1356_v31 = vpop.xlane.xlu0 %1355 }
 0x9ee   : > { %7454 = vrcp.f32 %v1356_v31 }
 0x9ef   : > { %v1365_v33 = vpack.c.bf16 %v1363_v30, %v1363_v30 }
 0x9f1   : > { %v1367_v38 = vpop.permute.xlu0 %1366  ;;  %6841 = vmatmul.mubr.msk.bf16.vlgmr.msra.gmra.mrb[16].mxu0 %vm793_vm3, %v1365_v33 }
 0x9f2   : > { %v1372_v39 = vsel %vm922_vm5, %v1367_v38, 0  ;;  %6851 = vmatpush3.bf16.xpose.msra.mxu0 %v1520_v34  ;;  %6852 = vmatprep.mubr.msk.bf16.mxu0 %vm7677_vm2, %v7676_v36 }
 0x9f3   : > { %6833 = vmatpush3.bf16.msra.mxu1 %v1372_v39  ;;  %6862 = vmatprep.subr.bf16.mxu0 %v7676_v36 }
 0x9f4   : > { %6844 = vmatprep.subr.bf16.mxu1 %v7676_v36 }
 0x9f5   : > { %v1463_v45 = vpop.permute.xlu0 %1462 }
 0x9f8   : > { %v7455_v40 = vpop.eup %7454 }
 0x9f9   : > { %v1362_v42 = vmul.f32 %v7455_v40, %v7451_v25  ;;  %6853 = vmatmul.mubr.msk.bf16.vlgmr.msra.gmra.mrb[20].mxu0 %vm793_vm3, %v1513_v41 }
 0x9fa   : > { %6864 = vmatprep.mubr.msk.bf16.mxu0 %vm7677_vm2, %v7676_v36 }
 0x9fb   : > { %v1364_v43 = vpack.c.bf16 %v1362_v42, %v1362_v42 }
 0x9fd   : > { %6835 = vmatmul.mubr.msk.bf16.vlgmr.msra.gmra.mrb[32].mxu1 %vm793_vm3, %v1364_v43 }
 0x9fe   : > { %6845 = vmatpush3.bf16.xpose.msra.mxu1 %v1470_v44  ;;  %6846 = vmatprep.mubr.msk.bf16.mxu1 %vm7677_vm2, %v7676_v36 }
 0x9ff   : > { %6856 = vmatprep.subr.bf16.mxu1 %v7676_v36 }
 0xa05   : > { %6847 = vmatmul.mubr.msk.bf16.vlgmr.msra.gmra.mrb[36].mxu1 %vm793_vm3, %v1463_v45 }
 0xa06   : > { %6858 = vmatprep.mubr.msk.bf16.mxu1 %vm7677_vm2, %v7676_v36 }
 0xac4   : > { %v1456_v46 = vpop.f32.mrb[16].mxu0 }
 0xac5   : > { %v6842_v47 = vpop.f32.mrb[17].mxu0 }
 0xac6   : > { %v1459_v48 = vpop.f32.mrb[18].mxu0 }
 0xac7   : > { %v6843_v50 = vpop.f32.mrb[19].mxu0 }
 0xacc   : > { %v1556_v51 = vpop.f32.mrb[20].mxu0 }
 0xacd   : > { %v1563_v52 = vmul.f32 0.35355338, %v1556_v51  ;;  %v6854_v53 = vpop.f32.mrb[21].mxu0 }
 0xace   : > { %v1559_v54 = vpop.f32.mrb[22].mxu0 }
 0xacf   : > { %v6855_v56 = vpop.f32.mrb[23].mxu0  ;;  %v1565_v57 = vadd.f32 %v1563_v52, %v7927_v8 }
 0xad0   : > { %v1408_v58 = vpop.f32.mrb[32].mxu1 }
 0xad1   : > { %v7369_v59 = vpack.i.bf16 %v1456_v46, %v1408_v58  ;;  %v6836_v0 = vpop.f32.mrb[33].mxu1  ;;  %v1569_v2 = vsel %vm793_vm3, %v1565_v57, -inf }
 0xad2   : > { %v1411_v3 = vpop.f32.mrb[34].mxu1  ;;  %1570 = vmax.xlane.f32.xlu1 %v1569_v2 }
 0xad3   : > { %v6837_v4 = vpop.f32.mrb[35].mxu1 }
 0xad8   : > { %v1506_v5 = vpop.f32.mrb[36].mxu1 }
 0xad9   : > { %v1562_v6 = vmul.f32 0.35355338, %v1506_v5  ;;  %v6848_v7 = vpop.f32.mrb[37].mxu1 }
 0xada   : > { %v1509_v9 = vpop.f32.mrb[38].mxu1 }
 0xadb   : > { %v6849_v10 = vpop.f32.mrb[39].mxu1  ;;  %v1564_v11 = vadd.f32 %v1562_v6, %v7927_v8 }
 0xadd   : > { %v1566_v12 = vsel %vm793_vm3, %v1564_v11, -inf }
 0xade   : > { %1567 = vmax.xlane.f32.xlu0 %v1566_v12 }
 0xae3   : > { %1638 = vrot.lane.b32.xlu1 %v7909_v63, %s9093_s23 }
 0xae7   : > { %1723 = vrot.lane.b32.xlu1 %v7878_v35, %s9091_s20 }
 0xaeb   : > { %7365 = vrot.lane.b32.xlu1 %v7364_v62, %s9088_s19  ;;  %s9089_s19 = smov 16  }
 0xb5f   : > { %v1571_v13 = vpop.xlane.xlu1 %1570 }
 0xb60   : > { %v1573_v14 = vsub.f32 %v1565_v57, %v1571_v13 }
 0xb62   : > { %v1576_v15 = vmul.f32 1.442695, %v1573_v14 }
 0xb63   : > { %v1639_v16 = vpop.permute.xlu1 %1638 }
 0xb64   : > { %7456 = vpow2.f32 %v1576_v15  ;;  %v1644_v17 = vsel %vm922_vm5, %v1639_v16, 0 }
 0xb65   : > { %6863 = vmatpush3.bf16.msra.mxu0 %v1644_v17 }
 0xb66   : > { %6876 = vmatprep.subr.bf16.mxu0 %v7676_v36 }
 0xb67   : > { %v1724_v30 = vpop.permute.xlu1 %1723 }
 0xb6b   : > { %v1568_v63 = vpop.xlane.xlu0 %1567  ;;  %v7366_v45 = vpop.permute.xlu1 %7365 }
 0xb6c   : > { %v1572_v19 = vsub.f32 %v1564_v11, %v1568_v63  ;;  %v7368_v46 = vunpack.i.h.bf16 %v7366_v45  ;;  %v7367_v47 = vunpack.i.l.bf16 %v7366_v45 }
 0xb6e   : > { %v7457_v20 = vpop.eup %7456  ;;  %v1574_v35 = vmul.f32 1.442695, %v1572_v19  ;;  %v1711_v52 = vsel %vm793_vm3, %v7969_v1, %v7368_v46  ;;  %v1710_v53 = vsel %vm793_vm3, %v7967_v55, %v7367_v47  ;;  %v6375_v55 = vld [vmem:[%s9071_s5 + $0x1] ss:$0 sm:$0xff] }
 0xb6f   : > { %v1581_v22 = vsel %vm793_vm3, %v7457_v20, 0.0 }
 0xb70   : > { %7458 = vpow2.f32 %v1574_v35  ;;  %1582 = vadd.xlane.f32.xlu0 %v1581_v22  ;;  %v7411_v35 = vld [vmem:[%s9069_s3 + $0x4] ss:$8 sps:$4 sm:$0xff]   ;;  %v7412_v22 = vld [vmem:[%s9069_s3 + $0x14] ss:$8 sps:$4 sm:$0xff]  }
 0xb7a   : > { %v7459_v49 = vpop.eup %7458 }
 0xb7b   : > { %v1578_v61 = vsel %vm793_vm3, %v7459_v49, 0.0 }
 0xb7c   : > { %1579 = vadd.xlane.f32.xlu0 %v1578_v61 }
 0xb92   : > { %1590 = vrot.lane.b32.xlu0 %v7907_v60, %s9093_s23  ;;  %s9131_s23 = smov 16  }
 0xb96   : > { %7370 = vrot.lane.b32.xlu0 %v7369_v59, %s9089_s19  ;;  %s9090_s19 = smov 24  }
 0xb9a   : > { %1725 = vrot.lane.b32.xlu0 %v7887_v37, %s9091_s20  ;;  %s9129_s20 = smov 32  }
 0xbfd   : > { %v1583_v62 = vpop.xlane.xlu0 %1582 }
 0xbfe   : > { %7460 = vrcp.f32 %v1583_v62 }
 0xc08   : > { %v7461_v23 = vpop.eup %7460 }
 0xc09   : > { %v1587_v24 = vmul.f32 %v7461_v23, %v7457_v20  ;;  %v1580_v25 = vpop.xlane.xlu0 %1579 }
 0xc0a   : > { %7462 = vrcp.f32 %v1580_v25 }
 0xc0b   : > { %v1589_v26 = vpack.c.bf16 %v1587_v24, %v1587_v24 }
 0xc0d   : > { %v1591_v27 = vpop.permute.xlu0 %1590  ;;  %6865 = vmatmul.mubr.msk.bf16.vlgmr.msra.gmra.mrb[24].mxu0 %vm793_vm3, %v1589_v26 }
 0xc0e   : > { %v1596_v28 = vsel %vm922_vm5, %v1591_v27, 0  ;;  %6880 = vmatprep.mubr.msk.bf16.mxu0 %vm7677_vm2, %v7676_v36  ;;  %6877 = vmatpush3.bf16.msra.mxu0 %v7411_v35 }
 0xc0f   : > { %6857 = vmatpush3.bf16.msra.mxu1 %v1596_v28  ;;  %6878 = vmatprep.subr.bf16.mxu0 %v7676_v36  ;;  %v6377_v28 = vld [vmem:[%s9071_s5 + $0x6] ss:$0 sm:$0xff] }
 0xc10   : > { %6868 = vmatprep.subr.bf16.mxu1 %v7676_v36 }
 0xc11   : > { %v7371_v31 = vpop.permute.xlu0 %7370 }
 0xc12   : > { %v7373_v48 = vunpack.i.h.bf16 %v7371_v31  ;;  %v7372_v50 = vunpack.i.l.bf16 %v7371_v31  ;;  %6879 = vmatpush3.bf16.msra.mxu0 %v7412_v22 }
 0xc13   : > { %6896 = vmatprep.subr.bf16.mxu0 %v7676_v36 }
 0xc14   : > { %v7463_v60 = vpop.eup %7462  ;;  %v1714_v57 = vsel %vm1712_vm6, %v1711_v52, %v7373_v48  ;;  %v1713_v58 = vsel %vm1712_vm6, %v1710_v53, %v7372_v50 }
 0xc15   : > { %v1586_v37 = vmul.f32 %v7463_v60, %v7459_v49  ;;  %v1726_v39 = vpop.permute.xlu0 %1725 }
 0xc17   : > { %v1588_v29 = vpack.c.bf16 %v1586_v37, %v1586_v37 }
 0xc19   : > { %6859 = vmatmul.mubr.msk.bf16.vlgmr.msra.gmra.mrb[40].mxu1 %vm793_vm3, %v1588_v29 }
 0xc1a   : > { %6869 = vmatpush3.bf16.msra.mxu1 %v1724_v30  ;;  %6872 = vmatprep.mubr.msk.bf16.mxu1 %vm7677_vm2, %v7676_v36  ;;  %v6378_v30 = vld [vmem:[%s9071_s5 + $0x7] ss:$0 sm:$0xff] }
 0xc1b   : > { %6870 = vmatprep.subr.bf16.mxu1 %v7676_v36 }
 0xc1e   : > { %6871 = vmatpush3.bf16.msra.mxu1 %v1726_v39  ;;  %v7414_v39 = vld [vmem:[%s9070_s4 + $0x8] sm:$0xff]  }
 0xc1f   : > { %6884 = vmatprep.subr.bf16.mxu1 %v7676_v36 }
 0xce0   : > { %v1680_v32 = vpop.f32.mrb[24].mxu0 }
 0xce1   : > { %v6866_v33 = vpop.f32.mrb[25].mxu0 }
 0xce2   : > { %v1683_v34 = vpop.f32.mrb[26].mxu0 }
 0xce3   : > { %v6867_v38 = vpop.f32.mrb[27].mxu0 }
 0xce4   : > { %v7413_v38 = vld [vmem:[%s9070_s4] sm:$0xff]  }
 0xcec   : > { %v1632_v40 = vpop.f32.mrb[40].mxu1 }
 0xced   : > { %v7374_v41 = vpack.i.bf16 %v1680_v32, %v1632_v40  ;;  %v6860_v42 = vpop.f32.mrb[41].mxu1  ;;  %v7415_v40 = vld [vmem:[%s9070_s4 + $0x10] sm:$0xff]  }
 0xcee   : > { %v1635_v43 = vpop.f32.mrb[42].mxu1  ;;  %v6379_v42 = vld [vmem:[%s9071_s5 + $0x4] ss:$0 sm:$0xff] }
 0xcef   : > { %7375 = vrot.lane.b32.xlu1 %v7374_v41, %s9090_s19  ;;  %v6861_v44 = vpop.f32.mrb[43].mxu1  ;;  %v7416_v41 = vld [vmem:[%s9070_s4 + $0x18] sm:$0xff]   ;;  %s9127_s19 = smov 104  }
 0xd61   : > { %v7376_v51 = vpop.permute.xlu1 %7375 }
 0xd62   : > { %v7378_v54 = vunpack.i.h.bf16 %v7376_v51  ;;  %v7377_v56 = vunpack.i.l.bf16 %v7376_v51 }
 0xd64   : > { %v1717_v59 = vsel %vm1715_vm7, %v1714_v57, %v7378_v54  ;;  %v1716_v0 = vsel %vm1715_vm7, %v1713_v58, %v7377_v56 }
 0xd65   : > { %v1718_v2 = vpack.c.bf16 %v1717_v59, %v1716_v0 }
 0xd67   : > { %6873 = vmatmul.mubr.msk.bf16.vlgmr.msra.gmra.mrb[44].mxu1 %vm687_vm1, %v1718_v2 }
 0xd68   : > { %6892 = vmatprep.mubr.msk.bf16.mxu1 %vm7677_vm2, %v7676_v36  ;;  %6885 = vmatpush3.bf16.msra.mxu1 %v7413_v38 }
 0xd69   : > { %6886 = vmatprep.subr.bf16.mxu1 %v7676_v36 }
 0xd6c   : > { %6887 = vmatpush3.bf16.msra.mxu1 %v7414_v39 }
 0xd6d   : > { %6888 = vmatprep.subr.bf16.mxu1 %v7676_v36 }
 0xd70   : > { %6889 = vmatpush3.bf16.msra.mxu1 %v7415_v40 }
 0xd71   : > { %6890 = vmatprep.subr.bf16.mxu1 %v7676_v36 }
 0xd74   : > { %6891 = vmatpush3.bf16.msra.mxu1 %v7416_v41  ;;  %v6414_v41 = vld [vmem:[%s9071_s5 + $0xb] ss:$0 sm:$0xff] }
 0xd75   : > { %6910 = vmatprep.subr.bf16.mxu1 %v7676_v36 }
 0xe3a   : > { %v1766_v1 = vpop.f32.mrb[44].mxu1 }
 0xe3b   : > { %v1767_v3 = vadd.f32 %v6375_v55, %v1766_v1  ;;  %v6874_v4 = vpop.f32.mrb[45].mxu1 }
 0xe3c   : > { %v1769_v5 = vpop.f32.mrb[46].mxu1 }
 0xe3d   : > { %v8100_v6 = vadd.f32 %v1767_v3, %v7863_v18  ;;  %v1770_v7 = vadd.f32 %v6375_v55, %v1769_v5  ;;  %v6875_v9 = vpop.f32.mrb[47].mxu1 }
 0xe3f   : > { %v8103_v10 = vadd.f32 %v1770_v7, %v7865_v21  ;;  %v1775_v11 = vsel %vm687_vm1, %v8100_v6, 0.0 }
 0xe40   : > { %1776 = vadd.xlane.f32.xlu1 %v1775_v11 }
 0xe41   : > { %v1778_v12 = vsel %vm687_vm1, %v8103_v10, 0.0 }
 0xe42   : > { %1779 = vadd.xlane.f32.xlu0 %v1778_v12  ;;  %v6383_v12 = vld [vmem:[%s9071_s5 + $0x5] ss:$0 sm:$0xff] }
 0xecd   : > { %v1777_v13 = vpop.xlane.xlu1 %1776 }
 0xece   : > { %v1781_v14 = vmul.f32 0.03125, %v1777_v13 }
 0xecf   : > { %v1780_v15 = vpop.xlane.xlu0 %1779 }
 0xed0   : > { %v1783_v16 = vsub.f32 %v8100_v6, %v1781_v14  ;;  %v1782_v18 = vmul.f32 0.03125, %v1780_v15 }
 0xed2   : > { %v1784_v17 = vsub.f32 %v8103_v10, %v1782_v18  ;;  %v1785_v63 = vmul.f32 %v1783_v16, %v1783_v16 }
 0xed4   : > { %v1787_v21 = vsel %vm687_vm1, %v1785_v63, 0.0  ;;  %v1786_v19 = vmul.f32 %v1784_v17, %v1784_v17 }
 0xed5   : > { %1788 = vadd.xlane.f32.xlu0 %v1787_v21 }
 0xed6   : > { %v1790_v20 = vsel %vm687_vm1, %v1786_v19, 0.0 }
 0xed9   : > { %1791 = vadd.xlane.f32.xlu0 %v1790_v20 }
 0xf62   : > { %v1789_v49 = vpop.xlane.xlu0 %1788 }
 0xf63   : > { %v1793_v61 = vmul.f32 0.03125, %v1789_v49 }
 0xf65   : > { %v1795_v62 = vadd.f32 1e-05, %v1793_v61 }
 0xf66   : > { %v1792_v23 = vpop.xlane.xlu0 %1791 }
 0xf67   : > { %7464 = vrsqrt.f32 %v1795_v62  ;;  %v1794_v24 = vmul.f32 0.03125, %v1792_v23 }
 0xf69   : > { %v1796_v25 = vadd.f32 1e-05, %v1794_v24 }
 0xf6b   : > { %7466 = vrsqrt.f32 %v1796_v25 }
 0xf71   : > { %v7465_v26 = vpop.eup %7464 }
 0xf72   : > { %v1799_v27 = vmul.f32 %v7465_v26, %v1783_v16  ;;  %v8172_v26 = vld [vmem:[%s9069_s3 + $0x20] ss:$8 sps:$4 sm:$0xff]  }
 0xf74   : > { %v1805_v37 = vmul.f32 %v6377_v28, %v1799_v27  ;;  %v8178_v27 = vld [vmem:[%s9069_s3 + $0x30] ss:$8 sps:$4 sm:$0xff]  }
 0xf75   : > { %v7467_v60 = vpop.eup %7466 }
 0xf76   : > { %v1800_v29 = vmul.f32 %v7467_v60, %v1784_v17  ;;  %v1811_v32 = vadd.f32 %v6378_v30, %v1805_v37 }
 0xf78   : > { %v1806_v31 = vmul.f32 %v6377_v28, %v1800_v29 }
 0xf7a   : > { %v1812_v33 = vadd.f32 %v6378_v30, %v1806_v31 }
 0xf7c   : > { %v1813_v34 = vpack.c.bf16 %v1812_v33, %v1811_v32  ;;  %v6413_v33 = vld [vmem:[%s9071_s5 + $0xa] ss:$0 sm:$0xff] }
 0xf7e   : > { %6881 = vmatmul.mubr.msk.bf16.vlgmr.msra.gmra.mrb[28].mxu0 %vm687_vm1, %v1813_v34 }
 0xf7f   : > { %6900 = vmatprep.mubr.msk.bf16.mxu0 %vm7677_vm2, %v7676_v36  ;;  %6897 = vmatpush3.bf16.msra.mxu0 %v8172_v26 }
 0xf80   : > { %6898 = vmatprep.subr.bf16.mxu0 %v7676_v36 }
 0xf83   : > { %6899 = vmatpush3.bf16.msra.mxu0 %v8178_v27 }
 0xf84   : > { %6904 = vmatprep.subr.bf16.mxu0 %v7676_v36 }
0x1051   : > { %v1867_v43 = vpop.f32.mrb[28].mxu0 }
0x1052   : > { %v1868_v44 = vadd.f32 %v6379_v42, %v1867_v43  ;;  %v6882_v45 = vpop.f32.mrb[29].mxu0 }
0x1053   : > { %v1870_v46 = vpop.f32.mrb[30].mxu0 }
0x1054   : > { %v1874_v47 = vmul.f32 %v1868_v44, %v1868_v44  ;;  %v1871_v48 = vadd.f32 %v6379_v42, %v1870_v46  ;;  %v6883_v50 = vpop.f32.mrb[31].mxu0  ;;  %v6415_v46 = vld [vmem:[%s9071_s5 + $0x8] ss:$0 sm:$0xff] }
0x1056   : > { %v1876_v51 = vmul.f32 %v1874_v47, %v1868_v44  ;;  %v1875_v52 = vmul.f32 %v1871_v48, %v1871_v48 }
0x1058   : > { %v1878_v53 = vmul.f32 0.044715, %v1876_v51  ;;  %v1877_v54 = vmul.f32 %v1875_v52, %v1871_v48 }
0x105a   : > { %v1880_v56 = vadd.f32 %v1878_v53, %v1868_v44  ;;  %v1879_v57 = vmul.f32 0.044715, %v1877_v54 }
0x105c   : > { %v1882_v58 = vmul.f32 0.7978846, %v1880_v56  ;;  %v1881_v59 = vadd.f32 %v1879_v57, %v1871_v48 }
0x105e   : > { %7468 = vtanh.f32 %v1882_v58  ;;  %v1883_v0 = vmul.f32 0.7978846, %v1881_v59 }
0x1060   : > { %7470 = vtanh.f32 %v1883_v0 }
0x1068   : > { %v7469_v2 = vpop.eup %7468 }
0x1069   : > { %v1886_v55 = vadd.f32 1.0, %v7469_v2 }
0x106a   : > { %v7471_v1 = vpop.eup %7470 }
0x106b   : > { %v1888_v3 = vmul.f32 0.5, %v1886_v55  ;;  %v1887_v4 = vadd.f32 1.0, %v7471_v1 }
0x106d   : > { %v1889_v5 = vmul.f32 0.5, %v1887_v4  ;;  %v1890_v7 = vmul.f32 %v1888_v3, %v1868_v44 }
0x106f   : > { %v1891_v9 = vmul.f32 %v1889_v5, %v1871_v48 }
0x1071   : > { %v1892_v11 = vpack.c.bf16 %v1891_v9, %v1890_v7 }
0x1073   : > { %6893 = vmatmul.mubr.msk.bf16.vlgmr.msra.gmra.mrb[48].mxu1 %vm614_vm0, %v1892_v11 }
0x1074   : > { %6912 = vmatprep.mubr.msk.bf16.mxu1 %vm7677_vm2, %v7676_v36 }
0x1146   : > { %v1958_v13 = vpop.f32.mrb[48].mxu1 }
0x1147   : > { %v1959_v14 = vadd.f32 %v6383_v12, %v1958_v13  ;;  %v6894_v15 = vpop.f32.mrb[49].mxu1 }
0x1148   : > { %v1961_v16 = vpop.f32.mrb[50].mxu1 }
0x1149   : > { %v8156_v18 = vadd.f32 %v1959_v14, %v8100_v6  ;;  %v1962_v17 = vadd.f32 %v6383_v12, %v1961_v16  ;;  %v6895_v63 = vpop.f32.mrb[51].mxu1 }
0x114b   : > { %v8159_v21 = vadd.f32 %v1962_v17, %v8103_v10  ;;  %v1994_v19 = vsel %vm687_vm1, %v8156_v18, 0.0 }
0x114c   : > { %1995 = vadd.xlane.f32.xlu1 %v1994_v19 }
0x114d   : > { %v1997_v20 = vsel %vm687_vm1, %v8159_v21, 0.0 }
0x114e   : > { %1998 = vadd.xlane.f32.xlu0 %v1997_v20 }
0x11d9   : > { %v1996_v35 = vpop.xlane.xlu1 %1995 }
0x11da   : > { %v2000_v22 = vmul.f32 0.03125, %v1996_v35 }
0x11db   : > { %v1999_v49 = vpop.xlane.xlu0 %1998 }
0x11dc   : > { %v2002_v61 = vsub.f32 %v8156_v18, %v2000_v22  ;;  %v2001_v6 = vmul.f32 0.03125, %v1999_v49 }
0x11de   : > { %v2003_v62 = vsub.f32 %v8159_v21, %v2001_v6  ;;  %v2004_v23 = vmul.f32 %v2002_v61, %v2002_v61 }
0x11e0   : > { %v2006_v10 = vsel %vm687_vm1, %v2004_v23, 0.0  ;;  %v2005_v24 = vmul.f32 %v2003_v62, %v2003_v62 }
0x11e1   : > { %2007 = vadd.xlane.f32.xlu1 %v2006_v10 }
0x11e2   : > { %v2009_v25 = vsel %vm687_vm1, %v2005_v24, 0.0 }
0x11e3   : > { %2010 = vadd.xlane.f32.xlu0 %v2009_v25 }
0x126e   : > { %v2008_v28 = vpop.xlane.xlu1 %2007 }
0x126f   : > { %v2012_v60 = vmul.f32 0.03125, %v2008_v28 }
0x1270   : > { %v2011_v37 = vpop.xlane.xlu0 %2010 }
0x1271   : > { %v2014_v29 = vadd.f32 1e-05, %v2012_v60  ;;  %v2013_v30 = vmul.f32 0.03125, %v2011_v37 }
0x1273   : > { %7472 = vrsqrt.f32 %v2014_v29  ;;  %v2015_v31 = vadd.f32 1e-05, %v2013_v30 }
0x1275   : > { %7474 = vrsqrt.f32 %v2015_v31 }
0x127d   : > { %v7473_v32 = vpop.eup %7472 }
0x127e   : > { %v2018_v34 = vmul.f32 %v7473_v32, %v2002_v61 }
0x127f   : > { %v7475_v38 = vpop.eup %7474 }
0x1280   : > { %v2024_v39 = vmul.f32 %v6413_v33, %v2018_v34  ;;  %v2019_v40 = vmul.f32 %v7475_v38, %v2003_v62 }
0x1282   : > { %v2025_v42 = vmul.f32 %v6413_v33, %v2019_v40  ;;  %v2030_v43 = vadd.f32 %v6414_v41, %v2024_v39 }
0x1284   : > { %v2031_v44 = vadd.f32 %v6414_v41, %v2025_v42 }
0x1286   : > { %v2032_v45 = vpack.c.bf16 %v2031_v44, %v2030_v43 }
0x1288   : > { %6901 = vmatmul.mubr.msk.bf16.vlgmr.msra.gmra.mrb[32].mxu0 %vm687_vm1, %v2032_v45 }
0x1289   : > { %6906 = vmatprep.mubr.msk.bf16.mxu0 %vm7677_vm2, %v7676_v36 }
0x135b   : > { %v2086_v47 = vpop.f32.mrb[32].mxu0 }
0x135c   : > { %v2087_v48 = vadd.f32 %v6415_v46, %v2086_v47  ;;  %v6902_v50 = vpop.f32.mrb[33].mxu0 }
0x135d   : > { %v2089_v51 = vpop.f32.mrb[34].mxu0 }
0x135e   : > { %v8195_v52 = vpack.c.bf16 %v2087_v48, %v2087_v48  ;;  %v2090_v53 = vadd.f32 %v6415_v46, %v2089_v51  ;;  %v6903_v54 = vpop.f32.mrb[35].mxu0 }
0x1360   : > { %v8197_v56 = vpack.c.bf16 %v2090_v53, %v2090_v53  ;;  %2096 = vrot.lane.b32.xlu1 %v8195_v52, %s7678_s24 }
0x1362   : > { %2145 = vrot.lane.b32.xlu0 %v8197_v56, %s7678_s24  ;;  %s9122_s24 = smov 56  }
0x13d2   : > { %v2097_v57 = vpop.permute.xlu1 %2096 }
0x13d3   : > { %v2102_v58 = vsel %vm793_vm3, %v2097_v57, 0 }
0x13d4   : > { %6905 = vmatpush3.bf16.xpose.msra.mxu0 %v2102_v58  ;;  %v2146_v59 = vpop.permute.xlu0 %2145 }
0x13d5   : > { %v2151_v0 = vsel %vm793_vm3, %v2146_v59, 0  ;;  %6916 = vmatprep.subr.bf16.mxu0 %v7676_v36 }
0x13d6   : > { %6911 = vmatpush3.bf16.xpose.msra.mxu1 %v2151_v0 }
0x13d7   : > { %6922 = vmatprep.subr.bf16.mxu1 %v7676_v36 }
0x13db   : > { %6907 = vmatmul.mubr.msk.bf16.vlgmr.msra.gmra.mrb[36].mxu0 %vm793_vm3, %v8195_v52 }
0x13dc   : > { %6918 = vmatprep.mubr.msk.bf16.mxu0 %vm7677_vm2, %v7676_v36 }
0x13dd   : > { %6913 = vmatmul.mubr.msk.bf16.vlgmr.msra.gmra.mrb[52].mxu1 %vm793_vm3, %v8197_v56 }
0x13de   : > { %6924 = vmatprep.mubr.msk.bf16.mxu1 %vm7677_vm2, %v7676_v36 }
0x14ae   : > { %v2138_v2 = vpop.f32.mrb[36].mxu0 }
0x14af   : > { %v2193_v55 = vmul.f32 0.35355338, %v2138_v2  ;;  %v6908_v1 = vpop.f32.mrb[37].mxu0 }
0x14b0   : > { %v2141_v3 = vpop.f32.mrb[38].mxu0  ;;  %v2187_v4 = vpop.f32.mrb[52].mxu1 }
0x14b1   : > { %v2194_v5 = vmul.f32 0.35355338, %v2187_v4  ;;  %v6909_v7 = vpop.f32.mrb[39].mxu0  ;;  %v6914_v9 = vpop.f32.mrb[53].mxu1  ;;  %v2195_v11 = vadd.f32 %v2193_v55, %v7927_v8 }
0x14b2   : > { %v2190_v12 = vpop.f32.mrb[54].mxu1 }
0x14b3   : > { %v6915_v13 = vpop.f32.mrb[55].mxu1  ;;  %v2197_v14 = vsel %vm793_vm3, %v2195_v11, -inf  ;;  %v2196_v15 = vadd.f32 %v2194_v5, %v7927_v8 }
0x14b4   : > { %2198 = vmax.xlane.f32.xlu1 %v2197_v14 }
0x14b5   : > { %v2200_v16 = vsel %vm793_vm3, %v2196_v15, -inf }
0x14b6   : > { %2201 = vmax.xlane.f32.xlu0 %v2200_v16 }
0x14c5   : > { %2221 = vrot.lane.b32.xlu1 %v8195_v52, %s7680_s25 }
0x1541   : > { %v2199_v17 = vpop.xlane.xlu1 %2198 }
0x1542   : > { %v2203_v63 = vsub.f32 %v2195_v11, %v2199_v17 }
0x1543   : > { %v2202_v19 = vpop.xlane.xlu0 %2201 }
0x1544   : > { %v2205_v20 = vmul.f32 1.442695, %v2203_v63  ;;  %v2204_v35 = vsub.f32 %v2196_v15, %v2202_v19 }
0x1545   : > { %v2222_v22 = vpop.permute.xlu1 %2221 }
0x1546   : > { %7476 = vpow2.f32 %v2205_v20  ;;  %v2207_v49 = vmul.f32 1.442695, %v2204_v35  ;;  %v2227_v61 = vsel %vm922_vm5, %v2222_v22, 0 }
0x1547   : > { %6917 = vmatpush3.bf16.msra.mxu0 %v2227_v61 }
0x1548   : > { %7478 = vpow2.f32 %v2207_v49  ;;  %6928 = vmatprep.subr.bf16.mxu0 %v7676_v36 }
0x1550   : > { %v7477_v6 = vpop.eup %7476 }
0x1551   : > { %v2209_v62 = vsel %vm793_vm3, %v7477_v6, 0.0 }
0x1552   : > { %v7479_v23 = vpop.eup %7478  ;;  %2210 = vadd.xlane.f32.xlu1 %v2209_v62 }
0x1553   : > { %v2212_v10 = vsel %vm793_vm3, %v7479_v23, 0.0 }
0x1554   : > { %2213 = vadd.xlane.f32.xlu0 %v2212_v10 }
0x1563   : > { %2319 = vrot.lane.b32.xlu1 %v8195_v52, %s7681_s26 }
0x1567   : > { %2369 = vrot.lane.b32.xlu1 %v8197_v56, %s7681_s26  ;;  %s9124_s26 = smov 112  }
0x156a   : > { %2269 = vrot.lane.b32.xlu0 %v8197_v56, %s7680_s25  ;;  %s9123_s25 = smov 80  }
0x156b   : > { %2317 = vrot.lane.b32.xlu1 %v8195_v52, %s7682_s29 }
0x156e   : > { %2367 = vrot.lane.b32.xlu0 %v8197_v56, %s7682_s29  ;;  %s9125_s29 = smov 48  }
0x15df   : > { %v2211_v24 = vpop.xlane.xlu1 %2210 }
0x15e0   : > { %7480 = vrcp.f32 %v2211_v24 }
0x15e1   : > { %v2214_v25 = vpop.xlane.xlu0 %2213 }
0x15e2   : > { %7482 = vrcp.f32 %v2214_v25 }
0x15e3   : > { %v2320_v37 = vpop.permute.xlu1 %2319 }
0x15e4   : > { %v2325_v38 = vsel %vm793_vm3, %v2320_v37, 0 }
0x15e5   : > { %v2270_v28 = vpop.permute.xlu0 %2269 }
0x15e6   : > { %v2275_v60 = vsel %vm922_vm5, %v2270_v28, 0 }
0x15e7   : > { %6923 = vmatpush3.bf16.msra.mxu1 %v2275_v60  ;;  %v2370_v34 = vpop.permute.xlu1 %2369 }
0x15e8   : > { %6934 = vmatprep.subr.bf16.mxu1 %v7676_v36  ;;  %v2375_v40 = vsel %vm793_vm3, %v2370_v34, 0 }
0x15e9   : > { %v2368_v42 = vpop.permute.xlu0 %2367 }
0x15ea   : > { %v7481_v29 = vpop.eup %7480 }
0x15eb   : > { %v2217_v30 = vmul.f32 %v7481_v29, %v7477_v6  ;;  %v2318_v41 = vpop.permute.xlu1 %2317 }
0x15ec   : > { %v7483_v31 = vpop.eup %7482 }
0x15ed   : > { %v2218_v32 = vmul.f32 %v7483_v31, %v7479_v23  ;;  %v2219_v33 = vpack.c.bf16 %v2217_v30, %v2217_v30 }
0x15ef   : > { %6919 = vmatmul.mubr.msk.bf16.vlgmr.msra.gmra.mrb[40].mxu0 %vm793_vm3, %v2219_v33  ;;  %v2220_v39 = vpack.c.bf16 %v2218_v32, %v2218_v32 }
0x15f0   : > { %6929 = vmatpush3.bf16.xpose.msra.mxu0 %v2325_v38  ;;  %6930 = vmatprep.mubr.msk.bf16.mxu0 %vm7677_vm2, %v7676_v36 }
0x15f1   : > { %6925 = vmatmul.mubr.msk.bf16.vlgmr.msra.gmra.mrb[56].mxu1 %vm793_vm3, %v2220_v39  ;;  %6940 = vmatprep.subr.bf16.mxu0 %v7676_v36 }
0x15f2   : > { %6935 = vmatpush3.bf16.xpose.msra.mxu1 %v2375_v40  ;;  %6936 = vmatprep.mubr.msk.bf16.mxu1 %vm7677_vm2, %v7676_v36 }
0x15f3   : > { %6946 = vmatprep.subr.bf16.mxu1 %v7676_v36 }
0x15f7   : > { %6931 = vmatmul.mubr.msk.bf16.vlgmr.msra.gmra.mrb[44].mxu0 %vm793_vm3, %v2318_v41 }
0x15f8   : > { %6942 = vmatprep.mubr.msk.bf16.mxu0 %vm7677_vm2, %v7676_v36 }
0x15f9   : > { %6937 = vmatmul.mubr.msk.bf16.vlgmr.msra.gmra.mrb[60].mxu1 %vm793_vm3, %v2368_v42 }
0x15fa   : > { %6948 = vmatprep.mubr.msk.bf16.mxu1 %vm7677_vm2, %v7676_v36 }
0x16c2   : > { %v8253_v43 = vpop.f32.mrb[40].mxu0 }
0x16c3   : > { %v6920_v44 = vpop.f32.mrb[41].mxu0 }
0x16c4   : > { %v2266_v45 = vpop.f32.mrb[42].mxu0  ;;  %v8255_v46 = vpop.f32.mrb[56].mxu1 }
0x16c5   : > { %v6921_v47 = vpop.f32.mrb[43].mxu0  ;;  %v6926_v48 = vpop.f32.mrb[57].mxu1 }
0x16c6   : > { %v2314_v50 = vpop.f32.mrb[58].mxu1 }
0x16c7   : > { %v6927_v51 = vpop.f32.mrb[59].mxu1 }
0x16ca   : > { %v2361_v53 = vpop.f32.mrb[44].mxu0 }
0x16cb   : > { %v2417_v54 = vmul.f32 0.35355338, %v2361_v53  ;;  %v6932_v57 = vpop.f32.mrb[45].mxu0 }
0x16cc   : > { %v2364_v58 = vpop.f32.mrb[46].mxu0  ;;  %v2411_v59 = vpop.f32.mrb[60].mxu1 }
0x16cd   : > { %v2418_v0 = vmul.f32 0.35355338, %v2411_v59  ;;  %v6933_v2 = vpop.f32.mrb[47].mxu0  ;;  %v6938_v55 = vpop.f32.mrb[61].mxu1  ;;  %v2419_v1 = vadd.f32 %v2417_v54, %v7927_v8 }
0x16ce   : > { %v2414_v3 = vpop.f32.mrb[62].mxu1 }
0x16cf   : > { %v6939_v4 = vpop.f32.mrb[63].mxu1  ;;  %v2421_v5 = vsel %vm793_vm3, %v2419_v1, -inf  ;;  %v2420_v7 = vadd.f32 %v2418_v0, %v7927_v8 }
0x16d0   : > { %2422 = vmax.xlane.f32.xlu1 %v2421_v5 }
0x16d1   : > { %v2424_v9 = vsel %vm793_vm3, %v2420_v7, -inf }
0x16d2   : > { %2425 = vmax.xlane.f32.xlu0 %v2424_v9 }
0x16e1   : > { %2445 = vrot.lane.b32.xlu1 %v8195_v52, %s9122_s24 }
0x16e5   : > { %2543 = vrot.lane.b32.xlu1 %v8195_v52, %s9123_s25 }
0x16e9   : > { %2593 = vrot.lane.b32.xlu1 %v8197_v56, %s9123_s25 }
0x16ed   : > { %2541 = vrot.lane.b32.xlu1 %v8195_v52, %s9124_s26 }
0x175d   : > { %v2423_v11 = vpop.xlane.xlu1 %2422 }
0x175e   : > { %v2427_v12 = vsub.f32 %v2419_v1, %v2423_v11 }
0x175f   : > { %v2426_v13 = vpop.xlane.xlu0 %2425 }
0x1760   : > { %v2429_v14 = vmul.f32 1.442695, %v2427_v12  ;;  %v2428_v15 = vsub.f32 %v2420_v7, %v2426_v13 }
0x1761   : > { %v2446_v16 = vpop.permute.xlu1 %2445 }
0x1762   : > { %7484 = vpow2.f32 %v2429_v14  ;;  %v2431_v17 = vmul.f32 1.442695, %v2428_v15  ;;  %v2451_v63 = vsel %vm922_vm5, %v2446_v16, 0 }
0x1763   : > { %6941 = vmatpush3.bf16.msra.mxu0 %v2451_v63 }
0x1764   : > { %7486 = vpow2.f32 %v2431_v17  ;;  %6952 = vmatprep.subr.bf16.mxu0 %v7676_v36 }
0x1765   : > { %v2544_v10 = vpop.permute.xlu1 %2543 }
0x1766   : > { %v2549_v60 = vsel %vm793_vm3, %v2544_v10, 0 }
0x1769   : > { %v2594_v29 = vpop.permute.xlu1 %2593 }
0x176a   : > { %v2599_v31 = vsel %vm793_vm3, %v2594_v29, 0 }
0x176c   : > { %v7485_v19 = vpop.eup %7484 }
0x176d   : > { %v2433_v20 = vsel %vm793_vm3, %v7485_v19, 0.0  ;;  %v2542_v32 = vpop.permute.xlu1 %2541 }
0x176e   : > { %v7487_v35 = vpop.eup %7486  ;;  %2434 = vadd.xlane.f32.xlu0 %v2433_v20 }
0x176f   : > { %v2436_v22 = vsel %vm793_vm3, %v7487_v35, 0.0 }
0x1772   : > { %2437 = vadd.xlane.f32.xlu0 %v2436_v22 }
0x1788   : > { %2493 = vrot.lane.b32.xlu0 %v8197_v56, %s9122_s24 }
0x178c   : > { %2591 = vrot.lane.b32.xlu0 %v8197_v56, %s9124_s26 }
0x17fb   : > { %v2435_v49 = vpop.xlane.xlu0 %2434 }
0x17fc   : > { %7488 = vrcp.f32 %v2435_v49 }
0x17ff   : > { %v2438_v61 = vpop.xlane.xlu0 %2437 }
0x1800   : > { %7490 = vrcp.f32 %v2438_v61 }
0x1803   : > { %v2494_v6 = vpop.permute.xlu0 %2493 }
0x1804   : > { %v2499_v62 = vsel %vm922_vm5, %v2494_v6, 0 }
0x1805   : > { %6947 = vmatpush3.bf16.msra.mxu1 %v2499_v62 }
0x1806   : > { %v7489_v23 = vpop.eup %7488  ;;  %6958 = vmatprep.subr.bf16.mxu1 %v7676_v36 }
0x1807   : > { %v2441_v24 = vmul.f32 %v7489_v23, %v7485_v19  ;;  %v2592_v33 = vpop.permute.xlu0 %2591 }
0x1809   : > { %v2443_v25 = vpack.c.bf16 %v2441_v24, %v2441_v24 }
0x180a   : > { %v7491_v28 = vpop.eup %7490 }
0x180b   : > { %v2442_v37 = vmul.f32 %v7491_v28, %v7487_v35  ;;  %6943 = vmatmul.mubr.msk.bf16.vlgmr.msra.gmra.mrb[48].mxu0 %vm793_vm3, %v2443_v25 }
0x180c   : > { %6953 = vmatpush3.bf16.xpose.msra.mxu0 %v2549_v60  ;;  %6954 = vmatprep.mubr.msk.bf16.mxu0 %vm7677_vm2, %v7676_v36 }
0x180d   : > { %v2444_v30 = vpack.c.bf16 %v2442_v37, %v2442_v37  ;;  %6964 = vmatprep.subr.bf16.mxu0 %v7676_v36 }
0x180f   : > { %6949 = vmatmul.mubr.msk.bf16.vlgmr.msra.gmra.mrb[64].mxu1 %vm793_vm3, %v2444_v30 }
0x1810   : > { %6959 = vmatpush3.bf16.xpose.msra.mxu1 %v2599_v31  ;;  %6960 = vmatprep.mubr.msk.bf16.mxu1 %vm7677_vm2, %v7676_v36 }
0x1811   : > { %6970 = vmatprep.subr.bf16.mxu1 %v7676_v36 }
0x1813   : > { %6955 = vmatmul.mubr.msk.bf16.vlgmr.msra.gmra.mrb[52].mxu0 %vm793_vm3, %v2542_v32 }
0x1814   : > { %6966 = vmatprep.mubr.msk.bf16.mxu0 %vm7677_vm2, %v7676_v36 }
0x1817   : > { %6961 = vmatmul.mubr.msk.bf16.vlgmr.msra.gmra.mrb[68].mxu1 %vm793_vm3, %v2592_v33 }
0x1818   : > { %6972 = vmatprep.mubr.msk.bf16.mxu1 %vm7677_vm2, %v7676_v36 }
0x18de   : > { %v8295_v34 = vpop.f32.mrb[48].mxu0 }
0x18df   : > { %v6944_v38 = vpop.f32.mrb[49].mxu0 }
0x18e0   : > { %v2490_v39 = vpop.f32.mrb[50].mxu0 }
0x18e1   : > { %v6945_v40 = vpop.f32.mrb[51].mxu0 }
0x18e2   : > { %v8297_v41 = vpop.f32.mrb[64].mxu1 }
0x18e3   : > { %v7379_v42 = vpack.i.bf16 %v8297_v41, %v8295_v34  ;;  %v6950_v44 = vpop.f32.mrb[65].mxu1 }
0x18e4   : > { %v2538_v45 = vpop.f32.mrb[66].mxu1 }
0x18e5   : > { %v6951_v47 = vpop.f32.mrb[67].mxu1 }
0x18e6   : > { %v2585_v48 = vpop.f32.mrb[52].mxu0 }
0x18e7   : > { %v2641_v50 = vmul.f32 0.35355338, %v2585_v48  ;;  %v6956_v51 = vpop.f32.mrb[53].mxu0 }
0x18e8   : > { %v2588_v53 = vpop.f32.mrb[54].mxu0 }
0x18e9   : > { %v6957_v54 = vpop.f32.mrb[55].mxu0  ;;  %v2643_v57 = vadd.f32 %v2641_v50, %v7927_v8 }
0x18ea   : > { %v2635_v58 = vpop.f32.mrb[68].mxu1 }
0x18eb   : > { %v2642_v59 = vmul.f32 0.35355338, %v2635_v58  ;;  %v6962_v0 = vpop.f32.mrb[69].mxu1  ;;  %v2645_v2 = vsel %vm793_vm3, %v2643_v57, -inf }
0x18ec   : > { %2646 = vmax.xlane.f32.xlu1 %v2645_v2  ;;  %v2638_v55 = vpop.f32.mrb[70].mxu1 }
0x18ed   : > { %v6963_v1 = vpop.f32.mrb[71].mxu1  ;;  %v2644_v3 = vadd.f32 %v2642_v59, %v7927_v8 }
0x18ef   : > { %v2648_v4 = vsel %vm793_vm3, %v2644_v3, -inf }
0x18f0   : > { %2649 = vmax.xlane.f32.xlu0 %v2648_v4 }
0x18fd   : > { %2669 = vrot.lane.b32.xlu1 %v8195_v52, %s9125_s29 }
0x1901   : > { %2767 = vrot.lane.b32.xlu1 %v8195_v52, %s9126_s17 }
0x1905   : > { %2817 = vrot.lane.b32.xlu1 %v8197_v56, %s9126_s17 }
0x1909   : > { %2765 = vrot.lane.b32.xlu1 %v8195_v52, %s9127_s19 }
0x1979   : > { %v2647_v5 = vpop.xlane.xlu1 %2646 }
0x197a   : > { %v2651_v7 = vsub.f32 %v2643_v57, %v2647_v5 }
0x197c   : > { %v2653_v9 = vmul.f32 1.442695, %v2651_v7 }
0x197d   : > { %v2670_v11 = vpop.permute.xlu1 %2669  ;;  %v2650_v12 = vpop.xlane.xlu0 %2649 }
0x197e   : > { %7492 = vpow2.f32 %v2653_v9  ;;  %v2675_v13 = vsel %vm922_vm5, %v2670_v11, 0  ;;  %v2652_v14 = vsub.f32 %v2644_v3, %v2650_v12 }
0x197f   : > { %6965 = vmatpush3.bf16.msra.mxu0 %v2675_v13 }
0x1980   : > { %v2655_v15 = vmul.f32 1.442695, %v2652_v14  ;;  %6976 = vmatprep.subr.bf16.mxu0 %v7676_v36 }
0x1981   : > { %v2768_v6 = vpop.permute.xlu1 %2767 }
0x1982   : > { %7494 = vpow2.f32 %v2655_v15  ;;  %v2773_v24 = vsel %vm793_vm3, %v2768_v6, 0 }
0x1985   : > { %v2818_v28 = vpop.permute.xlu1 %2817 }
0x1986   : > { %v2823_v37 = vsel %vm793_vm3, %v2818_v28, 0 }
0x1988   : > { %v7493_v16 = vpop.eup %7492 }
0x1989   : > { %v2657_v17 = vsel %vm793_vm3, %v7493_v16, 0.0  ;;  %v2766_v29 = vpop.permute.xlu1 %2765 }
0x198a   : > { %2658 = vadd.xlane.f32.xlu0 %v2657_v17 }
0x198c   : > { %v7495_v63 = vpop.eup %7494 }
0x198d   : > { %v2660_v19 = vsel %vm793_vm3, %v7495_v63, 0.0 }
0x198e   : > { %2661 = vadd.xlane.f32.xlu0 %v2660_v19 }
0x19a4   : > { %2717 = vrot.lane.b32.xlu0 %v8197_v56, %s9125_s29 }
0x19a8   : > { %2815 = vrot.lane.b32.xlu0 %v8197_v56, %s9127_s19 }
0x1a17   : > { %v2659_v20 = vpop.xlane.xlu0 %2658 }
0x1a18   : > { %7496 = vrcp.f32 %v2659_v20 }
0x1a1b   : > { %v2662_v35 = vpop.xlane.xlu0 %2661 }
0x1a1c   : > { %7498 = vrcp.f32 %v2662_v35 }
0x1a1f   : > { %v2718_v22 = vpop.permute.xlu0 %2717 }
0x1a20   : > { %v2723_v49 = vsel %vm922_vm5, %v2718_v22, 0 }
0x1a21   : > { %6971 = vmatpush3.bf16.msra.mxu1 %v2723_v49 }
0x1a22   : > { %v7497_v61 = vpop.eup %7496  ;;  %6982 = vmatprep.subr.bf16.mxu1 %v7676_v36 }
0x1a23   : > { %v2665_v62 = vmul.f32 %v7497_v61, %v7493_v16  ;;  %v2816_v30 = vpop.permute.xlu0 %2815 }
0x1a25   : > { %v2667_v23 = vpack.c.bf16 %v2665_v62, %v2665_v62 }
0x1a26   : > { %v7499_v10 = vpop.eup %7498 }
0x1a27   : > { %v2666_v25 = vmul.f32 %v7499_v10, %v7495_v63  ;;  %6967 = vmatmul.mubr.msk.bf16.vlgmr.msra.gmra.mrb[56].mxu0 %vm793_vm3, %v2667_v23 }
0x1a28   : > { %6977 = vmatpush3.bf16.xpose.msra.mxu0 %v2773_v24  ;;  %6978 = vmatprep.mubr.msk.bf16.mxu0 %vm7677_vm2, %v7676_v36 }
0x1a29   : > { %v2668_v60 = vpack.c.bf16 %v2666_v25, %v2666_v25  ;;  %6988 = vmatprep.subr.bf16.mxu0 %v7676_v36 }
0x1a2b   : > { %6973 = vmatmul.mubr.msk.bf16.vlgmr.msra.gmra.mrb[72].mxu1 %vm793_vm3, %v2668_v60 }
0x1a2c   : > { %6983 = vmatpush3.bf16.xpose.msra.mxu1 %v2823_v37  ;;  %6984 = vmatprep.mubr.msk.bf16.mxu1 %vm7677_vm2, %v7676_v36 }
0x1a2d   : > { %6994 = vmatprep.subr.bf16.mxu1 %v7676_v36 }
0x1a2f   : > { %6979 = vmatmul.mubr.msk.bf16.vlgmr.msra.gmra.mrb[60].mxu0 %vm793_vm3, %v2766_v29 }
0x1a30   : > { %6990 = vmatprep.mubr.msk.bf16.mxu0 %vm7677_vm2, %v7676_v36 }
0x1a33   : > { %6985 = vmatmul.mubr.msk.bf16.vlgmr.msra.gmra.mrb[76].mxu1 %vm793_vm3, %v2816_v30 }
0x1a34   : > { %6996 = vmatprep.mubr.msk.bf16.mxu1 %vm7677_vm2, %v7676_v36 }
0x1afa   : > { %v2711_v31 = vpop.f32.mrb[56].mxu0 }
0x1afb   : > { %v6968_v32 = vpop.f32.mrb[57].mxu0 }
0x1afc   : > { %v2714_v33 = vpop.f32.mrb[58].mxu0 }
0x1afd   : > { %v6969_v38 = vpop.f32.mrb[59].mxu0 }
0x1afe   : > { %v2759_v39 = vpop.f32.mrb[72].mxu1 }
0x1aff   : > { %v7384_v40 = vpack.i.bf16 %v2759_v39, %v2711_v31  ;;  %v6974_v44 = vpop.f32.mrb[73].mxu1 }
0x1b00   : > { %v2762_v45 = vpop.f32.mrb[74].mxu1 }
0x1b01   : > { %v6975_v47 = vpop.f32.mrb[75].mxu1 }
0x1b02   : > { %v2809_v48 = vpop.f32.mrb[60].mxu0 }
0x1b03   : > { %v2865_v50 = vmul.f32 0.35355338, %v2809_v48  ;;  %v6980_v51 = vpop.f32.mrb[61].mxu0 }
0x1b04   : > { %v2812_v53 = vpop.f32.mrb[62].mxu0  ;;  %v6435_v51 = vld [vmem:[%s9071_s5 + $0x9] ss:$0 sm:$0xff] }
0x1b05   : > { %v6981_v54 = vpop.f32.mrb[63].mxu0  ;;  %v2867_v57 = vadd.f32 %v2865_v50, %v7927_v8 }
0x1b06   : > { %v2859_v58 = vpop.f32.mrb[76].mxu1 }
0x1b07   : > { %v2866_v59 = vmul.f32 0.35355338, %v2859_v58  ;;  %v6986_v0 = vpop.f32.mrb[77].mxu1  ;;  %v2869_v2 = vsel %vm793_vm3, %v2867_v57, -inf }
0x1b08   : > { %2870 = vmax.xlane.f32.xlu1 %v2869_v2  ;;  %v2862_v55 = vpop.f32.mrb[78].mxu1 }
0x1b09   : > { %v6987_v1 = vpop.f32.mrb[79].mxu1  ;;  %v2868_v3 = vadd.f32 %v2866_v59, %v7927_v8 }
0x1b0b   : > { %v2872_v4 = vsel %vm793_vm3, %v2868_v3, -inf }
0x1b0c   : > { %2873 = vmax.xlane.f32.xlu0 %v2872_v4 }
0x1b19   : > { %2893 = vrot.lane.b32.xlu1 %v8195_v52, %s9128_s30 }
0x1b1d   : > { %3024 = vrot.lane.b32.xlu1 %v8172_v26, %s9129_s20 }
0x1b21   : > { %7380 = vrot.lane.b32.xlu1 %v7379_v42, %s9130_s18 }
0x1b25   : > { %7385 = vrot.lane.b32.xlu1 %v7384_v40, %s9131_s23 }
0x1b29   : > { %3026 = vrot.lane.b32.xlu1 %v8178_v27, %s9129_s20 }
0x1b95   : > { %v2871_v8 = vpop.xlane.xlu1 %2870 }
0x1b96   : > { %v2875_v5 = vsub.f32 %v2867_v57, %v2871_v8 }
0x1b98   : > { %v2877_v7 = vmul.f32 1.442695, %v2875_v5 }
0x1b99   : > { %v2894_v9 = vpop.permute.xlu1 %2893  ;;  %v2874_v11 = vpop.xlane.xlu0 %2873 }
0x1b9a   : > { %7500 = vpow2.f32 %v2877_v7  ;;  %v2899_v52 = vsel %vm922_vm5, %v2894_v9, 0  ;;  %v2876_v12 = vsub.f32 %v2868_v3, %v2874_v11 }
0x1b9b   : > { %6989 = vmatpush3.bf16.msra.mxu0 %v2899_v52 }
0x1b9c   : > { %v2879_v26 = vmul.f32 1.442695, %v2876_v12  ;;  %7000 = vmatprep.subr.bf16.mxu0 %v7676_v36 }
0x1b9d   : > { %v3025_v34 = vpop.permute.xlu1 %3024 }
0x1b9e   : > { %7502 = vpow2.f32 %v2879_v26  ;;  %v7419_v26 = vld [vmem:[%s9069_s3 + $0x24] ss:$8 sps:$4 sm:$0xff]  }
0x1ba1   : > { %v7381_v41 = vpop.permute.xlu1 %7380 }
0x1ba2   : > { %v7383_v42 = vunpack.i.h.bf16 %v7381_v41  ;;  %v7382_v13 = vunpack.i.l.bf16 %v7381_v41 }
0x1ba4   : > { %v7501_v14 = vpop.eup %7500  ;;  %v3014_v27 = vsel %vm793_vm3, %v8255_v46, %v7383_v42  ;;  %v3013_v15 = vsel %vm793_vm3, %v8253_v43, %v7382_v13 }
0x1ba5   : > { %v2881_v16 = vsel %vm793_vm3, %v7501_v14, 0.0  ;;  %v7386_v62 = vpop.permute.xlu1 %7385 }
0x1ba6   : > { %2882 = vadd.xlane.f32.xlu0 %v2881_v16  ;;  %v7388_v32 = vunpack.i.h.bf16 %v7386_v62  ;;  %v7387_v33 = vunpack.i.l.bf16 %v7386_v62  ;;  %v7423_v62 = vld [vmem:[%s9070_s4 + $0x30] sm:$0xff]  }
0x1ba8   : > { %v7503_v17 = vpop.eup %7502  ;;  %v3016_v44 = vsel %vm1712_vm6, %v3014_v27, %v7388_v32  ;;  %v3015_v45 = vsel %vm1712_vm6, %v3013_v15, %v7387_v33 }
0x1ba9   : > { %v2884_v63 = vsel %vm793_vm3, %v7503_v17, 0.0  ;;  %v3027_v23 = vpop.permute.xlu1 %3026 }
0x1baa   : > { %2885 = vadd.xlane.f32.xlu0 %v2884_v63  ;;  %v6437_v63 = vld [vmem:[%s9071_s5 + $0xe] ss:$0 sm:$0xff] }
0x1bc0   : > { %2941 = vrot.lane.b32.xlu0 %v8197_v56, %s9128_s30 }
0x1c33   : > { %v2883_v19 = vpop.xlane.xlu0 %2882 }
0x1c34   : > { %7504 = vrcp.f32 %v2883_v19 }
0x1c37   : > { %v2886_v20 = vpop.xlane.xlu0 %2885 }
0x1c38   : > { %7506 = vrcp.f32 %v2886_v20 }
0x1c3b   : > { %v2942_v35 = vpop.permute.xlu0 %2941 }
0x1c3c   : > { %v2947_v46 = vsel %vm922_vm5, %v2942_v35, 0 }
0x1c3d   : > { %6995 = vmatpush3.bf16.msra.mxu1 %v2947_v46  ;;  %v6438_v46 = vld [vmem:[%s9071_s5 + $0xf] ss:$0 sm:$0xff] }
0x1c3e   : > { %v7505_v22 = vpop.eup %7504  ;;  %7008 = vmatprep.subr.bf16.mxu1 %v7676_v36 }
0x1c3f   : > { %v2889_v43 = vmul.f32 %v7505_v22, %v7501_v14 }
0x1c41   : > { %v2891_v49 = vpack.c.bf16 %v2889_v43, %v2889_v43 }
0x1c42   : > { %v7507_v61 = vpop.eup %7506 }
0x1c43   : > { %v2890_v6 = vmul.f32 %v7507_v61, %v7503_v17  ;;  %6991 = vmatmul.mubr.msk.bf16.vlgmr.msra.gmra.mrb[64].mxu0 %vm793_vm3, %v2891_v49 }
0x1c44   : > { %7001 = vmatpush3.bf16.msra.mxu0 %v3025_v34  ;;  %7004 = vmatprep.mubr.msk.bf16.mxu0 %vm7677_vm2, %v7676_v36  ;;  %v7420_v34 = vld [vmem:[%s9069_s3 + $0x34] ss:$8 sps:$4 sm:$0xff]  }
0x1c45   : > { %v2892_v56 = vpack.c.bf16 %v2890_v6, %v2890_v6  ;;  %7002 = vmatprep.subr.bf16.mxu0 %v7676_v36  ;;  %v7421_v6 = vld [vmem:[%s9070_s4 + $0x20] sm:$0xff]  }
0x1c47   : > { %6997 = vmatmul.mubr.msk.bf16.vlgmr.msra.gmra.mrb[80].mxu1 %vm793_vm3, %v2892_v56  ;;  %v7422_v56 = vld [vmem:[%s9070_s4 + $0x28] sm:$0xff]  }
0x1c48   : > { %7012 = vmatprep.mubr.msk.bf16.mxu1 %vm7677_vm2, %v7676_v36  ;;  %7003 = vmatpush3.bf16.msra.mxu0 %v3027_v23  ;;  %v7424_v23 = vld [vmem:[%s9070_s4 + $0x38] sm:$0xff]  }
0x1c49   : > { %7016 = vmatprep.subr.bf16.mxu0 %v7676_v36  ;;  %7009 = vmatpush3.bf16.msra.mxu1 %v7419_v26 }
0x1c4a   : > { %7010 = vmatprep.subr.bf16.mxu1 %v7676_v36 }
0x1c4d   : > { %7011 = vmatpush3.bf16.msra.mxu1 %v7420_v34 }
0x1c4e   : > { %7028 = vmatprep.subr.bf16.mxu1 %v7676_v36 }
0x1d16   : > { %v2935_v10 = vpop.f32.mrb[64].mxu0 }
0x1d17   : > { %v6992_v24 = vpop.f32.mrb[65].mxu0 }
0x1d18   : > { %v2938_v25 = vpop.f32.mrb[66].mxu0 }
0x1d19   : > { %v6993_v28 = vpop.f32.mrb[67].mxu0 }
0x1d1a   : > { %v2983_v60 = vpop.f32.mrb[80].mxu1 }
0x1d1b   : > { %v7389_v37 = vpack.i.bf16 %v2983_v60, %v2935_v10  ;;  %v6998_v29 = vpop.f32.mrb[81].mxu1  ;;  %v6439_v10 = vld [vmem:[%s9071_s5 + $0xc] ss:$0 sm:$0xff] }
0x1d1c   : > { %v2986_v30 = vpop.f32.mrb[82].mxu1 }
0x1d1d   : > { %7390 = vrot.lane.b32.xlu0 %v7389_v37, %s9132_s0  ;;  %v6999_v31 = vpop.f32.mrb[83].mxu1 }
0x1d8f   : > { %v7391_v38 = vpop.permute.xlu0 %7390 }
0x1d90   : > { %v7393_v39 = vunpack.i.h.bf16 %v7391_v38  ;;  %v7392_v40 = vunpack.i.l.bf16 %v7391_v38 }
0x1d92   : > { %v3018_v47 = vsel %vm1715_vm7, %v3016_v44, %v7393_v39  ;;  %v3017_v48 = vsel %vm1715_vm7, %v3015_v45, %v7392_v40 }
0x1d93   : > { %v3019_v50 = vpack.c.bf16 %v3018_v47, %v3017_v48 }
0x1d95   : > { %7005 = vmatmul.mubr.msk.bf16.vlgmr.msra.gmra.mrb[68].mxu0 %vm687_vm1, %v3019_v50 }
0x1d96   : > { %7024 = vmatprep.mubr.msk.bf16.mxu0 %vm7677_vm2, %v7676_v36  ;;  %7017 = vmatpush3.bf16.msra.mxu0 %v7421_v6 }
0x1d97   : > { %7018 = vmatprep.subr.bf16.mxu0 %v7676_v36 }
0x1d9a   : > { %7019 = vmatpush3.bf16.msra.mxu0 %v7422_v56 }
0x1d9b   : > { %7020 = vmatprep.subr.bf16.mxu0 %v7676_v36 }
0x1d9e   : > { %7021 = vmatpush3.bf16.msra.mxu0 %v7423_v62 }
0x1d9f   : > { %7022 = vmatprep.subr.bf16.mxu0 %v7676_v36 }
0x1da2   : > { %7023 = vmatpush3.bf16.msra.mxu0 %v7424_v23 }
0x1e68   : > { %v3067_v53 = vpop.f32.mrb[68].mxu0 }
0x1e69   : > { %v3068_v54 = vadd.f32 %v6435_v51, %v3067_v53  ;;  %v7006_v57 = vpop.f32.mrb[69].mxu0 }
0x1e6a   : > { %v3070_v58 = vpop.f32.mrb[70].mxu0 }
0x1e6b   : > { %v8386_v59 = vadd.f32 %v3068_v54, %v8156_v18  ;;  %v3071_v0 = vadd.f32 %v6435_v51, %v3070_v58  ;;  %v7007_v2 = vpop.f32.mrb[71].mxu0 }
0x1e6d   : > { %v8389_v55 = vadd.f32 %v3071_v0, %v8159_v21  ;;  %v3076_v1 = vsel %vm687_vm1, %v8386_v59, 0.0 }
0x1e6e   : > { %3077 = vadd.xlane.f32.xlu0 %v3076_v1  ;;  %v6443_v1 = vld [vmem:[%s9071_s5 + $0xd] ss:$0 sm:$0xff] }
0x1e6f   : > { %v3079_v3 = vsel %vm687_vm1, %v8389_v55, 0.0 }
0x1e70   : > { %3080 = vadd.xlane.f32.xlu1 %v3079_v3 }
0x1efb   : > { %v3078_v4 = vpop.xlane.xlu0 %3077 }
0x1efc   : > { %v3082_v8 = vmul.f32 0.03125, %v3078_v4 }
0x1efd   : > { %v3081_v5 = vpop.xlane.xlu1 %3080 }
0x1efe   : > { %v3084_v7 = vsub.f32 %v8386_v59, %v3082_v8  ;;  %v3083_v18 = vmul.f32 0.03125, %v3081_v5 }
0x1f00   : > { %v3085_v9 = vsub.f32 %v8389_v55, %v3083_v18  ;;  %v3086_v11 = vmul.f32 %v3084_v7, %v3084_v7 }
0x1f02   : > { %v3088_v21 = vsel %vm687_vm1, %v3086_v11, 0.0  ;;  %v3087_v52 = vmul.f32 %v3085_v9, %v3085_v9 }
0x1f03   : > { %3089 = vadd.xlane.f32.xlu0 %v3088_v21 }
0x1f04   : > { %v3091_v12 = vsel %vm687_vm1, %v3087_v52, 0.0 }
0x1f07   : > { %3092 = vadd.xlane.f32.xlu0 %v3091_v12 }
0x1f90   : > { %v3090_v41 = vpop.xlane.xlu0 %3089 }
0x1f91   : > { %v3094_v42 = vmul.f32 0.03125, %v3090_v41 }
0x1f93   : > { %v3096_v13 = vadd.f32 1e-05, %v3094_v42 }
0x1f94   : > { %v3093_v14 = vpop.xlane.xlu0 %3092 }
0x1f95   : > { %7508 = vrsqrt.f32 %v3096_v13  ;;  %v3095_v27 = vmul.f32 0.03125, %v3093_v14 }
0x1f97   : > { %v3097_v15 = vadd.f32 1e-05, %v3095_v27 }
0x1f99   : > { %7510 = vrsqrt.f32 %v3097_v15 }
0x1f9f   : > { %v7509_v16 = vpop.eup %7508 }
0x1fa0   : > { %v3100_v17 = vmul.f32 %v7509_v16, %v3084_v7 }
0x1fa2   : > { %v3106_v20 = vmul.f32 %v6437_v63, %v3100_v17  ;;  %v7426_v17 = vld [vmem:[%s9073_s7 + $0x8] sm:$0xff]  }
0x1fa3   : > { %v7511_v19 = vpop.eup %7510 }
0x1fa4   : > { %v3101_v35 = vmul.f32 %v7511_v19, %v3085_v9  ;;  %v3112_v43 = vadd.f32 %v6438_v46, %v3106_v20 }
0x1fa6   : > { %v3107_v22 = vmul.f32 %v6437_v63, %v3101_v35 }
0x1fa8   : > { %v3113_v49 = vadd.f32 %v6438_v46, %v3107_v22  ;;  %v6449_v46 = vld [vmem:[%s9072_s6] ss:$0 sm:$0xff] }
0x1faa   : > { %v3114_v61 = vpack.c.bf16 %v3113_v49, %v3112_v43  ;;  %v6450_v49 = vld [vmem:[%s9072_s6 + $0x1] ss:$0 sm:$0xff] }
0x1fac   : > { %7013 = vmatmul.mubr.msk.bf16.vlgmr.msra.gmra.mrb[84].mxu1 %vm687_vm1, %v3114_v61 }
0x1fad   : > { %7032 = vmatprep.mubr.msk.bf16.mxu1 %vm7677_vm2, %v7676_v36 }
0x207f   : > { %v3168_v24 = vpop.f32.mrb[84].mxu1 }
0x2080   : > { %v3169_v25 = vadd.f32 %v6439_v10, %v3168_v24  ;;  %v7014_v28 = vpop.f32.mrb[85].mxu1 }
0x2081   : > { %v3171_v60 = vpop.f32.mrb[86].mxu1 }
0x2082   : > { %v3175_v37 = vmul.f32 %v3169_v25, %v3169_v25  ;;  %v3172_v29 = vadd.f32 %v6439_v10, %v3171_v60  ;;  %v7015_v30 = vpop.f32.mrb[87].mxu1 }
0x2083   : > { %v7427_v30 = vld [vmem:[%s9073_s7 + $0x10] sm:$0xff]  }
0x2084   : > { %v3177_v31 = vmul.f32 %v3175_v37, %v3169_v25  ;;  %v3176_v32 = vmul.f32 %v3172_v29, %v3172_v29 }
0x2086   : > { %v3179_v33 = vmul.f32 0.044715, %v3177_v31  ;;  %v3178_v38 = vmul.f32 %v3176_v32, %v3172_v29  ;;  %v6451_v31 = vld [vmem:[%s9074_s8] ss:$0 sm:$0xff] }
0x2088   : > { %v3181_v39 = vadd.f32 %v3179_v33, %v3169_v25  ;;  %v3180_v40 = vmul.f32 0.044715, %v3178_v38 }
0x208a   : > { %v3183_v44 = vmul.f32 0.7978846, %v3181_v39  ;;  %v3182_v45 = vadd.f32 %v3180_v40, %v3172_v29 }
0x208c   : > { %7512 = vtanh.f32 %v3183_v44  ;;  %v3184_v47 = vmul.f32 0.7978846, %v3182_v45 }
0x208e   : > { %7514 = vtanh.f32 %v3184_v47 }
0x2096   : > { %v7513_v48 = vpop.eup %7512 }
0x2097   : > { %v3187_v50 = vadd.f32 1.0, %v7513_v48 }
0x2098   : > { %v7515_v51 = vpop.eup %7514 }
0x2099   : > { %v3189_v53 = vmul.f32 0.5, %v3187_v50  ;;  %v3188_v54 = vadd.f32 1.0, %v7515_v51 }
0x209b   : > { %v3190_v57 = vmul.f32 0.5, %v3188_v54  ;;  %v3191_v58 = vmul.f32 %v3189_v53, %v3169_v25 }
0x209d   : > { %v3192_v0 = vmul.f32 %v3190_v57, %v3172_v29 }
0x209f   : > { %v3193_v2 = vpack.c.bf16 %v3192_v0, %v3191_v58  ;;  %v6455_v58 = vld [vmem:[%s9074_s8 + $0x1] ss:$0 sm:$0xff] }
0x20a1   : > { %7025 = vmatmul.mubr.msk.bf16.vlgmr.msra.gmra.mrb[72].mxu0 %vm614_vm0, %v3193_v2 }
0x2174   : > { %v3259_v3 = vpop.f32.mrb[72].mxu0 }
0x2175   : > { %v7026_v4 = vpop.f32.mrb[73].mxu0  ;;  %v3260_v5 = vadd.f32 %v6443_v1, %v3259_v3 }
0x2176   : > { %v3262_v8 = vpop.f32.mrb[74].mxu0 }
0x2177   : > { %v3263_v7 = vadd.f32 %v6443_v1, %v3262_v8  ;;  %v7027_v18 = vpop.f32.mrb[75].mxu0  ;;  %v3266_v11 = vadd.f32 %v3260_v5, %v8386_v59  ;;  %v7425_v59 = vld [vmem:[%s9073_s7] sm:$0xff]  }
0x2178   : > { %7029 = vmatpush3.bf16.msra.mxu1 %v7425_v59 }
0x2179   : > { %v3267_v9 = vadd.f32 %v3263_v7, %v8389_v55  ;;  %7030 = vmatprep.subr.bf16.mxu1 %v7676_v36 }
0x217b   : > { %v3272_v21 = vrot.slane %v3267_v9, 7 }
0x217c   : > { %7031 = vmatpush3.bf16.msra.mxu1 %v7426_v17 }
0x217d   : > { %v3274_v52 = vsel %vm3273_vm8, %v3272_v21, %v3266_v11  ;;  %7036 = vmatprep.subr.bf16.mxu1 %v7676_v36 }
0x217e   : > { %v3277_v12 = vsel %vm3276_vm9, %v3274_v52, 0.0 }
0x217f   : > { %3278 = vadd.xlane.f32.xlu0 %v3277_v12 }
0x220c   : > { %v3279_v26 = vpop.xlane.xlu0 %3278 }
0x220d   : > { %v3280_v34 = vmul.f32 0.03125, %v3279_v26 }
0x220f   : > { %v3282_v41 = vrot.slane %v3280_v34, 1  ;;  %v3285_v42 = vsub.f32 %v3266_v11, %v3280_v34 }
0x2211   : > { %v3286_v13 = vsub.f32 %v3267_v9, %v3282_v41  ;;  %v3287_v27 = vmul.f32 %v3285_v42, %v3285_v42  ;;  %v6458_v41 = vld [vmem:[%s9074_s8 + $0x2] ss:$0 sm:$0xff] }
0x2213   : > { %v3288_v14 = vmul.f32 %v3286_v13, %v3286_v13 }
0x2215   : > { %v3291_v15 = vrot.slane %v3288_v14, 7 }
0x2217   : > { %v3292_v16 = vsel %vm3273_vm8, %v3291_v15, %v3287_v27 }
0x2218   : > { %v3294_v55 = vsel %vm3276_vm9, %v3292_v16, 0.0 }
0x2219   : > { %3295 = vadd.xlane.f32.xlu1 %v3294_v55 }
0x22a6   : > { %v3296_v63 = vpop.xlane.xlu1 %3295 }
0x22a7   : > { %v3297_v19 = vmul.f32 0.03125, %v3296_v63 }
0x22a9   : > { %v3298_v20 = vadd.f32 1e-05, %v3297_v19 }
0x22ab   : > { %7516 = vrsqrt.f32 %v3298_v20 }
0x22b5   : > { %v7517_v35 = vpop.eup %7516 }
0x22b6   : > { %v3301_v22 = vrot.slane %v7517_v35, 1  ;;  %v3304_v43 = vmul.f32 %v7517_v35, %v3285_v42 }
0x22b8   : > { %v3305_v61 = vmul.f32 %v3301_v22, %v3286_v13  ;;  %v3310_v6 = vmul.f32 %v6449_v46, %v3304_v43  ;;  %v6459_v13 = vld [vmem:[%s9074_s8 + $0x3] ss:$0 sm:$0xff] }
0x22ba   : > { %v3311_v56 = vmul.f32 %v6449_v46, %v3305_v61  ;;  %v3316_v62 = vadd.f32 %v6450_v49, %v3310_v6 }
0x22bc   : > { %v3317_v23 = vadd.f32 %v6450_v49, %v3311_v56  ;;  %v3328_v10 = vpack.c.bf16 %v3316_v62, %v3316_v62 }
0x22be   : > { %v3329_v24 = vpack.c.bf16 %v3317_v23, %v3317_v23  ;;  %v3336_v28 = vunpack.c.l.b16 %v3328_v10 }
0x22c0   : > { %v3337_v25 = vunpack.c.l.b16 %v3329_v24 }
0x22c2   : > { %v3338_v60 = vrot.slane %v3337_v25, 7 }
0x22c4   : > { %v3339_v37 = vsel %vm3273_vm8, %v3338_v60, %v3336_v28 }
0x22c5   : > { %v3340_v29 = vpack.c.b16 %v3339_v37, %v3339_v37 }
0x22c7   : > { %7033 = vmatmul.mubr.msk.bf16.vlgmr.msra.gmra.mrb[88].mxu1 %vm687_vm1, %v3340_v29 }
0x22c8   : > { %7038 = vmatprep.mubr.msk.bf16.mxu1 %vm7677_vm2, %v7676_v36  ;;  %7037 = vmatpush3.bf16.msra.mxu1 %v7427_v30 }
0x239a   : > { %v3390_v32 = vpop.f32.mrb[88].mxu1 }
0x239b   : > { %v3391_v33 = vadd.f32 %v6451_v31, %v3390_v32  ;;  %v7034_v38 = vpop.f32.mrb[89].mxu1 }
0x239c   : > { %v3393_v39 = vpop.f32.mrb[90].mxu1 }
0x239d   : > { %v3396_v40 = vmul.f32 %v3391_v33, %v3391_v33  ;;  %v7035_v44 = vpop.f32.mrb[91].mxu1 }
0x239f   : > { %v3397_v45 = vmul.f32 %v3396_v40, %v3391_v33 }
0x23a1   : > { %v3398_v47 = vmul.f32 0.044715, %v3397_v45 }
0x23a3   : > { %v3399_v48 = vadd.f32 %v3398_v47, %v3391_v33 }
0x23a5   : > { %v3400_v50 = vmul.f32 0.7978846, %v3399_v48 }
0x23a7   : > { %7518 = vtanh.f32 %v3400_v50 }
0x23b1   : > { %v7519_v36 = vpop.eup %7518 }
0x23b2   : > { %v3402_v51 = vadd.f32 1.0, %v7519_v36 }
0x23b4   : > { %v3403_v53 = vmul.f32 0.5, %v3402_v51 }
0x23b6   : > { %v3404_v54 = vmul.f32 %v3403_v53, %v3391_v33 }
0x23b8   : > { %v3405_v57 = vpack.c.bf16 %v3404_v54, %v3404_v54 }
0x23ba   : > { %7039 = vmatmul.mubr.msk.bf16.vlgmr.msra.gmra.mrb[92].mxu1 %vm1712_vm6, %v3405_v57 }
0x248d   : > { %v3453_v0 = vpop.f32.mrb[92].mxu1 }
0x248e   : > { %v3454_v2 = vadd.f32 %v6455_v58, %v3453_v0  ;;  %v7040_v1 = vpop.f32.mrb[93].mxu1 }
0x248f   : > { %v3456_v3 = vpop.f32.mrb[94].mxu1 }
0x2490   : > { %v3459_v4 = vadd.f32 %v3454_v2, %v3391_v33  ;;  %v7041_v8 = vpop.f32.mrb[95].mxu1 }
0x2492   : > { %v3461_v5 = vsel %vm3460_vm10, %v3459_v4, 0.0 }
0x2493   : > { %3462 = vadd.xlane.f32.xlu0 %v3461_v5 }
0x2520   : > { %v3463_v7 = vpop.xlane.xlu0 %3462 }
0x2521   : > { %v3465_v18 = vmul.f32 0.0625, %v3463_v7 }
0x2523   : > { %v3466_v9 = vsub.f32 %v3459_v4, %v3465_v18 }
0x2525   : > { %v3467_v11 = vmul.f32 %v3466_v9, %v3466_v9 }
0x2527   : > { %v3468_v21 = vsel %vm3460_vm10, %v3467_v11, 0.0 }
0x2528   : > { %3469 = vadd.xlane.f32.xlu1 %v3468_v21 }
0x25b5   : > { %v3470_v52 = vpop.xlane.xlu1 %3469 }
0x25b6   : > { %v3471_v12 = vmul.f32 0.0625, %v3470_v52 }
0x25b8   : > { %v3472_v26 = vadd.f32 1e-05, %v3471_v12 }
0x25ba   : > { %7520 = vrsqrt.f32 %v3472_v26 }
0x25c4   : > { %v7521_v34 = vpop.eup %7520 }
0x25c5   : > { %v3474_v42 = vmul.f32 %v7521_v34, %v3466_v9 }
0x25c7   : > { %v3479_v14 = vmul.f32 %v6458_v41, %v3474_v42 }
0x25c9   : > { %v3484_v27 = vadd.f32 %v6459_v13, %v3479_v14 }
0x25cb   : > { %3485 = vst.msk [vmem:[%s7811_s27] sm:$0x3] %vm3460_vm10, %v3484_v27 }
0x25cc PF: > { %p6460_p5 = scmp.ne.s32.totalorder %s7802_s22, 1 }
0x25cd   : > { %v3490_v15 = vld [vmem:[%s9075_s9] sm:$0xff] (!%p6460_p5)  ;;  %vm3494_vm11 = vcmask (!%p6460_p5), 261120   ;;  %v3491_v16 = vld [vmem:[%s9075_s9 + $0x8] sm:$0xff] (!%p6460_p5)  ;;  %v7694_v56 = vmov (!%p6460_p5), 0.0   ;;  %vm7695_vm12 = vmmov (!%p6460_p5), 0   ;;  %s7696_s23 = smov (!%p6460_p5), 96  }
0x25ce   : > { %3489 = sbr.rel (%p6460_p5) target bundleno = 19049 (0x4a69), region = 92  ;;  %v3495_v55 = vsel (!%p6460_p5), %vm3494_vm11, %v3490_v15, 0.0  ;;  %v3498_v59 = vsel (!%p6460_p5), %vm3494_vm11, %v3491_v16, 0.0  ;;  %v8494_v6 = vld [vmem:[%s9077_s11] ss:$8 sps:$4 sm:$0xff] (!%p6460_p5)   ;;  %7042 = vmatprep.subr.bf16.mxu0 (!%p6460_p5), %v7694_v56  ;;  %7046 = vmatprep.mubr.msk.bf16.mxu0 (!%p6460_p5), %vm7695_vm12, %v7694_v56  ;;  %vm3624_vm13 = vcmask (!%p6460_p5), 64512  }
0x25cf   : > { %3496 = vadd.xlane.f32.xlu0 (!%p6460_p5), %v3495_v55  ;;  %7043 = vmatpush3.bf16.msra.mxu0 (!%p6460_p5), %v8494_v6  ;;  %v8503_v62 = vld [vmem:[%s9077_s11 + $0x10] ss:$8 sps:$4 sm:$0xff] (!%p6460_p5)   ;;  %v6461_v30 = vld [vmem:[%s9076_s10] ss:$0 sm:$0xff] (!%p6460_p5)  ;;  %v6462_v38 = vld [vmem:[%s9076_s10 + $0x1] ss:$0 sm:$0xff] (!%p6460_p5) }
0x25d0   : > { %7050 = vmatprep.subr.bf16.mxu1 (!%p6460_p5), %v7694_v56  ;;  %7044 = vmatprep.subr.bf16.mxu0 (!%p6460_p5), %v7694_v56  ;;  %v6463_v47 = vld [vmem:[%s9079_s13] ss:$0 sm:$0xff] (!%p6460_p5)  ;;  %s7697_s0 = smov (!%p6460_p5), 64   ;;  %s7698_s22 = smov (!%p6460_p5), 88   ;;  %vm3751_vm14 = vcmask (!%p6460_p5), 1043456   ;;  %vm4535_vm15 = vcmask (!%p6460_p5), 130048  }
0x25d1   : > { %7052 = vmatprep.mubr.msk.bf16.mxu1 (!%p6460_p5), %vm7695_vm12, %v7694_v56  ;;  %s7699_s24 = smov (!%p6460_p5), 120   ;;  %s7700_s25 = smov (!%p6460_p5), 56   ;;  %vm4538_vm0 = vcmask (!%p6460_p5), 195584   ;;  %vm4744_vm1 = vcmask (!%p6460_p5), 523264   ;;  %vm6143_vm2 = vcmask (!%p6460_p5), 1041409   ;;  %vm6265_vm3 = vcmask (!%p6460_p5), 123904  }
0x25d2   : > { %s9118_s26 = smov (!%p6460_p5), 80   ;;  %s9116_s29 = smov (!%p6460_p5), 112  }
0x25d3   : > { %3499 = vadd.xlane.f32.xlu0 (!%p6460_p5), %v3498_v59  ;;  %7045 = vmatpush3.bf16.msra.mxu0 (!%p6460_p5), %v8503_v62  ;;  %s9114_s17 = smov (!%p6460_p5), 48   ;;  %s9112_s19 = smov (!%p6460_p5), 72  }
0x25d4   : > { %7056 = vmatprep.subr.bf16.mxu0 (!%p6460_p5), %v7694_v56  ;;  %s9103_s30 = smov (!%p6460_p5), 104   ;;  %s9110_s20 = smov (!%p6460_p5), 40  }
0x25d5   : > { %s9108_s18 = smov 32  }
0x265c   : > { %v3497_v17 = vpop.xlane.xlu0 %3496 }
0x265d   : > { %v3502_v63 = vmul.f32 0.03125, %v3497_v17 }
0x265f   : > { %v3504_v19 = vsub.f32 %v3490_v15, %v3502_v63 }
0x2660   : > { %v3500_v20 = vpop.xlane.xlu0 %3499 }
0x2661   : > { %v3503_v35 = vmul.f32 0.03125, %v3500_v20  ;;  %v3506_v46 = vmul.f32 %v3504_v19, %v3504_v19 }
0x2663   : > { %v3505_v22 = vsub.f32 %v3491_v16, %v3503_v35  ;;  %v3508_v43 = vsel %vm3494_vm11, %v3506_v46, 0.0 }
0x2664   : > { %3509 = vadd.xlane.f32.xlu1 %v3508_v43 }
0x2665   : > { %v3507_v49 = vmul.f32 %v3505_v22, %v3505_v22 }
0x2667   : > { %v3511_v61 = vsel %vm3494_vm11, %v3507_v49, 0.0 }
0x2668   : > { %3512 = vadd.xlane.f32.xlu1 %v3511_v61 }
0x26f1   : > { %v3510_v23 = vpop.xlane.xlu1 %3509 }
0x26f2   : > { %v3514_v10 = vmul.f32 0.03125, %v3510_v23 }
0x26f4   : > { %v3516_v24 = vadd.f32 1e-05, %v3514_v10 }
0x26f5   : > { %v3513_v25 = vpop.xlane.xlu1 %3512 }
0x26f6   : > { %7571 = vrsqrt.f32 %v3516_v24  ;;  %v3515_v28 = vmul.f32 0.03125, %v3513_v25 }
0x26f8   : > { %v3517_v60 = vadd.f32 1e-05, %v3515_v28 }
0x26fa   : > { %7573 = vrsqrt.f32 %v3517_v60 }
0x2700   : > { %v7572_v37 = vpop.eup %7571 }
0x2701   : > { %v3520_v29 = vmul.f32 %v7572_v37, %v3504_v19 }
0x2703   : > { %v3526_v33 = vmul.f32 %v6461_v30, %v3520_v29 }
0x2704   : > { %v7574_v31 = vpop.eup %7573 }
0x2705   : > { %v3521_v32 = vmul.f32 %v7574_v31, %v3505_v22  ;;  %v8517_v40 = vadd.f32 %v6462_v38, %v3526_v33 }
0x2707   : > { %v3527_v39 = vmul.f32 %v6461_v30, %v3521_v32 }
0x2709   : > { %v8519_v44 = vadd.f32 %v6462_v38, %v3527_v39 }
0x270b   : > { %v3558_v45 = vpack.c.bf16 %v8519_v44, %v8517_v40 }
0x270d   : > { %7047 = vmatmul.mubr.msk.bf16.vlgmr.msra.gmra.mrb[0].mxu0 %vm3494_vm11, %v3558_v45 }
0x270e   : > { %7058 = vmatprep.mubr.msk.bf16.mxu0 %vm7695_vm12, %v7694_v56 }
0x27e0   : > { %v3612_v48 = vpop.f32.mrb[0].mxu0 }
0x27e1   : > { %v3613_v50 = vadd.f32 %v6463_v47, %v3612_v48  ;;  %v7048_v36 = vpop.f32.mrb[1].mxu0 }
0x27e2   : > { %v3615_v51 = vpop.f32.mrb[2].mxu0 }
0x27e3   : > { %v8529_v53 = vpack.c.bf16 %v3613_v50, %v3613_v50  ;;  %v3616_v54 = vadd.f32 %v6463_v47, %v3615_v51  ;;  %v7049_v57 = vpop.f32.mrb[3].mxu0 }
0x27e5   : > { %v8531_v58 = vpack.c.bf16 %v3616_v54, %v3616_v54  ;;  %3622 = vrot.lane.b32.xlu0 %v8529_v53, %s7696_s23 }
0x27e7   : > { %3672 = vrot.lane.b32.xlu1 %v8531_v58, %s7696_s23 }
0x2857   : > { %v3623_v0 = vpop.permute.xlu0 %3622 }
0x2858   : > { %v3629_v2 = vsel %vm3624_vm13, %v3623_v0, 0 }
0x2859   : > { %7051 = vmatpush3.bf16.xpose.msra.mxu1 %v3629_v2  ;;  %v3673_v1 = vpop.permute.xlu1 %3672 }
0x285a   : > { %v3678_v3 = vsel %vm3624_vm13, %v3673_v1, 0  ;;  %7062 = vmatprep.subr.bf16.mxu1 %v7694_v56 }
0x285b   : > { %7057 = vmatpush3.bf16.xpose.msra.mxu0 %v3678_v3 }
0x285c   : > { %7068 = vmatprep.subr.bf16.mxu0 %v7694_v56 }
0x2860   : > { %7053 = vmatmul.mubr.msk.bf16.vlgmr.msra.gmra.mrb[0].mxu1 %vm3624_vm13, %v8529_v53 }
0x2861   : > { %7064 = vmatprep.mubr.msk.bf16.mxu1 %vm7695_vm12, %v7694_v56 }
0x2862   : > { %7059 = vmatmul.mubr.msk.bf16.vlgmr.msra.gmra.mrb[4].mxu0 %vm3624_vm13, %v8531_v58 }
0x2863   : > { %7070 = vmatprep.mubr.msk.bf16.mxu0 %vm7695_vm12, %v7694_v56 }
0x2933   : > { %v3665_v4 = vpop.f32.mrb[0].mxu1 }
0x2934   : > { %v3720_v8 = vmul.f32 0.35355338, %v3665_v4  ;;  %v7054_v5 = vpop.f32.mrb[1].mxu1 }
0x2935   : > { %v3668_v7 = vpop.f32.mrb[2].mxu1  ;;  %v3714_v18 = vpop.f32.mrb[4].mxu0 }
0x2936   : > { %v3721_v9 = vmul.f32 0.35355338, %v3714_v18  ;;  %v7055_v11 = vpop.f32.mrb[3].mxu1  ;;  %v7060_v21 = vpop.f32.mrb[5].mxu0  ;;  %v3722_v52 = vsel %vm3624_vm13, %v3720_v8, -inf }
0x2937   : > { %3723 = vmax.xlane.f32.xlu1 %v3722_v52  ;;  %v3717_v12 = vpop.f32.mrb[6].mxu0 }
0x2938   : > { %v7061_v26 = vpop.f32.mrb[7].mxu0  ;;  %v3725_v34 = vsel %vm3624_vm13, %v3721_v9, -inf }
0x2939   : > { %3726 = vmax.xlane.f32.xlu0 %v3725_v34 }
0x2948   : > { %3795 = vrot.lane.b32.xlu1 %v8531_v58, %s7697_s0 }
0x294c   : > { %3845 = vrot.lane.b32.xlu1 %v8529_v53, %s7698_s22 }
0x29c4   : > { %v3724_v41 = vpop.xlane.xlu1 %3723 }
0x29c5   : > { %v3728_v42 = vsub.f32 %v3720_v8, %v3724_v41 }
0x29c6   : > { %v3727_v13 = vpop.xlane.xlu0 %3726 }
0x29c7   : > { %v3730_v14 = vmul.f32 1.442695, %v3728_v42  ;;  %v3729_v27 = vsub.f32 %v3721_v9, %v3727_v13 }
0x29c8   : > { %v3796_v15 = vpop.permute.xlu1 %3795 }
0x29c9   : > { %7575 = vpow2.f32 %v3730_v14  ;;  %v3732_v16 = vmul.f32 1.442695, %v3729_v27  ;;  %v3801_v55 = vsel %vm3751_vm14, %v3796_v15, 0 }
0x29ca   : > { %7069 = vmatpush3.bf16.msra.mxu0 %v3801_v55 }
0x29cb   : > { %7577 = vpow2.f32 %v3732_v16  ;;  %7080 = vmatprep.subr.bf16.mxu0 %v7694_v56 }
0x29cc   : > { %v3846_v20 = vpop.permute.xlu1 %3845 }
0x29cd   : > { %v3851_v28 = vsel %vm3624_vm13, %v3846_v20, 0 }
0x29d3   : > { %v7576_v59 = vpop.eup %7575 }
0x29d4   : > { %v3734_v17 = vsel %vm3624_vm13, %v7576_v59, 0.0 }
0x29d5   : > { %v7578_v63 = vpop.eup %7577  ;;  %3735 = vadd.xlane.f32.xlu0 %v3734_v17 }
0x29d6   : > { %v3737_v19 = vsel %vm3624_vm13, %v7578_v63, 0.0 }
0x29d7   : > { %3738 = vadd.xlane.f32.xlu1 %v3737_v19 }
0x29e8   : > { %3895 = vrot.lane.b32.xlu1 %v8531_v58, %s7698_s22 }
0x29eb   : > { %3746 = vrot.lane.b32.xlu0 %v8529_v53, %s7697_s0 }
0x29ec   : > { %3893 = vrot.lane.b32.xlu1 %v8531_v58, %s7699_s24 }
0x29ef   : > { %3843 = vrot.lane.b32.xlu0 %v8529_v53, %s7699_s24 }
0x2a62   : > { %v3736_v35 = vpop.xlane.xlu0 %3735 }
0x2a63   : > { %7579 = vrcp.f32 %v3736_v35 }
0x2a64   : > { %v3739_v46 = vpop.xlane.xlu1 %3738 }
0x2a65   : > { %7581 = vrcp.f32 %v3739_v46 }
0x2a66   : > { %v3747_v22 = vpop.permute.xlu0 %3746 }
0x2a67   : > { %v3753_v43 = vsel %vm3751_vm14, %v3747_v22, 0 }
0x2a68   : > { %7063 = vmatpush3.bf16.msra.mxu1 %v3753_v43  ;;  %v3896_v25 = vpop.permute.xlu1 %3895 }
0x2a69   : > { %7074 = vmatprep.subr.bf16.mxu1 %v7694_v56  ;;  %v3901_v37 = vsel %vm3624_vm13, %v3896_v25, 0 }
0x2a6a   : > { %v3844_v29 = vpop.permute.xlu0 %3843 }
0x2a6c   : > { %v3894_v30 = vpop.permute.xlu1 %3893 }
0x2a6d   : > { %v7580_v49 = vpop.eup %7579 }
0x2a6e   : > { %v3742_v61 = vmul.f32 %v7580_v49, %v7576_v59 }
0x2a6f   : > { %v7582_v23 = vpop.eup %7581 }
0x2a70   : > { %v3743_v10 = vmul.f32 %v7582_v23, %v7578_v63  ;;  %v3744_v24 = vpack.c.bf16 %v3742_v61, %v3742_v61 }
0x2a72   : > { %7065 = vmatmul.mubr.msk.bf16.vlgmr.msra.gmra.mrb[4].mxu1 %vm3624_vm13, %v3744_v24  ;;  %v3745_v60 = vpack.c.bf16 %v3743_v10, %v3743_v10 }
0x2a73   : > { %7075 = vmatpush3.bf16.xpose.msra.mxu1 %v3851_v28  ;;  %7076 = vmatprep.mubr.msk.bf16.mxu1 %vm7695_vm12, %v7694_v56 }
0x2a74   : > { %7071 = vmatmul.mubr.msk.bf16.vlgmr.msra.gmra.mrb[8].mxu0 %vm3624_vm13, %v3745_v60  ;;  %7086 = vmatprep.subr.bf16.mxu1 %v7694_v56 }
0x2a75   : > { %7081 = vmatpush3.bf16.xpose.msra.mxu0 %v3901_v37  ;;  %7082 = vmatprep.mubr.msk.bf16.mxu0 %vm7695_vm12, %v7694_v56 }
0x2a76   : > { %7092 = vmatprep.subr.bf16.mxu0 %v7694_v56 }
0x2a7a   : > { %7077 = vmatmul.mubr.msk.bf16.vlgmr.msra.gmra.mrb[8].mxu1 %vm3624_vm13, %v3844_v29 }
0x2a7b   : > { %7088 = vmatprep.mubr.msk.bf16.mxu1 %vm7695_vm12, %v7694_v56 }
0x2a7c   : > { %7083 = vmatmul.mubr.msk.bf16.vlgmr.msra.gmra.mrb[12].mxu0 %vm3624_vm13, %v3894_v30 }
0x2a7d   : > { %7094 = vmatprep.mubr.msk.bf16.mxu0 %vm7695_vm12, %v7694_v56 }
0x2b45   : > { %v8585_v31 = vpop.f32.mrb[4].mxu1 }
0x2b46   : > { %v7066_v32 = vpop.f32.mrb[5].mxu1 }
0x2b47   : > { %v3792_v33 = vpop.f32.mrb[6].mxu1  ;;  %v8587_v38 = vpop.f32.mrb[8].mxu0 }
0x2b48   : > { %v7067_v39 = vpop.f32.mrb[7].mxu1  ;;  %v7072_v45 = vpop.f32.mrb[9].mxu0 }
0x2b49   : > { %v3840_v47 = vpop.f32.mrb[10].mxu0 }
0x2b4a   : > { %v7073_v48 = vpop.f32.mrb[11].mxu0 }
0x2b4d   : > { %v3887_v50 = vpop.f32.mrb[8].mxu1 }
0x2b4e   : > { %v3943_v36 = vmul.f32 0.35355338, %v3887_v50  ;;  %v7078_v51 = vpop.f32.mrb[9].mxu1 }
0x2b4f   : > { %v3890_v54 = vpop.f32.mrb[10].mxu1  ;;  %v3937_v57 = vpop.f32.mrb[12].mxu0 }
0x2b50   : > { %v3944_v0 = vmul.f32 0.35355338, %v3937_v57  ;;  %v7079_v2 = vpop.f32.mrb[11].mxu1  ;;  %v7084_v1 = vpop.f32.mrb[13].mxu0  ;;  %v3945_v3 = vsel %vm3624_vm13, %v3943_v36, -inf }
0x2b51   : > { %3946 = vmax.xlane.f32.xlu0 %v3945_v3  ;;  %v3940_v4 = vpop.f32.mrb[14].mxu0 }
0x2b52   : > { %v7085_v8 = vpop.f32.mrb[15].mxu0  ;;  %v3948_v5 = vsel %vm3624_vm13, %v3944_v0, -inf }
0x2b53   : > { %3949 = vmax.xlane.f32.xlu1 %v3948_v5 }
0x2b64   : > { %4017 = vrot.lane.b32.xlu1 %v8531_v58, %s7700_s25 }
0x2b68   : > { %4067 = vrot.lane.b32.xlu1 %v8529_v53, %s9118_s26 }
0x2b6c   : > { %4117 = vrot.lane.b32.xlu1 %v8531_v58, %s9118_s26  ;;  %s9140_s26 = smov 8  }
0x2b70   : > { %4115 = vrot.lane.b32.xlu1 %v8531_v58, %s9116_s29 }
0x2bde   : > { %v3947_v7 = vpop.xlane.xlu0 %3946 }
0x2bdf   : > { %v3951_v18 = vsub.f32 %v3943_v36, %v3947_v7 }
0x2be0   : > { %v3950_v9 = vpop.xlane.xlu1 %3949 }
0x2be1   : > { %v3953_v11 = vmul.f32 1.442695, %v3951_v18  ;;  %v3952_v21 = vsub.f32 %v3944_v0, %v3950_v9 }
0x2be3   : > { %7583 = vpow2.f32 %v3953_v11  ;;  %v3955_v52 = vmul.f32 1.442695, %v3952_v21 }
0x2be4   : > { %v4018_v12 = vpop.permute.xlu1 %4017 }
0x2be5   : > { %7585 = vpow2.f32 %v3955_v52  ;;  %v4023_v26 = vsel %vm3751_vm14, %v4018_v12, 0 }
0x2be6   : > { %7093 = vmatpush3.bf16.msra.mxu0 %v4023_v26 }
0x2be7   : > { %7104 = vmatprep.subr.bf16.mxu0 %v7694_v56 }
0x2be8   : > { %v4068_v59 = vpop.permute.xlu1 %4067 }
0x2be9   : > { %v4073_v46 = vsel %vm3624_vm13, %v4068_v59, 0 }
0x2bec   : > { %v4118_v35 = vpop.permute.xlu1 %4117 }
0x2bed   : > { %v7584_v34 = vpop.eup %7583  ;;  %v4123_v43 = vsel %vm3624_vm13, %v4118_v35, 0 }
0x2bee   : > { %v3957_v41 = vsel %vm3624_vm13, %v7584_v34, 0.0 }
0x2bef   : > { %v7586_v42 = vpop.eup %7585  ;;  %3958 = vadd.xlane.f32.xlu0 %v3957_v41 }
0x2bf0   : > { %v3960_v13 = vsel %vm3624_vm13, %v7586_v42, 0.0  ;;  %v4116_v61 = vpop.permute.xlu1 %4115 }
0x2bf3   : > { %3961 = vadd.xlane.f32.xlu0 %v3960_v13 }
0x2c09   : > { %3969 = vrot.lane.b32.xlu0 %v8529_v53, %s7700_s25 }
0x2c0d   : > { %4065 = vrot.lane.b32.xlu0 %v8529_v53, %s9116_s29 }
0x2c7c   : > { %v3959_v14 = vpop.xlane.xlu0 %3958 }
0x2c7d   : > { %7587 = vrcp.f32 %v3959_v14 }
0x2c80   : > { %v3962_v27 = vpop.xlane.xlu0 %3961 }
0x2c81   : > { %7589 = vrcp.f32 %v3962_v27 }
0x2c84   : > { %v3970_v15 = vpop.permute.xlu0 %3969 }
0x2c85   : > { %v3975_v16 = vsel %vm3751_vm14, %v3970_v15, 0 }
0x2c86   : > { %7087 = vmatpush3.bf16.msra.mxu1 %v3975_v16 }
0x2c87   : > { %v7588_v55 = vpop.eup %7587  ;;  %7098 = vmatprep.subr.bf16.mxu1 %v7694_v56 }
0x2c88   : > { %v3965_v17 = vmul.f32 %v7588_v55, %v7584_v34  ;;  %v4066_v49 = vpop.permute.xlu0 %4065 }
0x2c8a   : > { %v3967_v63 = vpack.c.bf16 %v3965_v17, %v3965_v17 }
0x2c8b   : > { %v7590_v19 = vpop.eup %7589 }
0x2c8c   : > { %v3966_v20 = vmul.f32 %v7590_v19, %v7586_v42  ;;  %7089 = vmatmul.mubr.msk.bf16.vlgmr.msra.gmra.mrb[12].mxu1 %vm3624_vm13, %v3967_v63 }
0x2c8d   : > { %7100 = vmatprep.mubr.msk.bf16.mxu1 %vm7695_vm12, %v7694_v56 }
0x2c8e   : > { %v3968_v22 = vpack.c.bf16 %v3966_v20, %v3966_v20 }
0x2c8f   : > { %7099 = vmatpush3.bf16.xpose.msra.mxu1 %v4073_v46 }
0x2c90   : > { %7095 = vmatmul.mubr.msk.bf16.vlgmr.msra.gmra.mrb[16].mxu0 %vm3624_vm13, %v3968_v22  ;;  %7110 = vmatprep.subr.bf16.mxu1 %v7694_v56 }
0x2c91   : > { %7105 = vmatpush3.bf16.xpose.msra.mxu0 %v4123_v43  ;;  %7106 = vmatprep.mubr.msk.bf16.mxu0 %vm7695_vm12, %v7694_v56 }
0x2c92   : > { %7116 = vmatprep.subr.bf16.mxu0 %v7694_v56 }
0x2c96   : > { %7101 = vmatmul.mubr.msk.bf16.vlgmr.msra.gmra.mrb[16].mxu1 %vm3624_vm13, %v4066_v49 }
0x2c97   : > { %7112 = vmatprep.mubr.msk.bf16.mxu1 %vm7695_vm12, %v7694_v56 }
0x2c98   : > { %7107 = vmatmul.mubr.msk.bf16.vlgmr.msra.gmra.mrb[20].mxu0 %vm3624_vm13, %v4116_v61 }
0x2c99   : > { %7118 = vmatprep.mubr.msk.bf16.mxu0 %vm7695_vm12, %v7694_v56 }
0x2d5f   : > { %v8625_v23 = vpop.f32.mrb[12].mxu1 }
0x2d60   : > { %v7090_v10 = vpop.f32.mrb[13].mxu1 }
0x2d61   : > { %v4014_v24 = vpop.f32.mrb[14].mxu1 }
0x2d62   : > { %v7091_v25 = vpop.f32.mrb[15].mxu1 }
0x2d63   : > { %v8627_v28 = vpop.f32.mrb[16].mxu0 }
0x2d64   : > { %v7522_v60 = vpack.i.bf16 %v8627_v28, %v8625_v23  ;;  %v7096_v37 = vpop.f32.mrb[17].mxu0 }
0x2d65   : > { %v4062_v29 = vpop.f32.mrb[18].mxu0 }
0x2d66   : > { %v7097_v30 = vpop.f32.mrb[19].mxu0 }
0x2d69   : > { %v4109_v32 = vpop.f32.mrb[16].mxu1 }
0x2d6a   : > { %v4165_v33 = vmul.f32 0.35355338, %v4109_v32  ;;  %v7102_v39 = vpop.f32.mrb[17].mxu1 }
0x2d6b   : > { %v4112_v45 = vpop.f32.mrb[18].mxu1  ;;  %v4159_v47 = vpop.f32.mrb[20].mxu0 }
0x2d6c   : > { %v4166_v48 = vmul.f32 0.35355338, %v4159_v47  ;;  %v7103_v50 = vpop.f32.mrb[19].mxu1  ;;  %v7108_v36 = vpop.f32.mrb[21].mxu0  ;;  %v4167_v51 = vsel %vm3624_vm13, %v4165_v33, -inf }
0x2d6d   : > { %4168 = vmax.xlane.f32.xlu0 %v4167_v51  ;;  %v4162_v54 = vpop.f32.mrb[22].mxu0 }
0x2d6e   : > { %v7109_v57 = vpop.f32.mrb[23].mxu0  ;;  %v4170_v0 = vsel %vm3624_vm13, %v4166_v48, -inf }
0x2d6f   : > { %4171 = vmax.xlane.f32.xlu1 %v4170_v0 }
0x2d80   : > { %4239 = vrot.lane.b32.xlu1 %v8531_v58, %s9114_s17 }
0x2d84   : > { %4289 = vrot.lane.b32.xlu1 %v8529_v53, %s9112_s19 }
0x2d88   : > { %4339 = vrot.lane.b32.xlu1 %v8531_v58, %s9112_s19  ;;  %s9142_s19 = smov 24  }
0x2d8c   : > { %4337 = vrot.lane.b32.xlu1 %v8531_v58, %s9103_s30 }
0x2dfa   : > { %v4169_v2 = vpop.xlane.xlu0 %4168 }
0x2dfb   : > { %v4173_v1 = vsub.f32 %v4165_v33, %v4169_v2 }
0x2dfc   : > { %v4172_v3 = vpop.xlane.xlu1 %4171 }
0x2dfd   : > { %v4175_v4 = vmul.f32 1.442695, %v4173_v1  ;;  %v4174_v8 = vsub.f32 %v4166_v48, %v4172_v3 }
0x2dff   : > { %7591 = vpow2.f32 %v4175_v4  ;;  %v4177_v5 = vmul.f32 1.442695, %v4174_v8 }
0x2e00   : > { %v4240_v7 = vpop.permute.xlu1 %4239 }
0x2e01   : > { %7593 = vpow2.f32 %v4177_v5  ;;  %v4245_v18 = vsel %vm3751_vm14, %v4240_v7, 0 }
0x2e02   : > { %7117 = vmatpush3.bf16.msra.mxu0 %v4245_v18 }
0x2e03   : > { %7128 = vmatprep.subr.bf16.mxu0 %v7694_v56 }
0x2e04   : > { %v4290_v13 = vpop.permute.xlu1 %4289 }
0x2e05   : > { %v4295_v59 = vsel %vm3624_vm13, %v4290_v13, 0 }
0x2e08   : > { %v4340_v55 = vpop.permute.xlu1 %4339 }
0x2e09   : > { %v7592_v9 = vpop.eup %7591  ;;  %v4345_v63 = vsel %vm3624_vm13, %v4340_v55, 0 }
0x2e0a   : > { %v4179_v11 = vsel %vm3624_vm13, %v7592_v9, 0.0 }
0x2e0b   : > { %v7594_v21 = vpop.eup %7593  ;;  %4180 = vadd.xlane.f32.xlu0 %v4179_v11 }
0x2e0c   : > { %v4182_v52 = vsel %vm3624_vm13, %v7594_v21, 0.0  ;;  %v4338_v20 = vpop.permute.xlu1 %4337 }
0x2e0f   : > { %4183 = vadd.xlane.f32.xlu0 %v4182_v52 }
0x2e25   : > { %4191 = vrot.lane.b32.xlu0 %v8529_v53, %s9114_s17  ;;  %s9138_s17 = smov 40  }
0x2e29   : > { %4287 = vrot.lane.b32.xlu0 %v8529_v53, %s9103_s30  ;;  %s9105_s30 = smov 8  }
0x2e98   : > { %v4181_v12 = vpop.xlane.xlu0 %4180 }
0x2e99   : > { %7595 = vrcp.f32 %v4181_v12 }
0x2e9c   : > { %v4184_v26 = vpop.xlane.xlu0 %4183 }
0x2e9d   : > { %7597 = vrcp.f32 %v4184_v26 }
0x2ea0   : > { %v4192_v34 = vpop.permute.xlu0 %4191 }
0x2ea1   : > { %v4197_v41 = vsel %vm3751_vm14, %v4192_v34, 0 }
0x2ea2   : > { %7111 = vmatpush3.bf16.msra.mxu1 %v4197_v41 }
0x2ea3   : > { %v7596_v42 = vpop.eup %7595  ;;  %7122 = vmatprep.subr.bf16.mxu1 %v7694_v56 }
0x2ea4   : > { %v4187_v14 = vmul.f32 %v7596_v42, %v7592_v9  ;;  %v4288_v19 = vpop.permute.xlu0 %4287 }
0x2ea6   : > { %v4189_v27 = vpack.c.bf16 %v4187_v14, %v4187_v14 }
0x2ea7   : > { %v7598_v15 = vpop.eup %7597 }
0x2ea8   : > { %v4188_v16 = vmul.f32 %v7598_v15, %v7594_v21  ;;  %7113 = vmatmul.mubr.msk.bf16.vlgmr.msra.gmra.mrb[20].mxu1 %vm3624_vm13, %v4189_v27 }
0x2ea9   : > { %7124 = vmatprep.mubr.msk.bf16.mxu1 %vm7695_vm12, %v7694_v56 }
0x2eaa   : > { %v4190_v17 = vpack.c.bf16 %v4188_v16, %v4188_v16 }
0x2eab   : > { %7123 = vmatpush3.bf16.xpose.msra.mxu1 %v4295_v59 }
0x2eac   : > { %7119 = vmatmul.mubr.msk.bf16.vlgmr.msra.gmra.mrb[24].mxu0 %vm3624_vm13, %v4190_v17  ;;  %7134 = vmatprep.subr.bf16.mxu1 %v7694_v56 }
0x2ead   : > { %7129 = vmatpush3.bf16.xpose.msra.mxu0 %v4345_v63  ;;  %7130 = vmatprep.mubr.msk.bf16.mxu0 %vm7695_vm12, %v7694_v56 }
0x2eae   : > { %7140 = vmatprep.subr.bf16.mxu0 %v7694_v56 }
0x2eb2   : > { %7125 = vmatmul.mubr.msk.bf16.vlgmr.msra.gmra.mrb[24].mxu1 %vm3624_vm13, %v4288_v19 }
0x2eb3   : > { %7136 = vmatprep.mubr.msk.bf16.mxu1 %vm7695_vm12, %v7694_v56 }
0x2eb4   : > { %7131 = vmatmul.mubr.msk.bf16.vlgmr.msra.gmra.mrb[28].mxu0 %vm3624_vm13, %v4338_v20 }
0x2eb5   : > { %7142 = vmatprep.mubr.msk.bf16.mxu0 %vm7695_vm12, %v7694_v56 }
0x2f7b   : > { %v4233_v35 = vpop.f32.mrb[20].mxu1 }
0x2f7c   : > { %v7114_v46 = vpop.f32.mrb[21].mxu1 }
0x2f7d   : > { %v4236_v22 = vpop.f32.mrb[22].mxu1 }
0x2f7e   : > { %v7115_v43 = vpop.f32.mrb[23].mxu1 }
0x2f7f   : > { %v4281_v49 = vpop.f32.mrb[24].mxu0 }
0x2f80   : > { %v7527_v61 = vpack.i.bf16 %v4281_v49, %v4233_v35  ;;  %v7120_v10 = vpop.f32.mrb[25].mxu0 }
0x2f81   : > { %v4284_v24 = vpop.f32.mrb[26].mxu0 }
0x2f82   : > { %v7121_v25 = vpop.f32.mrb[27].mxu0 }
0x2f85   : > { %v4331_v37 = vpop.f32.mrb[24].mxu1 }
0x2f86   : > { %v4387_v29 = vmul.f32 0.35355338, %v4331_v37  ;;  %v7126_v30 = vpop.f32.mrb[25].mxu1 }
0x2f87   : > { %v4334_v32 = vpop.f32.mrb[26].mxu1  ;;  %v4381_v33 = vpop.f32.mrb[28].mxu0 }
0x2f88   : > { %v4388_v39 = vmul.f32 0.35355338, %v4381_v33  ;;  %v7127_v45 = vpop.f32.mrb[27].mxu1  ;;  %v7132_v47 = vpop.f32.mrb[29].mxu0  ;;  %v4389_v48 = vsel %vm3624_vm13, %v4387_v29, -inf }
0x2f89   : > { %4390 = vmax.xlane.f32.xlu0 %v4389_v48  ;;  %v4384_v50 = vpop.f32.mrb[30].mxu0 }
0x2f8a   : > { %v7133_v36 = vpop.f32.mrb[31].mxu0  ;;  %v4392_v51 = vsel %vm3624_vm13, %v4388_v39, -inf }
0x2f8b   : > { %4393 = vmax.xlane.f32.xlu1 %v4392_v51 }
0x2f9c   : > { %4461 = vrot.lane.b32.xlu1 %v8531_v58, %s9110_s20 }
0x2fa0   : > { %4546 = vrot.lane.b32.xlu1 %v8494_v6, %s9108_s18 }
0x2fa4   : > { %7523 = vrot.lane.b32.xlu1 %v7522_v60, %s9105_s30  ;;  %s9106_s30 = smov 16  }
0x3016   : > { %v4391_v54 = vpop.xlane.xlu0 %4390 }
0x3017   : > { %v4395_v57 = vsub.f32 %v4387_v29, %v4391_v54 }
0x3018   : > { %v4394_v0 = vpop.xlane.xlu1 %4393 }
0x3019   : > { %v4397_v2 = vmul.f32 1.442695, %v4395_v57  ;;  %v4396_v1 = vsub.f32 %v4388_v39, %v4394_v0 }
0x301b   : > { %7599 = vpow2.f32 %v4397_v2  ;;  %v4399_v3 = vmul.f32 1.442695, %v4396_v1 }
0x301c   : > { %v4462_v4 = vpop.permute.xlu1 %4461 }
0x301d   : > { %7601 = vpow2.f32 %v4399_v3  ;;  %v4467_v58 = vsel %vm3751_vm14, %v4462_v4, 0 }
0x301e   : > { %7141 = vmatpush3.bf16.msra.mxu0 %v4467_v58 }
0x301f   : > { %7154 = vmatprep.subr.bf16.mxu0 %v7694_v56 }
0x3020   : > { %v4547_v52 = vpop.permute.xlu1 %4546 }
0x3024   : > { %v7524_v17 = vpop.permute.xlu1 %7523 }
0x3025   : > { %v7600_v6 = vpop.eup %7599  ;;  %v7526_v63 = vunpack.i.h.bf16 %v7524_v17  ;;  %v7525_v19 = vunpack.i.l.bf16 %v7524_v17 }
0x3026   : > { %v4401_v8 = vsel %vm3624_vm13, %v7600_v6, 0.0 }
0x3027   : > { %v7602_v5 = vpop.eup %7601  ;;  %4402 = vadd.xlane.f32.xlu0 %v4401_v8  ;;  %v4534_v22 = vsel %vm3624_vm13, %v8587_v38, %v7526_v63  ;;  %v4533_v43 = vsel %vm3624_vm13, %v8585_v31, %v7525_v19  ;;  %v6483_v31 = vld [vmem:[%s9079_s13 + $0x1] ss:$0 sm:$0xff] }
0x3028   : > { %v4404_v23 = vsel %vm3624_vm13, %v7602_v5, 0.0 }
0x302b   : > { %4405 = vadd.xlane.f32.xlu0 %v4404_v23 }
0x3041   : > { %4413 = vrot.lane.b32.xlu0 %v8529_v53, %s9110_s20 }
0x3045   : > { %7528 = vrot.lane.b32.xlu0 %v7527_v61, %s9106_s30  ;;  %s9107_s30 = smov 24  }
0x3049   : > { %4548 = vrot.lane.b32.xlu0 %v8503_v62, %s9108_s18  ;;  %s9141_s18 = smov 16  }
0x30b4   : > { %v4403_v28 = vpop.xlane.xlu0 %4402 }
0x30b5   : > { %7603 = vrcp.f32 %v4403_v28 }
0x30b8   : > { %v4406_v60 = vpop.xlane.xlu0 %4405 }
0x30b9   : > { %7605 = vrcp.f32 %v4406_v60 }
0x30bc   : > { %v4414_v7 = vpop.permute.xlu0 %4413 }
0x30bd   : > { %v4419_v18 = vsel %vm3751_vm14, %v4414_v7, 0 }
0x30be   : > { %7135 = vmatpush3.bf16.msra.mxu1 %v4419_v18 }
0x30bf   : > { %v7604_v9 = vpop.eup %7603  ;;  %7146 = vmatprep.subr.bf16.mxu1 %v7694_v56 }
0x30c0   : > { %v4409_v11 = vmul.f32 %v7604_v9, %v7600_v6  ;;  %v7529_v26 = vpop.permute.xlu0 %7528  ;;  %v7555_v6 = vld [vmem:[%s9077_s11 + $0x14] ss:$8 sps:$4 sm:$0xff]  }
0x30c1   : > { %v7531_v20 = vunpack.i.h.bf16 %v7529_v26  ;;  %v7530_v35 = vunpack.i.l.bf16 %v7529_v26 }
0x30c2   : > { %v4411_v21 = vpack.c.bf16 %v4409_v11, %v4409_v11  ;;  %v6485_v11 = vld [vmem:[%s9079_s13 + $0x2] ss:$0 sm:$0xff] }
0x30c3   : > { %v7606_v53 = vpop.eup %7605  ;;  %v4536_v10 = vsel %vm4535_vm15, %v4533_v43, %v7530_v35  ;;  %v4537_v24 = vsel %vm4535_vm15, %v4534_v22, %v7531_v20 }
0x30c4   : > { %v4410_v12 = vmul.f32 %v7606_v53, %v7602_v5  ;;  %7137 = vmatmul.mubr.msk.bf16.vlgmr.msra.gmra.mrb[28].mxu1 %vm3624_vm13, %v4411_v21  ;;  %v4549_v34 = vpop.permute.xlu0 %4548 }
0x30c5   : > { %7147 = vmatpush3.bf16.msra.mxu1 %v4547_v52  ;;  %7150 = vmatprep.mubr.msk.bf16.mxu1 %vm7695_vm12, %v7694_v56 }
0x30c6   : > { %v4412_v62 = vpack.c.bf16 %v4410_v12, %v4410_v12  ;;  %7148 = vmatprep.subr.bf16.mxu1 %v7694_v56  ;;  %v6486_v12 = vld [vmem:[%s9079_s13 + $0x3] ss:$0 sm:$0xff] }
0x30c8   : > { %7143 = vmatmul.mubr.msk.bf16.vlgmr.msra.gmra.mrb[32].mxu0 %vm3624_vm13, %v4412_v62 }
0x30c9   : > { %7158 = vmatprep.mubr.msk.bf16.mxu0 %vm7695_vm12, %v7694_v56  ;;  %7149 = vmatpush3.bf16.msra.mxu1 %v4549_v34 }
0x30ca   : > { %7162 = vmatprep.subr.bf16.mxu1 %v7694_v56 }
0x3197   : > { %v4455_v41 = vpop.f32.mrb[28].mxu1 }
0x3198   : > { %v7138_v42 = vpop.f32.mrb[29].mxu1 }
0x3199   : > { %v4458_v13 = vpop.f32.mrb[30].mxu1  ;;  %v7556_v42 = vld [vmem:[%s9078_s12] sm:$0xff]  }
0x319a   : > { %v7139_v14 = vpop.f32.mrb[31].mxu1  ;;  %v7557_v13 = vld [vmem:[%s9078_s12 + $0x8] sm:$0xff]  }
0x319b   : > { %v4503_v27 = vpop.f32.mrb[32].mxu0  ;;  %v7558_v14 = vld [vmem:[%s9078_s12 + $0x10] sm:$0xff]  }
0x319c   : > { %v7532_v15 = vpack.i.bf16 %v4503_v27, %v4455_v41  ;;  %v7144_v16 = vpop.f32.mrb[33].mxu0  ;;  %v7559_v27 = vld [vmem:[%s9078_s12 + $0x18] sm:$0xff]  }
0x319d   : > { %v4506_v55 = vpop.f32.mrb[34].mxu0 }
0x319e   : > { %7533 = vrot.lane.b32.xlu1 %v7532_v15, %s9107_s30  ;;  %v7145_v59 = vpop.f32.mrb[35].mxu0  ;;  %v6487_v15 = vld [vmem:[%s9079_s13 + $0x4] ss:$0 sm:$0xff]  ;;  %s9139_s30 = smov 32  }
0x3210   : > { %v7534_v46 = vpop.permute.xlu1 %7533 }
0x3211   : > { %v7536_v49 = vunpack.i.h.bf16 %v7534_v46  ;;  %v7535_v61 = vunpack.i.l.bf16 %v7534_v46 }
0x3213   : > { %v4540_v25 = vsel %vm4538_vm0, %v4537_v24, %v7536_v49  ;;  %v4539_v37 = vsel %vm4538_vm0, %v4536_v10, %v7535_v61 }
0x3214   : > { %v4541_v29 = vpack.c.bf16 %v4540_v25, %v4539_v37 }
0x3216   : > { %7151 = vmatmul.mubr.msk.bf16.vlgmr.msra.gmra.mrb[32].mxu1 %vm3494_vm11, %v4541_v29 }
0x3217   : > { %7170 = vmatprep.mubr.msk.bf16.mxu1 %vm7695_vm12, %v7694_v56  ;;  %7163 = vmatpush3.bf16.msra.mxu1 %v7556_v42 }
0x3218   : > { %7164 = vmatprep.subr.bf16.mxu1 %v7694_v56 }
0x321b   : > { %7165 = vmatpush3.bf16.msra.mxu1 %v7557_v13 }
0x321c   : > { %7166 = vmatprep.subr.bf16.mxu1 %v7694_v56 }
0x321f   : > { %7167 = vmatpush3.bf16.msra.mxu1 %v7558_v14  ;;  %v6498_v14 = vld [vmem:[%s9079_s13 + $0x7] ss:$0 sm:$0xff] }
0x3220   : > { %7168 = vmatprep.subr.bf16.mxu1 %v7694_v56 }
0x3223   : > { %7169 = vmatpush3.bf16.msra.mxu1 %v7559_v27 }
0x3224   : > { %7188 = vmatprep.subr.bf16.mxu1 %v7694_v56 }
0x32e9   : > { %v4589_v38 = vpop.f32.mrb[32].mxu1 }
0x32ea   : > { %v4590_v30 = vadd.f32 %v6483_v31, %v4589_v38  ;;  %v7152_v32 = vpop.f32.mrb[33].mxu1 }
0x32eb   : > { %v4592_v33 = vpop.f32.mrb[34].mxu1 }
0x32ec   : > { %v4593_v39 = vadd.f32 %v6483_v31, %v4592_v33  ;;  %v7153_v45 = vpop.f32.mrb[35].mxu1  ;;  %v4596_v47 = vadd.f32 %v4590_v30, %v8517_v40 }
0x32ee   : > { %v4598_v48 = vsel %vm3494_vm11, %v4596_v47, 0.0  ;;  %v4597_v50 = vadd.f32 %v4593_v39, %v8519_v44  ;;  %v7554_v44 = vld [vmem:[%s9077_s11 + $0x4] ss:$8 sps:$4 sm:$0xff]  }
0x32ef   : > { %4599 = vadd.xlane.f32.xlu1 %v4598_v48  ;;  %7155 = vmatpush3.bf16.msra.mxu0 %v7554_v44 }
0x32f0   : > { %v4601_v36 = vsel %vm3494_vm11, %v4597_v50, 0.0  ;;  %7156 = vmatprep.subr.bf16.mxu0 %v7694_v56 }
0x32f1   : > { %4602 = vadd.xlane.f32.xlu0 %v4601_v36 }
0x32f3   : > { %7157 = vmatpush3.bf16.msra.mxu0 %v7555_v6 }
0x32f4   : > { %7174 = vmatprep.subr.bf16.mxu0 %v7694_v56 }
0x337c   : > { %v4600_v51 = vpop.xlane.xlu1 %4599 }
0x337d   : > { %v4604_v54 = vmul.f32 0.03125, %v4600_v51 }
0x337e   : > { %v4603_v57 = vpop.xlane.xlu0 %4602 }
0x337f   : > { %v4606_v0 = vsub.f32 %v4596_v47, %v4604_v54  ;;  %v4605_v2 = vmul.f32 0.03125, %v4603_v57  ;;  %v6491_v47 = vld [vmem:[%s9079_s13 + $0x5] ss:$0 sm:$0xff] }
0x3381   : > { %v4607_v1 = vsub.f32 %v4597_v50, %v4605_v2  ;;  %v4608_v3 = vmul.f32 %v4606_v0, %v4606_v0 }
0x3383   : > { %v4610_v4 = vsel %vm3494_vm11, %v4608_v3, 0.0  ;;  %v4609_v58 = vmul.f32 %v4607_v1, %v4607_v1 }
0x3384   : > { %4611 = vadd.xlane.f32.xlu0 %v4610_v4 }
0x3385   : > { %v4613_v40 = vsel %vm3494_vm11, %v4609_v58, 0.0 }
0x3388   : > { %4614 = vadd.xlane.f32.xlu0 %v4613_v40 }
0x3411   : > { %v4612_v8 = vpop.xlane.xlu0 %4611 }
0x3412   : > { %v4616_v5 = vmul.f32 0.03125, %v4612_v8 }
0x3414   : > { %v4618_v23 = vadd.f32 1e-05, %v4616_v5 }
0x3415   : > { %v4615_v28 = vpop.xlane.xlu0 %4614 }
0x3416   : > { %7607 = vrsqrt.f32 %v4618_v23  ;;  %v4617_v60 = vmul.f32 0.03125, %v4615_v28 }
0x3418   : > { %v4619_v7 = vadd.f32 1e-05, %v4617_v60 }
0x341a   : > { %7609 = vrsqrt.f32 %v4619_v7  ;;  %v8766_v7 = vld [vmem:[%s9077_s11 + $0x20] ss:$8 sps:$4 sm:$0xff]  }
0x3420   : > { %v7608_v18 = vpop.eup %7607 }
0x3421   : > { %v4622_v9 = vmul.f32 %v7608_v18, %v4606_v0  ;;  %v8772_v18 = vld [vmem:[%s9077_s11 + $0x30] ss:$8 sps:$4 sm:$0xff]  }
0x3423   : > { %v4628_v53 = vmul.f32 %v6485_v11, %v4622_v9 }
0x3424   : > { %v7610_v21 = vpop.eup %7609 }
0x3425   : > { %v4623_v52 = vmul.f32 %v7610_v21, %v4607_v1  ;;  %v4634_v26 = vadd.f32 %v6486_v12, %v4628_v53 }
0x3427   : > { %v4629_v62 = vmul.f32 %v6485_v11, %v4623_v52 }
0x3429   : > { %v4635_v34 = vadd.f32 %v6486_v12, %v4629_v62 }
0x342b   : > { %v4636_v41 = vpack.c.bf16 %v4635_v34, %v4634_v26 }
0x342d   : > { %7159 = vmatmul.mubr.msk.bf16.vlgmr.msra.gmra.mrb[36].mxu0 %vm3494_vm11, %v4636_v41 }
0x342e   : > { %7178 = vmatprep.mubr.msk.bf16.mxu0 %vm7695_vm12, %v7694_v56  ;;  %7175 = vmatpush3.bf16.msra.mxu0 %v8766_v7 }
0x342f   : > { %7176 = vmatprep.subr.bf16.mxu0 %v7694_v56 }
0x3432   : > { %7177 = vmatpush3.bf16.msra.mxu0 %v8772_v18 }
0x3433   : > { %7182 = vmatprep.subr.bf16.mxu0 %v7694_v56 }
0x3500   : > { %v4690_v16 = vpop.f32.mrb[36].mxu0 }
0x3501   : > { %v4691_v55 = vadd.f32 %v6487_v15, %v4690_v16  ;;  %v7160_v59 = vpop.f32.mrb[37].mxu0 }
0x3502   : > { %v4693_v17 = vpop.f32.mrb[38].mxu0  ;;  %v6523_v59 = vld [vmem:[%s9079_s13 + $0x8] ss:$0 sm:$0xff] }
0x3503   : > { %v4697_v63 = vmul.f32 %v4691_v55, %v4691_v55  ;;  %v4694_v19 = vadd.f32 %v6487_v15, %v4693_v17  ;;  %v7161_v20 = vpop.f32.mrb[39].mxu0 }
0x3505   : > { %v4699_v35 = vmul.f32 %v4697_v63, %v4691_v55  ;;  %v4698_v46 = vmul.f32 %v4694_v19, %v4694_v19 }
0x3507   : > { %v4701_v22 = vmul.f32 0.044715, %v4699_v35  ;;  %v4700_v43 = vmul.f32 %v4698_v46, %v4694_v19 }
0x3509   : > { %v4703_v49 = vadd.f32 %v4701_v22, %v4691_v55  ;;  %v4702_v61 = vmul.f32 0.044715, %v4700_v43 }
0x350b   : > { %v4705_v10 = vmul.f32 0.7978846, %v4703_v49  ;;  %v4704_v24 = vadd.f32 %v4702_v61, %v4694_v19 }
0x350d   : > { %7611 = vtanh.f32 %v4705_v10  ;;  %v4706_v25 = vmul.f32 0.7978846, %v4704_v24 }
0x350f   : > { %7613 = vtanh.f32 %v4706_v25 }
0x3517   : > { %v7612_v37 = vpop.eup %7611 }
0x3518   : > { %v4709_v29 = vadd.f32 1.0, %v7612_v37 }
0x3519   : > { %v7614_v31 = vpop.eup %7613 }
0x351a   : > { %v4711_v38 = vmul.f32 0.5, %v4709_v29  ;;  %v4710_v30 = vadd.f32 1.0, %v7614_v31 }
0x351c   : > { %v4712_v32 = vmul.f32 0.5, %v4710_v30  ;;  %v4713_v33 = vmul.f32 %v4711_v38, %v4691_v55 }
0x351e   : > { %v4714_v39 = vmul.f32 %v4712_v32, %v4694_v19 }
0x3520   : > { %v4715_v45 = vpack.c.bf16 %v4714_v39, %v4713_v33 }
0x3522   : > { %7171 = vmatmul.mubr.msk.bf16.vlgmr.msra.gmra.mrb[36].mxu1 %vm4744_vm1, %v4715_v45 }
0x3523   : > { %7190 = vmatprep.mubr.msk.bf16.mxu1 %vm7695_vm12, %v7694_v56 }
0x35f5   : > { %v4782_v48 = vpop.f32.mrb[36].mxu1 }
0x35f6   : > { %v4783_v50 = vadd.f32 %v6491_v47, %v4782_v48  ;;  %v7172_v36 = vpop.f32.mrb[37].mxu1 }
0x35f7   : > { %v4785_v51 = vpop.f32.mrb[38].mxu1 }
0x35f8   : > { %v4786_v54 = vadd.f32 %v6491_v47, %v4785_v51  ;;  %v7173_v57 = vpop.f32.mrb[39].mxu1  ;;  %v4789_v0 = vadd.f32 %v4783_v50, %v4634_v26  ;;  %v6497_v26 = vld [vmem:[%s9079_s13 + $0x6] ss:$0 sm:$0xff] }
0x35fa   : > { %v4791_v2 = vsel %vm3494_vm11, %v4789_v0, 0.0  ;;  %v4790_v1 = vadd.f32 %v4786_v54, %v4635_v34 }
0x35fb   : > { %4792 = vadd.xlane.f32.xlu1 %v4791_v2 }
0x35fc   : > { %v4794_v3 = vsel %vm3494_vm11, %v4790_v1, 0.0 }
0x35fd   : > { %4795 = vadd.xlane.f32.xlu0 %v4794_v3 }
0x3688   : > { %v4793_v4 = vpop.xlane.xlu1 %4792 }
0x3689   : > { %v4797_v58 = vmul.f32 0.03125, %v4793_v4 }
0x368a   : > { %v4796_v40 = vpop.xlane.xlu0 %4795 }
0x368b   : > { %v4799_v44 = vsub.f32 %v4789_v0, %v4797_v58  ;;  %v4798_v6 = vmul.f32 0.03125, %v4796_v40 }
0x368d   : > { %v4800_v8 = vsub.f32 %v4790_v1, %v4798_v6  ;;  %v4801_v5 = vmul.f32 %v4799_v44, %v4799_v44 }
0x368f   : > { %v4803_v23 = vsel %vm3494_vm11, %v4801_v5, 0.0  ;;  %v4802_v28 = vmul.f32 %v4800_v8, %v4800_v8 }
0x3690   : > { %4804 = vadd.xlane.f32.xlu1 %v4803_v23 }
0x3691   : > { %v4806_v60 = vsel %vm3494_vm11, %v4802_v28, 0.0 }
0x3692   : > { %4807 = vadd.xlane.f32.xlu0 %v4806_v60 }
0x371d   : > { %v4805_v9 = vpop.xlane.xlu1 %4804 }
0x371e   : > { %v4809_v11 = vmul.f32 0.03125, %v4805_v9 }
0x371f   : > { %v4808_v21 = vpop.xlane.xlu0 %4807 }
0x3720   : > { %v4811_v53 = vadd.f32 1e-05, %v4809_v11  ;;  %v4810_v52 = vmul.f32 0.03125, %v4808_v21 }
0x3722   : > { %7615 = vrsqrt.f32 %v4811_v53  ;;  %v4812_v12 = vadd.f32 1e-05, %v4810_v52 }
0x3724   : > { %7617 = vrsqrt.f32 %v4812_v12 }
0x372c   : > { %v7616_v62 = vpop.eup %7615 }
0x372d   : > { %v4815_v34 = vmul.f32 %v7616_v62, %v4799_v44 }
0x372e   : > { %v7618_v41 = vpop.eup %7617 }
0x372f   : > { %v4821_v42 = vmul.f32 %v6497_v26, %v4815_v34  ;;  %v4816_v13 = vmul.f32 %v7618_v41, %v4800_v8 }
0x3731   : > { %v4822_v27 = vmul.f32 %v6497_v26, %v4816_v13  ;;  %v8783_v15 = vadd.f32 %v6498_v14, %v4821_v42 }
0x3733   : > { %v8785_v16 = vadd.f32 %v6498_v14, %v4822_v27 }
0x3735   : > { %v4856_v55 = vpack.c.bf16 %v8785_v16, %v8783_v15 }
0x3737   : > { %7179 = vmatmul.mubr.msk.bf16.vlgmr.msra.gmra.mrb[40].mxu0 %vm3494_vm11, %v4856_v55 }
0x3738   : > { %7184 = vmatprep.mubr.msk.bf16.mxu0 %vm7695_vm12, %v7694_v56 }
0x380a   : > { %v4910_v17 = vpop.f32.mrb[40].mxu0 }
0x380b   : > { %v4911_v63 = vadd.f32 %v6523_v59, %v4910_v17  ;;  %v7180_v19 = vpop.f32.mrb[41].mxu0 }
0x380c   : > { %v4913_v20 = vpop.f32.mrb[42].mxu0 }
0x380d   : > { %v8795_v35 = vpack.c.bf16 %v4911_v63, %v4911_v63  ;;  %v4914_v46 = vadd.f32 %v6523_v59, %v4913_v20  ;;  %v7181_v22 = vpop.f32.mrb[43].mxu0 }
0x380f   : > { %v8797_v43 = vpack.c.bf16 %v4914_v46, %v4914_v46  ;;  %4920 = vrot.lane.b32.xlu1 %v8795_v35, %s7696_s23 }
0x3811   : > { %4969 = vrot.lane.b32.xlu0 %v8797_v43, %s7696_s23  ;;  %s9133_s23 = smov 80  }
0x3881   : > { %v4921_v49 = vpop.permute.xlu1 %4920 }
0x3882   : > { %v4926_v61 = vsel %vm3624_vm13, %v4921_v49, 0 }
0x3883   : > { %7183 = vmatpush3.bf16.xpose.msra.mxu0 %v4926_v61  ;;  %v4970_v10 = vpop.permute.xlu0 %4969 }
0x3884   : > { %v4975_v24 = vsel %vm3624_vm13, %v4970_v10, 0  ;;  %7194 = vmatprep.subr.bf16.mxu0 %v7694_v56 }
0x3885   : > { %7189 = vmatpush3.bf16.xpose.msra.mxu1 %v4975_v24 }
0x3886   : > { %7200 = vmatprep.subr.bf16.mxu1 %v7694_v56 }
0x388a   : > { %7185 = vmatmul.mubr.msk.bf16.vlgmr.msra.gmra.mrb[44].mxu0 %vm3624_vm13, %v8795_v35 }
0x388b   : > { %7196 = vmatprep.mubr.msk.bf16.mxu0 %vm7695_vm12, %v7694_v56 }
0x388c   : > { %7191 = vmatmul.mubr.msk.bf16.vlgmr.msra.gmra.mrb[40].mxu1 %vm3624_vm13, %v8797_v43 }
0x388d   : > { %7202 = vmatprep.mubr.msk.bf16.mxu1 %vm7695_vm12, %v7694_v56 }
0x395d   : > { %v4962_v25 = vpop.f32.mrb[44].mxu0 }
0x395e   : > { %v5017_v37 = vmul.f32 0.35355338, %v4962_v25  ;;  %v7186_v29 = vpop.f32.mrb[45].mxu0 }
0x395f   : > { %v4965_v31 = vpop.f32.mrb[46].mxu0  ;;  %v5011_v38 = vpop.f32.mrb[40].mxu1 }
0x3960   : > { %v5018_v30 = vmul.f32 0.35355338, %v5011_v38  ;;  %v7187_v32 = vpop.f32.mrb[47].mxu0  ;;  %v7192_v33 = vpop.f32.mrb[41].mxu1  ;;  %v5019_v39 = vsel %vm3624_vm13, %v5017_v37, -inf }
0x3961   : > { %v5014_v45 = vpop.f32.mrb[42].mxu1  ;;  %5020 = vmax.xlane.f32.xlu1 %v5019_v39 }
0x3962   : > { %v7193_v47 = vpop.f32.mrb[43].mxu1  ;;  %v5022_v48 = vsel %vm3624_vm13, %v5018_v30, -inf }
0x3963   : > { %5023 = vmax.xlane.f32.xlu0 %v5022_v48 }
0x3972   : > { %5043 = vrot.lane.b32.xlu1 %v8795_v35, %s7697_s0 }
0x39ee   : > { %v5021_v50 = vpop.xlane.xlu1 %5020 }
0x39ef   : > { %v5025_v36 = vsub.f32 %v5017_v37, %v5021_v50 }
0x39f0   : > { %v5024_v51 = vpop.xlane.xlu0 %5023 }
0x39f1   : > { %v5027_v54 = vmul.f32 1.442695, %v5025_v36  ;;  %v5026_v57 = vsub.f32 %v5018_v30, %v5024_v51 }
0x39f2   : > { %v5044_v0 = vpop.permute.xlu1 %5043 }
0x39f3   : > { %7619 = vpow2.f32 %v5027_v54  ;;  %v5029_v2 = vmul.f32 1.442695, %v5026_v57  ;;  %v5049_v1 = vsel %vm3751_vm14, %v5044_v0, 0 }
0x39f4   : > { %7195 = vmatpush3.bf16.msra.mxu0 %v5049_v1 }
0x39f5   : > { %7621 = vpow2.f32 %v5029_v2  ;;  %7206 = vmatprep.subr.bf16.mxu0 %v7694_v56 }
0x39fd   : > { %v7620_v3 = vpop.eup %7619 }
0x39fe   : > { %v5031_v4 = vsel %vm3624_vm13, %v7620_v3, 0.0 }
0x39ff   : > { %v7622_v58 = vpop.eup %7621  ;;  %5032 = vadd.xlane.f32.xlu1 %v5031_v4 }
0x3a00   : > { %v5034_v40 = vsel %vm3624_vm13, %v7622_v58, 0.0 }
0x3a01   : > { %5035 = vadd.xlane.f32.xlu0 %v5034_v40 }
0x3a10   : > { %5141 = vrot.lane.b32.xlu1 %v8795_v35, %s7698_s22 }
0x3a14   : > { %5191 = vrot.lane.b32.xlu1 %v8797_v43, %s7698_s22  ;;  %s9135_s22 = smov 48  }
0x3a17   : > { %5091 = vrot.lane.b32.xlu0 %v8797_v43, %s7697_s0  ;;  %s9134_s0 = smov 112  }
0x3a18   : > { %5139 = vrot.lane.b32.xlu1 %v8795_v35, %s7699_s24 }
0x3a1b   : > { %5189 = vrot.lane.b32.xlu0 %v8797_v43, %s7699_s24  ;;  %s9136_s24 = smov 72  }
0x3a8c   : > { %v5033_v44 = vpop.xlane.xlu1 %5032 }
0x3a8d   : > { %7623 = vrcp.f32 %v5033_v44 }
0x3a8e   : > { %v5036_v6 = vpop.xlane.xlu0 %5035 }
0x3a8f   : > { %7625 = vrcp.f32 %v5036_v6 }
0x3a90   : > { %v5142_v23 = vpop.permute.xlu1 %5141 }
0x3a91   : > { %v5147_v52 = vsel %vm3624_vm13, %v5142_v23, 0 }
0x3a92   : > { %v5092_v8 = vpop.permute.xlu0 %5091 }
0x3a93   : > { %v5097_v5 = vsel %vm3751_vm14, %v5092_v8, 0 }
0x3a94   : > { %7201 = vmatpush3.bf16.msra.mxu1 %v5097_v5  ;;  %v5192_v53 = vpop.permute.xlu1 %5191 }
0x3a95   : > { %7212 = vmatprep.subr.bf16.mxu1 %v7694_v56  ;;  %v5197_v62 = vsel %vm3624_vm13, %v5192_v53, 0 }
0x3a96   : > { %v5190_v34 = vpop.permute.xlu0 %5189 }
0x3a97   : > { %v7624_v28 = vpop.eup %7623 }
0x3a98   : > { %v5039_v60 = vmul.f32 %v7624_v28, %v7620_v3  ;;  %v5140_v26 = vpop.permute.xlu1 %5139 }
0x3a99   : > { %v7626_v9 = vpop.eup %7625 }
0x3a9a   : > { %v5040_v11 = vmul.f32 %v7626_v9, %v7622_v58  ;;  %v5041_v21 = vpack.c.bf16 %v5039_v60, %v5039_v60 }
0x3a9c   : > { %7197 = vmatmul.mubr.msk.bf16.vlgmr.msra.gmra.mrb[48].mxu0 %vm3624_vm13, %v5041_v21  ;;  %v5042_v12 = vpack.c.bf16 %v5040_v11, %v5040_v11 }
0x3a9d   : > { %7207 = vmatpush3.bf16.xpose.msra.mxu0 %v5147_v52  ;;  %7208 = vmatprep.mubr.msk.bf16.mxu0 %vm7695_vm12, %v7694_v56 }
0x3a9e   : > { %7203 = vmatmul.mubr.msk.bf16.vlgmr.msra.gmra.mrb[44].mxu1 %vm3624_vm13, %v5042_v12  ;;  %7218 = vmatprep.subr.bf16.mxu0 %v7694_v56 }
0x3a9f   : > { %7213 = vmatpush3.bf16.xpose.msra.mxu1 %v5197_v62  ;;  %7214 = vmatprep.mubr.msk.bf16.mxu1 %vm7695_vm12, %v7694_v56 }
0x3aa0   : > { %7224 = vmatprep.subr.bf16.mxu1 %v7694_v56 }
0x3aa4   : > { %7209 = vmatmul.mubr.msk.bf16.vlgmr.msra.gmra.mrb[52].mxu0 %vm3624_vm13, %v5140_v26 }
0x3aa5   : > { %7220 = vmatprep.mubr.msk.bf16.mxu0 %vm7695_vm12, %v7694_v56 }
0x3aa6   : > { %7215 = vmatmul.mubr.msk.bf16.vlgmr.msra.gmra.mrb[48].mxu1 %vm3624_vm13, %v5190_v34 }
0x3aa7   : > { %7226 = vmatprep.mubr.msk.bf16.mxu1 %vm7695_vm12, %v7694_v56 }
0x3b6f   : > { %v8851_v41 = vpop.f32.mrb[48].mxu0 }
0x3b70   : > { %v7198_v42 = vpop.f32.mrb[49].mxu0 }
0x3b71   : > { %v5088_v13 = vpop.f32.mrb[50].mxu0  ;;  %v8853_v14 = vpop.f32.mrb[44].mxu1 }
0x3b72   : > { %v7199_v27 = vpop.f32.mrb[51].mxu0  ;;  %v7204_v55 = vpop.f32.mrb[45].mxu1 }
0x3b73   : > { %v5136_v59 = vpop.f32.mrb[46].mxu1 }
0x3b74   : > { %v7205_v17 = vpop.f32.mrb[47].mxu1 }
0x3b77   : > { %v5183_v63 = vpop.f32.mrb[52].mxu0 }
0x3b78   : > { %v5239_v19 = vmul.f32 0.35355338, %v5183_v63  ;;  %v7210_v20 = vpop.f32.mrb[53].mxu0 }
0x3b79   : > { %v5186_v46 = vpop.f32.mrb[54].mxu0  ;;  %v5233_v22 = vpop.f32.mrb[48].mxu1 }
0x3b7a   : > { %v5240_v49 = vmul.f32 0.35355338, %v5233_v22  ;;  %v7211_v61 = vpop.f32.mrb[55].mxu0  ;;  %v7216_v10 = vpop.f32.mrb[49].mxu1  ;;  %v5241_v24 = vsel %vm3624_vm13, %v5239_v19, -inf }
0x3b7b   : > { %v5236_v25 = vpop.f32.mrb[50].mxu1  ;;  %5242 = vmax.xlane.f32.xlu1 %v5241_v24 }
0x3b7c   : > { %v7217_v37 = vpop.f32.mrb[51].mxu1  ;;  %v5244_v29 = vsel %vm3624_vm13, %v5240_v49, -inf }
0x3b7d   : > { %5245 = vmax.xlane.f32.xlu0 %v5244_v29 }
0x3b8c   : > { %5265 = vrot.lane.b32.xlu1 %v8795_v35, %s7700_s25 }
0x3b90   : > { %5363 = vrot.lane.b32.xlu1 %v8795_v35, %s9133_s23 }
0x3b94   : > { %5413 = vrot.lane.b32.xlu1 %v8797_v43, %s9133_s23 }
0x3b98   : > { %5361 = vrot.lane.b32.xlu1 %v8795_v35, %s9134_s0 }
0x3c08   : > { %v5243_v31 = vpop.xlane.xlu1 %5242 }
0x3c09   : > { %v5247_v38 = vsub.f32 %v5239_v19, %v5243_v31 }
0x3c0a   : > { %v5246_v30 = vpop.xlane.xlu0 %5245 }
0x3c0b   : > { %v5249_v32 = vmul.f32 1.442695, %v5247_v38  ;;  %v5248_v33 = vsub.f32 %v5240_v49, %v5246_v30 }
0x3c0c   : > { %v5266_v39 = vpop.permute.xlu1 %5265 }
0x3c0d   : > { %7627 = vpow2.f32 %v5249_v32  ;;  %v5251_v45 = vmul.f32 1.442695, %v5248_v33  ;;  %v5271_v47 = vsel %vm3751_vm14, %v5266_v39, 0 }
0x3c0e   : > { %7219 = vmatpush3.bf16.msra.mxu0 %v5271_v47 }
0x3c0f   : > { %7629 = vpow2.f32 %v5251_v45  ;;  %7230 = vmatprep.subr.bf16.mxu0 %v7694_v56 }
0x3c10   : > { %v5364_v3 = vpop.permute.xlu1 %5363 }
0x3c11   : > { %v5369_v44 = vsel %vm3624_vm13, %v5364_v3, 0 }
0x3c14   : > { %v5414_v8 = vpop.permute.xlu1 %5413 }
0x3c15   : > { %v5419_v23 = vsel %vm3624_vm13, %v5414_v8, 0 }
0x3c17   : > { %v7628_v48 = vpop.eup %7627 }
0x3c18   : > { %v5253_v50 = vsel %vm3624_vm13, %v7628_v48, 0.0  ;;  %v5362_v28 = vpop.permute.xlu1 %5361 }
0x3c19   : > { %v7630_v36 = vpop.eup %7629  ;;  %5254 = vadd.xlane.f32.xlu0 %v5253_v50 }
0x3c1a   : > { %v5256_v51 = vsel %vm3624_vm13, %v7630_v36, 0.0 }
0x3c1d   : > { %5257 = vadd.xlane.f32.xlu0 %v5256_v51 }
0x3c33   : > { %5313 = vrot.lane.b32.xlu0 %v8797_v43, %s7700_s25  ;;  %s9137_s25 = smov 104  }
0x3c37   : > { %5411 = vrot.lane.b32.xlu0 %v8797_v43, %s9134_s0 }
0x3ca6   : > { %v5255_v54 = vpop.xlane.xlu0 %5254 }
0x3ca7   : > { %7631 = vrcp.f32 %v5255_v54 }
0x3caa   : > { %v5258_v57 = vpop.xlane.xlu0 %5257 }
0x3cab   : > { %7633 = vrcp.f32 %v5258_v57 }
0x3cae   : > { %v5314_v0 = vpop.permute.xlu0 %5313 }
0x3caf   : > { %v5319_v2 = vsel %vm3751_vm14, %v5314_v0, 0 }
0x3cb0   : > { %7225 = vmatpush3.bf16.msra.mxu1 %v5319_v2 }
0x3cb1   : > { %v7632_v1 = vpop.eup %7631  ;;  %7236 = vmatprep.subr.bf16.mxu1 %v7694_v56 }
0x3cb2   : > { %v5261_v4 = vmul.f32 %v7632_v1, %v7628_v48  ;;  %v5412_v60 = vpop.permute.xlu0 %5411 }
0x3cb4   : > { %v5263_v58 = vpack.c.bf16 %v5261_v4, %v5261_v4 }
0x3cb5   : > { %v7634_v40 = vpop.eup %7633 }
0x3cb6   : > { %v5262_v6 = vmul.f32 %v7634_v40, %v7630_v36  ;;  %7221 = vmatmul.mubr.msk.bf16.vlgmr.msra.gmra.mrb[56].mxu0 %vm3624_vm13, %v5263_v58 }
0x3cb7   : > { %7231 = vmatpush3.bf16.xpose.msra.mxu0 %v5369_v44  ;;  %7232 = vmatprep.mubr.msk.bf16.mxu0 %vm7695_vm12, %v7694_v56 }
0x3cb8   : > { %v5264_v5 = vpack.c.bf16 %v5262_v6, %v5262_v6  ;;  %7242 = vmatprep.subr.bf16.mxu0 %v7694_v56 }
0x3cba   : > { %7227 = vmatmul.mubr.msk.bf16.vlgmr.msra.gmra.mrb[52].mxu1 %vm3624_vm13, %v5264_v5 }
0x3cbb   : > { %7237 = vmatpush3.bf16.xpose.msra.mxu1 %v5419_v23  ;;  %7238 = vmatprep.mubr.msk.bf16.mxu1 %vm7695_vm12, %v7694_v56 }
0x3cbc   : > { %7248 = vmatprep.subr.bf16.mxu1 %v7694_v56 }
0x3cbe   : > { %7233 = vmatmul.mubr.msk.bf16.vlgmr.msra.gmra.mrb[60].mxu0 %vm3624_vm13, %v5362_v28 }
0x3cbf   : > { %7244 = vmatprep.mubr.msk.bf16.mxu0 %vm7695_vm12, %v7694_v56 }
0x3cc2   : > { %7239 = vmatmul.mubr.msk.bf16.vlgmr.msra.gmra.mrb[56].mxu1 %vm3624_vm13, %v5412_v60 }
0x3cc3   : > { %7250 = vmatprep.mubr.msk.bf16.mxu1 %vm7695_vm12, %v7694_v56 }
0x3d89   : > { %v8891_v9 = vpop.f32.mrb[56].mxu0 }
0x3d8a   : > { %v7222_v11 = vpop.f32.mrb[57].mxu0 }
0x3d8b   : > { %v5310_v21 = vpop.f32.mrb[58].mxu0 }
0x3d8c   : > { %v7223_v53 = vpop.f32.mrb[59].mxu0 }
0x3d8d   : > { %v8893_v52 = vpop.f32.mrb[52].mxu1 }
0x3d8e   : > { %v7537_v12 = vpack.i.bf16 %v8893_v52, %v8891_v9  ;;  %v7228_v62 = vpop.f32.mrb[53].mxu1 }
0x3d8f   : > { %v5358_v26 = vpop.f32.mrb[54].mxu1 }
0x3d90   : > { %v7229_v34 = vpop.f32.mrb[55].mxu1 }
0x3d91   : > { %v5405_v42 = vpop.f32.mrb[60].mxu0 }
0x3d92   : > { %v5461_v13 = vmul.f32 0.35355338, %v5405_v42  ;;  %v7234_v27 = vpop.f32.mrb[61].mxu0 }
0x3d93   : > { %v5408_v55 = vpop.f32.mrb[62].mxu0 }
0x3d94   : > { %v7235_v59 = vpop.f32.mrb[63].mxu0  ;;  %v5463_v17 = vsel %vm3624_vm13, %v5461_v13, -inf }
0x3d95   : > { %v5455_v63 = vpop.f32.mrb[56].mxu1  ;;  %5464 = vmax.xlane.f32.xlu1 %v5463_v17 }
0x3d96   : > { %v5462_v19 = vmul.f32 0.35355338, %v5455_v63  ;;  %v7240_v20 = vpop.f32.mrb[57].mxu1 }
0x3d97   : > { %v5458_v46 = vpop.f32.mrb[58].mxu1 }
0x3d98   : > { %v7241_v22 = vpop.f32.mrb[59].mxu1  ;;  %v5466_v49 = vsel %vm3624_vm13, %v5462_v19, -inf }
0x3d99   : > { %5467 = vmax.xlane.f32.xlu0 %v5466_v49 }
0x3da6   : > { %5487 = vrot.lane.b32.xlu1 %v8795_v35, %s9135_s22 }
0x3daa   : > { %5585 = vrot.lane.b32.xlu1 %v8795_v35, %s9136_s24 }
0x3dae   : > { %5635 = vrot.lane.b32.xlu1 %v8797_v43, %s9136_s24 }
0x3db2   : > { %5583 = vrot.lane.b32.xlu1 %v8795_v35, %s9137_s25 }
0x3e22   : > { %v5465_v61 = vpop.xlane.xlu1 %5464 }
0x3e23   : > { %v5469_v10 = vsub.f32 %v5461_v13, %v5465_v61 }
0x3e25   : > { %v5471_v24 = vmul.f32 1.442695, %v5469_v10 }
0x3e26   : > { %v5468_v25 = vpop.xlane.xlu0 %5467  ;;  %v5488_v37 = vpop.permute.xlu1 %5487 }
0x3e27   : > { %7635 = vpow2.f32 %v5471_v24  ;;  %v5470_v29 = vsub.f32 %v5462_v19, %v5468_v25  ;;  %v5493_v31 = vsel %vm3751_vm14, %v5488_v37, 0 }
0x3e28   : > { %7243 = vmatpush3.bf16.msra.mxu0 %v5493_v31 }
0x3e29   : > { %v5473_v38 = vmul.f32 1.442695, %v5470_v29  ;;  %7254 = vmatprep.subr.bf16.mxu0 %v7694_v56 }
0x3e2a   : > { %v5586_v51 = vpop.permute.xlu1 %5585 }
0x3e2b   : > { %7637 = vpow2.f32 %v5473_v38  ;;  %v5591_v2 = vsel %vm3624_vm13, %v5586_v51, 0 }
0x3e2e   : > { %v5636_v3 = vpop.permute.xlu1 %5635 }
0x3e2f   : > { %v5641_v58 = vsel %vm3624_vm13, %v5636_v3, 0 }
0x3e31   : > { %v7636_v30 = vpop.eup %7635 }
0x3e32   : > { %v5475_v32 = vsel %vm3624_vm13, %v7636_v30, 0.0  ;;  %v5584_v40 = vpop.permute.xlu1 %5583 }
0x3e33   : > { %5476 = vadd.xlane.f32.xlu0 %v5475_v32 }
0x3e35   : > { %v7638_v33 = vpop.eup %7637 }
0x3e36   : > { %v5478_v39 = vsel %vm3624_vm13, %v7638_v33, 0.0 }
0x3e37   : > { %5479 = vadd.xlane.f32.xlu0 %v5478_v39 }
0x3e4d   : > { %5535 = vrot.lane.b32.xlu0 %v8797_v43, %s9135_s22 }
0x3e51   : > { %5633 = vrot.lane.b32.xlu0 %v8797_v43, %s9137_s25 }
0x3ec0   : > { %v5477_v45 = vpop.xlane.xlu0 %5476 }
0x3ec1   : > { %7639 = vrcp.f32 %v5477_v45 }
0x3ec4   : > { %v5480_v47 = vpop.xlane.xlu0 %5479 }
0x3ec5   : > { %7641 = vrcp.f32 %v5480_v47 }
0x3ec8   : > { %v5536_v48 = vpop.permute.xlu0 %5535 }
0x3ec9   : > { %v5541_v50 = vsel %vm3751_vm14, %v5536_v48, 0 }
0x3eca   : > { %7249 = vmatpush3.bf16.msra.mxu1 %v5541_v50 }
0x3ecb   : > { %v7640_v36 = vpop.eup %7639  ;;  %7260 = vmatprep.subr.bf16.mxu1 %v7694_v56 }
0x3ecc   : > { %v5483_v54 = vmul.f32 %v7640_v36, %v7636_v30  ;;  %v5634_v44 = vpop.permute.xlu0 %5633 }
0x3ece   : > { %v5485_v57 = vpack.c.bf16 %v5483_v54, %v5483_v54 }
0x3ecf   : > { %v7642_v0 = vpop.eup %7641 }
0x3ed0   : > { %v5484_v1 = vmul.f32 %v7642_v0, %v7638_v33  ;;  %7245 = vmatmul.mubr.msk.bf16.vlgmr.msra.gmra.mrb[64].mxu0 %vm3624_vm13, %v5485_v57 }
0x3ed1   : > { %7255 = vmatpush3.bf16.xpose.msra.mxu0 %v5591_v2  ;;  %7256 = vmatprep.mubr.msk.bf16.mxu0 %vm7695_vm12, %v7694_v56 }
0x3ed2   : > { %v5486_v4 = vpack.c.bf16 %v5484_v1, %v5484_v1  ;;  %7266 = vmatprep.subr.bf16.mxu0 %v7694_v56 }
0x3ed4   : > { %7251 = vmatmul.mubr.msk.bf16.vlgmr.msra.gmra.mrb[60].mxu1 %vm3624_vm13, %v5486_v4 }
0x3ed5   : > { %7261 = vmatpush3.bf16.xpose.msra.mxu1 %v5641_v58  ;;  %7262 = vmatprep.mubr.msk.bf16.mxu1 %vm7695_vm12, %v7694_v56 }
0x3ed6   : > { %7272 = vmatprep.subr.bf16.mxu1 %v7694_v56 }
0x3ed8   : > { %7257 = vmatmul.mubr.msk.bf16.vlgmr.msra.gmra.mrb[68].mxu0 %vm3624_vm13, %v5584_v40 }
0x3ed9   : > { %7268 = vmatprep.mubr.msk.bf16.mxu0 %vm7695_vm12, %v7694_v56 }
0x3edc   : > { %7263 = vmatmul.mubr.msk.bf16.vlgmr.msra.gmra.mrb[64].mxu1 %vm3624_vm13, %v5634_v44 }
0x3edd   : > { %7274 = vmatprep.mubr.msk.bf16.mxu1 %vm7695_vm12, %v7694_v56 }
0x3fa3   : > { %v5529_v6 = vpop.f32.mrb[64].mxu0 }
0x3fa4   : > { %v7246_v8 = vpop.f32.mrb[65].mxu0 }
0x3fa5   : > { %v5532_v5 = vpop.f32.mrb[66].mxu0 }
0x3fa6   : > { %v7247_v23 = vpop.f32.mrb[67].mxu0 }
0x3fa7   : > { %v5577_v28 = vpop.f32.mrb[60].mxu1 }
0x3fa8   : > { %v7542_v60 = vpack.i.bf16 %v5577_v28, %v5529_v6  ;;  %v7252_v11 = vpop.f32.mrb[61].mxu1 }
0x3fa9   : > { %v5580_v21 = vpop.f32.mrb[62].mxu1 }
0x3faa   : > { %v7253_v53 = vpop.f32.mrb[63].mxu1 }
0x3fab   : > { %v5627_v62 = vpop.f32.mrb[68].mxu0 }
0x3fac   : > { %v5683_v26 = vmul.f32 0.35355338, %v5627_v62  ;;  %v7258_v34 = vpop.f32.mrb[69].mxu0  ;;  %v6543_v62 = vld [vmem:[%s9079_s13 + $0x9] ss:$0 sm:$0xff] }
0x3fad   : > { %v5630_v42 = vpop.f32.mrb[70].mxu0 }
0x3fae   : > { %v7259_v13 = vpop.f32.mrb[71].mxu0  ;;  %v5685_v27 = vsel %vm3624_vm13, %v5683_v26, -inf }
0x3faf   : > { %v5677_v55 = vpop.f32.mrb[64].mxu1  ;;  %5686 = vmax.xlane.f32.xlu1 %v5685_v27 }
0x3fb0   : > { %v5684_v59 = vmul.f32 0.35355338, %v5677_v55  ;;  %v7264_v17 = vpop.f32.mrb[65].mxu1 }
0x3fb1   : > { %v5680_v63 = vpop.f32.mrb[66].mxu1 }
0x3fb2   : > { %v7265_v19 = vpop.f32.mrb[67].mxu1  ;;  %v5688_v20 = vsel %vm3624_vm13, %v5684_v59, -inf }
0x3fb3   : > { %5689 = vmax.xlane.f32.xlu0 %v5688_v20 }
0x3fc0   : > { %5709 = vrot.lane.b32.xlu1 %v8795_v35, %s9138_s17 }
0x3fc4   : > { %5840 = vrot.lane.b32.xlu1 %v8766_v7, %s9139_s30 }
0x3fc8   : > { %7538 = vrot.lane.b32.xlu1 %v7537_v12, %s9140_s26 }
0x3fcc   : > { %7543 = vrot.lane.b32.xlu1 %v7542_v60, %s9141_s18 }
0x3fd0   : > { %5842 = vrot.lane.b32.xlu1 %v8772_v18, %s9139_s30 }
0x403c   : > { %v5687_v46 = vpop.xlane.xlu1 %5686 }
0x403d   : > { %v5691_v22 = vsub.f32 %v5683_v26, %v5687_v46 }
0x403f   : > { %v5693_v49 = vmul.f32 1.442695, %v5691_v22 }
0x4040   : > { %v5690_v61 = vpop.xlane.xlu0 %5689  ;;  %v5710_v10 = vpop.permute.xlu1 %5709 }
0x4041   : > { %7643 = vpow2.f32 %v5693_v49  ;;  %v5692_v35 = vsub.f32 %v5684_v59, %v5690_v61  ;;  %v5715_v24 = vsel %vm3751_vm14, %v5710_v10, 0 }
0x4042   : > { %7267 = vmatpush3.bf16.msra.mxu0 %v5715_v24 }
0x4043   : > { %v5695_v7 = vmul.f32 1.442695, %v5692_v35  ;;  %7278 = vmatprep.subr.bf16.mxu0 %v7694_v56 }
0x4044   : > { %v5841_v9 = vpop.permute.xlu1 %5840 }
0x4045   : > { %7645 = vpow2.f32 %v5695_v7 }
0x4048   : > { %v7539_v52 = vpop.permute.xlu1 %7538 }
0x4049   : > { %v7541_v12 = vunpack.i.h.bf16 %v7539_v52  ;;  %v7540_v25 = vunpack.i.l.bf16 %v7539_v52 }
0x404b   : > { %v7644_v37 = vpop.eup %7643  ;;  %v5830_v18 = vsel %vm3624_vm13, %v8853_v14, %v7541_v12  ;;  %v5829_v29 = vsel %vm3624_vm13, %v8851_v41, %v7540_v25 }
0x404c   : > { %v5697_v31 = vsel %vm3624_vm13, %v7644_v37, 0.0  ;;  %v7544_v36 = vpop.permute.xlu1 %7543 }
0x404d   : > { %5698 = vadd.xlane.f32.xlu0 %v5697_v31  ;;  %v7546_v44 = vunpack.i.h.bf16 %v7544_v36  ;;  %v7545_v6 = vunpack.i.l.bf16 %v7544_v36  ;;  %v7566_v36 = vld [vmem:[%s9078_s12 + $0x30] sm:$0xff]  }
0x404f   : > { %v7646_v38 = vpop.eup %7645  ;;  %v5831_v28 = vsel %vm4535_vm15, %v5829_v29, %v7545_v6  ;;  %v5832_v60 = vsel %vm4535_vm15, %v5830_v18, %v7546_v44 }
0x4050   : > { %v5700_v30 = vsel %vm3624_vm13, %v7646_v38, 0.0  ;;  %v5843_v51 = vpop.permute.xlu1 %5842 }
0x4051   : > { %5701 = vadd.xlane.f32.xlu0 %v5700_v30  ;;  %v6545_v30 = vld [vmem:[%s9079_s13 + $0xa] ss:$0 sm:$0xff] }
0x4067   : > { %5757 = vrot.lane.b32.xlu0 %v8797_v43, %s9138_s17 }
0x40da   : > { %v5699_v32 = vpop.xlane.xlu0 %5698 }
0x40db   : > { %7647 = vrcp.f32 %v5699_v32 }
0x40de   : > { %v5702_v33 = vpop.xlane.xlu0 %5701 }
0x40df   : > { %7649 = vrcp.f32 %v5702_v33 }
0x40e2   : > { %v5758_v39 = vpop.permute.xlu0 %5757 }
0x40e3   : > { %v5763_v14 = vsel %vm3751_vm14, %v5758_v39, 0 }
0x40e4   : > { %7273 = vmatpush3.bf16.msra.mxu1 %v5763_v14  ;;  %v6546_v14 = vld [vmem:[%s9079_s13 + $0xb] ss:$0 sm:$0xff] }
0x40e5   : > { %v7648_v45 = vpop.eup %7647  ;;  %7286 = vmatprep.subr.bf16.mxu1 %v7694_v56 }
0x40e6   : > { %v5705_v41 = vmul.f32 %v7648_v45, %v7644_v37 }
0x40e8   : > { %v5707_v47 = vpack.c.bf16 %v5705_v41, %v5705_v41 }
0x40e9   : > { %v7650_v48 = vpop.eup %7649 }
0x40ea   : > { %v5706_v50 = vmul.f32 %v7650_v48, %v7646_v38  ;;  %7269 = vmatmul.mubr.msk.bf16.vlgmr.msra.gmra.mrb[72].mxu0 %vm3624_vm13, %v5707_v47 }
0x40eb   : > { %7279 = vmatpush3.bf16.msra.mxu0 %v5841_v9  ;;  %7282 = vmatprep.mubr.msk.bf16.mxu0 %vm7695_vm12, %v7694_v56  ;;  %v7563_v9 = vld [vmem:[%s9077_s11 + $0x34] ss:$8 sps:$4 sm:$0xff]  }
0x40ec   : > { %v5708_v43 = vpack.c.bf16 %v5706_v50, %v5706_v50  ;;  %7280 = vmatprep.subr.bf16.mxu0 %v7694_v56  ;;  %v7564_v50 = vld [vmem:[%s9078_s12 + $0x20] sm:$0xff]  }
0x40ee   : > { %7275 = vmatmul.mubr.msk.bf16.vlgmr.msra.gmra.mrb[68].mxu1 %vm3624_vm13, %v5708_v43  ;;  %v7565_v43 = vld [vmem:[%s9078_s12 + $0x28] sm:$0xff]  }
0x40ef   : > { %7290 = vmatprep.mubr.msk.bf16.mxu1 %vm7695_vm12, %v7694_v56  ;;  %7281 = vmatpush3.bf16.msra.mxu0 %v5843_v51  ;;  %v7567_v51 = vld [vmem:[%s9078_s12 + $0x38] sm:$0xff]  }
0x40f0   : > { %7294 = vmatprep.subr.bf16.mxu0 %v7694_v56 }
0x41bd   : > { %v5751_v54 = vpop.f32.mrb[72].mxu0 }
0x41be   : > { %v7270_v57 = vpop.f32.mrb[73].mxu0 }
0x41bf   : > { %v5754_v0 = vpop.f32.mrb[74].mxu0 }
0x41c0   : > { %v7271_v2 = vpop.f32.mrb[75].mxu0 }
0x41c1   : > { %v5799_v1 = vpop.f32.mrb[68].mxu1 }
0x41c2   : > { %v7547_v3 = vpack.i.bf16 %v5799_v1, %v5751_v54  ;;  %v7276_v4 = vpop.f32.mrb[69].mxu1  ;;  %v6547_v54 = vld [vmem:[%s9079_s13 + $0xc] ss:$0 sm:$0xff] }
0x41c3   : > { %v5802_v58 = vpop.f32.mrb[70].mxu1 }
0x41c4   : > { %v7277_v40 = vpop.f32.mrb[71].mxu1  ;;  %7548 = vrot.lane.b32.xlu0 %v7547_v3, %s9142_s19 }
0x4236   : > { %v7549_v8 = vpop.permute.xlu0 %7548 }
0x4237   : > { %v7551_v5 = vunpack.i.h.bf16 %v7549_v8  ;;  %v7550_v23 = vunpack.i.l.bf16 %v7549_v8 }
0x4239   : > { %v5834_v11 = vsel %vm4538_vm0, %v5832_v60, %v7551_v5  ;;  %v5833_v21 = vsel %vm4538_vm0, %v5831_v28, %v7550_v23 }
0x423a   : > { %v5835_v53 = vpack.c.bf16 %v5834_v11, %v5833_v21 }
0x423c   : > { %7283 = vmatmul.mubr.msk.bf16.vlgmr.msra.gmra.mrb[76].mxu0 %vm3494_vm11, %v5835_v53 }
0x423d   : > { %7302 = vmatprep.mubr.msk.bf16.mxu0 %vm7695_vm12, %v7694_v56  ;;  %7295 = vmatpush3.bf16.msra.mxu0 %v7564_v50  ;;  %v6558_v50 = vld [vmem:[%s9079_s13 + $0xf] ss:$0 sm:$0xff] }
0x423e   : > { %7296 = vmatprep.subr.bf16.mxu0 %v7694_v56 }
0x4241   : > { %7297 = vmatpush3.bf16.msra.mxu0 %v7565_v43 }
0x4242   : > { %7298 = vmatprep.subr.bf16.mxu0 %v7694_v56 }
0x4245   : > { %7299 = vmatpush3.bf16.msra.mxu0 %v7566_v36 }
0x4246   : > { %7300 = vmatprep.subr.bf16.mxu0 %v7694_v56 }
0x4249   : > { %7301 = vmatpush3.bf16.msra.mxu0 %v7567_v51 }
0x430f   : > { %v5883_v26 = vpop.f32.mrb[76].mxu0 }
0x4310   : > { %v5884_v34 = vadd.f32 %v6543_v62, %v5883_v26  ;;  %v7284_v42 = vpop.f32.mrb[77].mxu0 }
0x4311   : > { %v5886_v13 = vpop.f32.mrb[78].mxu0 }
0x4312   : > { %v5887_v27 = vadd.f32 %v6543_v62, %v5886_v13  ;;  %v7285_v55 = vpop.f32.mrb[79].mxu0  ;;  %v5890_v59 = vadd.f32 %v5884_v34, %v8783_v15 }
0x4314   : > { %v5891_v17 = vadd.f32 %v5887_v27, %v8785_v16  ;;  %v5892_v63 = vsel %vm3494_vm11, %v5890_v59, 0.0  ;;  %v7562_v16 = vld [vmem:[%s9077_s11 + $0x24] ss:$8 sps:$4 sm:$0xff]  }
0x4315   : > { %5893 = vadd.xlane.f32.xlu0 %v5892_v63  ;;  %7287 = vmatpush3.bf16.msra.mxu1 %v7562_v16 }
0x4316   : > { %v5895_v19 = vsel %vm3494_vm11, %v5891_v17, 0.0  ;;  %7288 = vmatprep.subr.bf16.mxu1 %v7694_v56 }
0x4317   : > { %5896 = vadd.xlane.f32.xlu1 %v5895_v19 }
0x4319   : > { %7289 = vmatpush3.bf16.msra.mxu1 %v7563_v9 }
0x431a   : > { %7306 = vmatprep.subr.bf16.mxu1 %v7694_v56 }
0x43a2   : > { %v5894_v20 = vpop.xlane.xlu0 %5893 }
0x43a3   : > { %v5898_v46 = vmul.f32 0.03125, %v5894_v20 }
0x43a4   : > { %v5897_v22 = vpop.xlane.xlu1 %5896 }
0x43a5   : > { %v5900_v49 = vsub.f32 %v5890_v59, %v5898_v46  ;;  %v5899_v61 = vmul.f32 0.03125, %v5897_v22  ;;  %v6551_v59 = vld [vmem:[%s9079_s13 + $0xd] ss:$0 sm:$0xff] }
0x43a7   : > { %v5901_v10 = vsub.f32 %v5891_v17, %v5899_v61  ;;  %v5902_v35 = vmul.f32 %v5900_v49, %v5900_v49 }
0x43a9   : > { %v5904_v24 = vsel %vm3494_vm11, %v5902_v35, 0.0  ;;  %v5903_v7 = vmul.f32 %v5901_v10, %v5901_v10 }
0x43aa   : > { %5905 = vadd.xlane.f32.xlu0 %v5904_v24 }
0x43ab   : > { %v5907_v15 = vsel %vm3494_vm11, %v5903_v7, 0.0 }
0x43ae   : > { %5908 = vadd.xlane.f32.xlu0 %v5907_v15 }
0x4437   : > { %v5906_v52 = vpop.xlane.xlu0 %5905 }
0x4438   : > { %v5910_v12 = vmul.f32 0.03125, %v5906_v52 }
0x443a   : > { %v5912_v25 = vadd.f32 1e-05, %v5910_v12 }
0x443b   : > { %v5909_v37 = vpop.xlane.xlu0 %5908 }
0x443c   : > { %7651 = vrsqrt.f32 %v5912_v25  ;;  %v5911_v18 = vmul.f32 0.03125, %v5909_v37 }
0x443e   : > { %v5913_v29 = vadd.f32 1e-05, %v5911_v18 }
0x4440   : > { %7653 = vrsqrt.f32 %v5913_v29  ;;  %v7568_v29 = vld [vmem:[%s9080_s14] sm:$0xff]  }
0x4446   : > { %v7652_v31 = vpop.eup %7651 }
0x4447   : > { %v5916_v38 = vmul.f32 %v7652_v31, %v5900_v49  ;;  %v7569_v31 = vld [vmem:[%s9080_s14 + $0x8] sm:$0xff]  }
0x4449   : > { %v5922_v33 = vmul.f32 %v6545_v30, %v5916_v38 }
0x444a   : > { %v7654_v32 = vpop.eup %7653 }
0x444b   : > { %v5917_v39 = vmul.f32 %v7654_v32, %v5901_v10  ;;  %v5928_v41 = vadd.f32 %v6546_v14, %v5922_v33 }
0x444d   : > { %v5923_v45 = vmul.f32 %v6545_v30, %v5917_v39 }
0x444f   : > { %v5929_v47 = vadd.f32 %v6546_v14, %v5923_v45 }
0x4451   : > { %v5930_v48 = vpack.c.bf16 %v5929_v47, %v5928_v41 }
0x4453   : > { %7291 = vmatmul.mubr.msk.bf16.vlgmr.msra.gmra.mrb[72].mxu1 %vm3494_vm11, %v5930_v48 }
0x4454   : > { %7310 = vmatprep.mubr.msk.bf16.mxu1 %vm7695_vm12, %v7694_v56  ;;  %7307 = vmatpush3.bf16.msra.mxu1 %v7568_v29 }
0x4455   : > { %7308 = vmatprep.subr.bf16.mxu1 %v7694_v56 }
0x4458   : > { %7309 = vmatpush3.bf16.msra.mxu1 %v7569_v31 }
0x4459   : > { %7314 = vmatprep.subr.bf16.mxu1 %v7694_v56 }
0x4526   : > { %v5984_v57 = vpop.f32.mrb[72].mxu1 }
0x4527   : > { %v5985_v0 = vadd.f32 %v6547_v54, %v5984_v57  ;;  %v7292_v2 = vpop.f32.mrb[73].mxu1 }
0x4528   : > { %v5987_v1 = vpop.f32.mrb[74].mxu1 }
0x4529   : > { %v5991_v3 = vmul.f32 %v5985_v0, %v5985_v0  ;;  %v5988_v4 = vadd.f32 %v6547_v54, %v5987_v1  ;;  %v7293_v58 = vpop.f32.mrb[75].mxu1 }
0x452b   : > { %v5993_v40 = vmul.f32 %v5991_v3, %v5985_v0  ;;  %v5992_v44 = vmul.f32 %v5988_v4, %v5988_v4 }
0x452d   : > { %v5995_v6 = vmul.f32 0.044715, %v5993_v40  ;;  %v5994_v8 = vmul.f32 %v5992_v44, %v5988_v4  ;;  %v7570_v44 = vld [vmem:[%s9080_s14 + $0x10] sm:$0xff]  }
0x452f   : > { %v5997_v5 = vadd.f32 %v5995_v6, %v5985_v0  ;;  %v5996_v23 = vmul.f32 0.044715, %v5994_v8  ;;  %v6559_v6 = vld [vmem:[%s9081_s15] ss:$0 sm:$0xff] }
0x4531   : > { %v5999_v28 = vmul.f32 0.7978846, %v5997_v5  ;;  %v5998_v60 = vadd.f32 %v5996_v23, %v5988_v4 }
0x4533   : > { %7655 = vtanh.f32 %v5999_v28  ;;  %v6000_v11 = vmul.f32 0.7978846, %v5998_v60 }
0x4535   : > { %7657 = vtanh.f32 %v6000_v11 }
0x453d   : > { %v7656_v21 = vpop.eup %7655 }
0x453e   : > { %v6003_v53 = vadd.f32 1.0, %v7656_v21 }
0x453f   : > { %v7658_v62 = vpop.eup %7657 }
0x4540   : > { %v6005_v26 = vmul.f32 0.5, %v6003_v53  ;;  %v6004_v34 = vadd.f32 1.0, %v7658_v62 }
0x4542   : > { %v6006_v42 = vmul.f32 0.5, %v6004_v34  ;;  %v6007_v13 = vmul.f32 %v6005_v26, %v5985_v0 }
0x4544   : > { %v6008_v27 = vmul.f32 %v6006_v42, %v5988_v4 }
0x4546   : > { %v6009_v55 = vpack.c.bf16 %v6008_v27, %v6007_v13 }
0x4548   : > { %7303 = vmatmul.mubr.msk.bf16.vlgmr.msra.gmra.mrb[80].mxu0 %vm4744_vm1, %v6009_v55  ;;  %v6563_v55 = vld [vmem:[%s9081_s15 + $0x1] ss:$0 sm:$0xff] }
0x461b   : > { %v6075_v17 = vpop.f32.mrb[80].mxu0 }
0x461c   : > { %v6076_v63 = vadd.f32 %v6551_v59, %v6075_v17  ;;  %v7304_v19 = vpop.f32.mrb[81].mxu0 }
0x461d   : > { %v6078_v20 = vpop.f32.mrb[82].mxu0 }
0x461e   : > { %v6082_v46 = vadd.f32 %v6076_v63, %v5928_v41  ;;  %v6079_v22 = vadd.f32 %v6551_v59, %v6078_v20  ;;  %v7305_v49 = vpop.f32.mrb[83].mxu0  ;;  %v6557_v41 = vld [vmem:[%s9079_s13 + $0xe] ss:$0 sm:$0xff] }
0x4620   : > { %v6083_v61 = vadd.f32 %v6079_v22, %v5929_v47  ;;  %v6084_v10 = vsel %vm3494_vm11, %v6082_v46, 0.0 }
0x4621   : > { %6085 = vadd.xlane.f32.xlu1 %v6084_v10 }
0x4622   : > { %v6087_v35 = vsel %vm3494_vm11, %v6083_v61, 0.0 }
0x4623   : > { %6088 = vadd.xlane.f32.xlu0 %v6087_v35 }
0x46ae   : > { %v6086_v24 = vpop.xlane.xlu1 %6085 }
0x46af   : > { %v6090_v7 = vmul.f32 0.03125, %v6086_v24 }
0x46b0   : > { %v6089_v15 = vpop.xlane.xlu0 %6088 }
0x46b1   : > { %v6092_v16 = vsub.f32 %v6082_v46, %v6090_v7  ;;  %v6091_v9 = vmul.f32 0.03125, %v6089_v15 }
0x46b3   : > { %v6093_v52 = vsub.f32 %v6083_v61, %v6091_v9  ;;  %v6094_v12 = vmul.f32 %v6092_v16, %v6092_v16 }
0x46b5   : > { %v6096_v25 = vsel %vm3494_vm11, %v6094_v12, 0.0  ;;  %v6095_v37 = vmul.f32 %v6093_v52, %v6093_v52 }
0x46b6   : > { %6097 = vadd.xlane.f32.xlu1 %v6096_v25  ;;  %v6567_v25 = vld [vmem:[%s9081_s15 + $0x3] ss:$0 sm:$0xff] }
0x46b7   : > { %v6099_v18 = vsel %vm3494_vm11, %v6095_v37, 0.0 }
0x46b8   : > { %6100 = vadd.xlane.f32.xlu0 %v6099_v18 }
0x4743   : > { %v6098_v38 = vpop.xlane.xlu1 %6097 }
0x4744   : > { %v6102_v30 = vmul.f32 0.03125, %v6098_v38 }
0x4745   : > { %v6101_v32 = vpop.xlane.xlu0 %6100 }
0x4746   : > { %v6104_v33 = vadd.f32 1e-05, %v6102_v30  ;;  %v6103_v39 = vmul.f32 0.03125, %v6101_v32 }
0x4748   : > { %7659 = vrsqrt.f32 %v6104_v33  ;;  %v6105_v14 = vadd.f32 1e-05, %v6103_v39 }
0x474a   : > { %7661 = vrsqrt.f32 %v6105_v14 }
0x4752   : > { %v7660_v45 = vpop.eup %7659 }
0x4753   : > { %v6108_v47 = vmul.f32 %v7660_v45, %v6092_v16 }
0x4754   : > { %v7662_v48 = vpop.eup %7661 }
0x4755   : > { %v6114_v43 = vmul.f32 %v6557_v41, %v6108_v47  ;;  %v6109_v36 = vmul.f32 %v7662_v48, %v6093_v52  ;;  %v6566_v52 = vld [vmem:[%s9081_s15 + $0x2] ss:$0 sm:$0xff] }
0x4757   : > { %v6120_v51 = vadd.f32 %v6558_v50, %v6114_v43  ;;  %v6115_v54 = vmul.f32 %v6557_v41, %v6109_v36 }
0x4759   : > { %v6121_v57 = vadd.f32 %v6558_v50, %v6115_v54  ;;  %v6132_v0 = vpack.c.bf16 %v6120_v51, %v6120_v51 }
0x475b   : > { %v6133_v2 = vpack.c.bf16 %v6121_v57, %v6121_v57  ;;  %v6140_v3 = vunpack.c.l.b16 %v6132_v0 }
0x475d   : > { %v6141_v1 = vunpack.c.l.b16 %v6133_v2 }
0x475f   : > { %v6142_v4 = vrot.slane %v6141_v1, 7 }
0x4761   : > { %v6144_v58 = vsel %vm6143_vm2, %v6142_v4, %v6140_v3 }
0x4762   : > { %v6145_v40 = vpack.c.b16 %v6144_v58, %v6144_v58 }
0x4764   : > { %7311 = vmatmul.mubr.msk.bf16.vlgmr.msra.gmra.mrb[76].mxu1 %vm3494_vm11, %v6145_v40 }
0x4765   : > { %7316 = vmatprep.mubr.msk.bf16.mxu1 %vm7695_vm12, %v7694_v56  ;;  %7315 = vmatpush3.bf16.msra.mxu1 %v7570_v44 }
0x4837   : > { %v6195_v8 = vpop.f32.mrb[76].mxu1 }
0x4838   : > { %v6196_v5 = vadd.f32 %v6559_v6, %v6195_v8  ;;  %v7312_v23 = vpop.f32.mrb[77].mxu1 }
0x4839   : > { %v6198_v28 = vpop.f32.mrb[78].mxu1 }
0x483a   : > { %v6201_v60 = vmul.f32 %v6196_v5, %v6196_v5  ;;  %v7313_v11 = vpop.f32.mrb[79].mxu1 }
0x483c   : > { %v6202_v21 = vmul.f32 %v6201_v60, %v6196_v5 }
0x483e   : > { %v6203_v53 = vmul.f32 0.044715, %v6202_v21 }
0x4840   : > { %v6204_v62 = vadd.f32 %v6203_v53, %v6196_v5 }
0x4842   : > { %v6205_v26 = vmul.f32 0.7978846, %v6204_v62 }
0x4844   : > { %7663 = vtanh.f32 %v6205_v26 }
0x484e   : > { %v7664_v56 = vpop.eup %7663 }
0x484f   : > { %v6207_v34 = vadd.f32 1.0, %v7664_v56 }
0x4851   : > { %v6208_v42 = vmul.f32 0.5, %v6207_v34 }
0x4853   : > { %v6209_v13 = vmul.f32 %v6208_v42, %v6196_v5 }
0x4855   : > { %v6210_v27 = vpack.c.bf16 %v6209_v13, %v6209_v13 }
0x4857   : > { %7317 = vmatmul.mubr.msk.bf16.vlgmr.msra.gmra.mrb[80].mxu1 %vm4535_vm15, %v6210_v27 }
0x492a   : > { %v6258_v59 = vpop.f32.mrb[80].mxu1 }
0x492b   : > { %v6259_v17 = vadd.f32 %v6563_v55, %v6258_v59  ;;  %v7318_v63 = vpop.f32.mrb[81].mxu1 }
0x492c   : > { %v6261_v19 = vpop.f32.mrb[82].mxu1 }
0x492d   : > { %v6264_v20 = vadd.f32 %v6259_v17, %v6196_v5  ;;  %v7319_v46 = vpop.f32.mrb[83].mxu1 }
0x492f   : > { %v6266_v22 = vsel %vm6265_vm3, %v6264_v20, 0.0 }
0x4930   : > { %6267 = vadd.xlane.f32.xlu0 %v6266_v22 }
0x49bd   : > { %v6268_v49 = vpop.xlane.xlu0 %6267 }
0x49be   : > { %v6270_v61 = vmul.f32 0.0625, %v6268_v49 }
0x49c0   : > { %v6271_v10 = vsub.f32 %v6264_v20, %v6270_v61 }
0x49c2   : > { %v6272_v35 = vmul.f32 %v6271_v10, %v6271_v10 }
0x49c4   : > { %v6273_v24 = vsel %vm6265_vm3, %v6272_v35, 0.0 }
0x49c5   : > { %6274 = vadd.xlane.f32.xlu1 %v6273_v24 }
0x4a52   : > { %v6275_v7 = vpop.xlane.xlu1 %6274 }
0x4a53   : > { %v6276_v15 = vmul.f32 0.0625, %v6275_v7 }
0x4a55   : > { %v6277_v16 = vadd.f32 1e-05, %v6276_v15 }
0x4a57   : > { %7665 = vrsqrt.f32 %v6277_v16 }
0x4a61   : > { %v7666_v9 = vpop.eup %7665 }
0x4a62   : > { %v6279_v12 = vmul.f32 %v7666_v9, %v6271_v10 }
0x4a64   : > { %v6284_v37 = vmul.f32 %v6566_v52, %v6279_v12 }
0x4a66   : > { %v6289_v18 = vadd.f32 %v6567_v25, %v6284_v37 }
0x4a68   : > { %6290 = vst.msk [vmem:[%s7811_s27] sm:$0x3] %vm6265_vm3, %v6289_v18 }
0x4a69 PF: > { %s26_s21 = sadd.s32 1, %s7673_s21  }
0x4a6a   : > { %p23_p6 = scmp.ge.s32.totalorder %s26_s21, 4  }
0x4a6c   :  { %25 = sbr.rel (!%p23_p6) target bundleno = 2 (0x2), region = 125 }

</bundles_post_ra>
